<compile_context>
chip_gen: v7x
topology: tpu7x:2x2x1
jax: 0.10.0
libtpu: 0.0.40
codegen_flags: <defaults>
</compile_context>

<pallas_src>
import math

import jax
import jax.numpy as jnp
from jax import lax
from jax.experimental import pallas as pl
from jax.experimental.pallas import tpu as pltpu

# ----------------------------- model config ---------------------------------
H = 32                       # bertConfig.hidden_size
NH = 2                       # num_attention_heads
DH = H // NH                 # head dim
I = 64                       # intermediate_size
NLAYERS = 4                  # num_hidden_layers
SPLIT = 2                    # split_layer
EMB = 256                    # per-class embedding size (hard-coded in module)
VOCABS = [4, 16, 32, 17]     # len(e2w[key]) for Bar/Position/Pitch/Duration
EPS = 1e-12                  # BERT LayerNorm eps
B, S = 2, 16                 # batch, sequence length
M = B * S                    # folded batch*seq rows
ATT_SCALE = 1.0 / math.sqrt(DH)

# -------------------------- packed weight slab layout -------------------------
LANES = 128
WO_OFF = 3 * NH * H          # 192: rows 0..191 are per-head wq/wk/wv blocks
WI_OFF = WO_OFF + H          # 224
WOUT_OFF = WI_OFF + H        # 256
WROWS = WOUT_OFF + I         # 320  (multiple of 8)
VROWS = 16                   # bias / LN slab rows per layer
# bias/LN slab row indices (rows 0..3*NH-1 hold per-head bq/bk/bv)
R_BO, R_BI, R_BOUT = 6, 7, 8
R_G1, R_B1, R_G2, R_B2 = 9, 10, 11, 12


# --------------------------- in-kernel math helpers ---------------------------
def _gelu(x):
    # TODO(synk): HF BERT default "gelu" is the exact erf form; tanh-GELU used
    # here for guaranteed Mosaic lowering (error well below the scale-1 qint8
    # quantization noise already present in this model).
    c = math.sqrt(2.0 / math.pi)
    return 0.5 * x * (1.0 + jnp.tanh(c * (x + 0.044715 * x * x * x)))


def _qdq(x):
    # torch.quantize_per_tensor(scale=1, zero_point=0, qint8) + dequantize.
    return jnp.clip(jnp.round(x), -128.0, 127.0)


def _layer_norm(h, g, b):
    # Concurrent reductions: E[x] and E[x^2], var = E[x^2] - mu^2.
    mu = jnp.mean(h, axis=-1, keepdims=True)
    ms = jnp.mean(h * h, axis=-1, keepdims=True)
    var = ms - mu * mu
    return (h - mu) * lax.rsqrt(var + EPS) * g + b


# ------------------------------ fused kernel ----------------------------------
def _bert_kernel(h_ref, m_ref, wm_ref, vb_ref, out_ref):
    """Whole MidiBERT forward on the folded [B*S, H] hidden state.

    h_ref  : [B*S, H]           folded hidden state after embedding + in_linear
    m_ref  : [B, 1, S]          additive attention mask
    wm_ref : [L, 320, 128]      packed matrices (per-head wq/wk/wv, wo, wi, wout)
    vb_ref : [L, 16, 128]       packed biases + LayerNorm params
    out_ref: [B*S, H]           last_hidden_state (folded)
    """
    x = h_ref[...]                                      # [M, H]
    masks = [m_ref[b] for b in range(B)]                # each [1, S]

    def attention(x, l):
        """HF BertAttention (fused per-head projections, no k.T, no lane concat)."""
        attn = None
        for h in range(NH):
            base = 3 * h * H
            wq = wm_ref[l, base:base + H, 0:DH]                       # [H, DH]
            wk = wm_ref[l, base + H:base + 2 * H, 0:DH]
            wv = wm_ref[l, base + 2 * H:base + 3 * H, 0:DH]
            bq = vb_ref[l, 3 * h + 0:3 * h + 1, 0:DH]                 # [1, DH]
            bk = vb_ref[l, 3 * h + 1:3 * h + 2, 0:DH]
            bv = vb_ref[l, 3 * h + 2:3 * h + 3, 0:DH]
            q = jnp.dot(x, wq, preferred_element_type=jnp.float32) + bq   # [M, DH]
            k = jnp.dot(x, wk, preferred_element_type=jnp.float32) + bk
            v = jnp.dot(x, wv, preferred_element_type=jnp.float32) + bv
            ctx_rows = []
            for b in range(B):
                qb = q[b * S:(b + 1) * S, :]                          # sublane slices
                kb = k[b * S:(b + 1) * S, :]
                vb_ = v[b * S:(b + 1) * S, :]
                # Contract the head dim of both operands — no explicit k.T.
                s = lax.dot_general(qb, kb, (((1,), (1,)), ((), ())),
                                    preferred_element_type=jnp.float32)
                s = s * ATT_SCALE + masks[b]
                s = s - jnp.max(s, axis=-1, keepdims=True)
                p = jnp.exp(s)
                p = p * pl.reciprocal(jnp.sum(p, axis=-1, keepdims=True),
                                      approx=True)
                ctx_rows.append(jnp.dot(p, vb_,
                                        preferred_element_type=jnp.float32))
            ctx = jnp.concatenate(ctx_rows, axis=0)                   # [M, DH]
            # sum_h ctx_h @ wo[h*DH:(h+1)*DH, :] replaces the lane concat of ctx
            wo_h = wm_ref[l, WO_OFF + h * DH:WO_OFF + (h + 1) * DH, 0:H]
            part = jnp.dot(ctx, wo_h, preferred_element_type=jnp.float32)
            attn = part if attn is None else attn + part
        bo = vb_ref[l, R_BO:R_BO + 1, 0:H]
        g1 = vb_ref[l, R_G1:R_G1 + 1, 0:H]
        b1 = vb_ref[l, R_B1:R_B1 + 1, 0:H]
        return _layer_norm(attn + bo + x, g1, b1)

    def ffn(a, l):
        """BertIntermediate(+GELU) + BertOutput (dense + dropout(id) + Add&LN)."""
        wi = wm_ref[l, WI_OFF:WI_OFF + H, 0:I]
        bi = vb_ref[l, R_BI:R_BI + 1, 0:I]
        wout = wm_ref[l, WOUT_OFF:WOUT_OFF + I, 0:H]
        bout = vb_ref[l, R_BOUT:R_BOUT + 1, 0:H]
        g2 = vb_ref[l, R_G2:R_G2 + 1, 0:H]
        b2 = vb_ref[l, R_B2:R_B2 + 1, 0:H]
        inter = _gelu(jnp.dot(a, wi, preferred_element_type=jnp.float32) + bi)
        out = jnp.dot(inter, wout, preferred_element_type=jnp.float32) + bout
        return _layer_norm(out + a, g2, b2)

    # ---- front half: full layers 0 .. SPLIT-1
    for l in range(SPLIT):
        x = ffn(attention(x, l), l)

    # ---- split layer, front part: attention + intermediate dense (NO act)
    a = attention(x, SPLIT)
    wi = wm_ref[SPLIT, WI_OFF:WI_OFF + H, 0:I]
    bi = vb_ref[SPLIT, R_BI:R_BI + 1, 0:I]
    inter = jnp.dot(a, wi, preferred_element_type=jnp.float32) + bi

    # ---- qint8 fake-quant stage boundary (edge -> cloud), kept in-register
    q_ffn = _qdq(inter)
    q_res = _qdq(a)

    # ---- split layer, back part: act -> output dense -> +residual -> LN
    wout = wm_ref[SPLIT, WOUT_OFF:WOUT_OFF + I, 0:H]
    bout = vb_ref[SPLIT, R_BOUT:R_BOUT + 1, 0:H]
    g2 = vb_ref[SPLIT, R_G2:R_G2 + 1, 0:H]
    b2 = vb_ref[SPLIT, R_B2:R_B2 + 1, 0:H]
    seq = jnp.dot(_gelu(q_ffn), wout, preferred_element_type=jnp.float32) + bout
    seq = _layer_norm(seq + q_res, g2, b2)

    # ---- back half: remaining full layers SPLIT+1 .. NLAYERS-1
    for l in range(SPLIT + 1, NLAYERS):
        seq = ffn(attention(seq, l), l)

    out_ref[...] = seq


# --------------------------- weight packing (glue) ----------------------------
def _pack_weights(layers):
    """Pack all per-layer parameters into two VMEM-friendly slabs."""
    wm = jnp.zeros((NLAYERS, WROWS, LANES), jnp.float32)
    vb = jnp.zeros((NLAYERS, VROWS, LANES), jnp.float32)
    for l, p in enumerate(layers):
        for h in range(NH):
            base = 3 * h * H
            sl = slice(h * DH, (h + 1) * DH)
            wm = wm.at[l, base:base + H, 0:DH].set(p["wq"][:, sl])
            wm = wm.at[l, base + H:base + 2 * H, 0:DH].set(p["wk"][:, sl])
            wm = wm.at[l, base + 2 * H:base + 3 * H, 0:DH].set(p["wv"][:, sl])
            vb = vb.at[l, 3 * h + 0, 0:DH].set(p["bq"][sl])
            vb = vb.at[l, 3 * h + 1, 0:DH].set(p["bk"][sl])
            vb = vb.at[l, 3 * h + 2, 0:DH].set(p["bv"][sl])
        wm = wm.at[l, WO_OFF:WO_OFF + H, 0:H].set(p["wo"])
        wm = wm.at[l, WI_OFF:WI_OFF + H, 0:I].set(p["wi"])
        wm = wm.at[l, WOUT_OFF:WOUT_OFF + I, 0:H].set(p["wout"])
        vb = vb.at[l, R_BO, 0:H].set(p["bo"])
        vb = vb.at[l, R_BI, 0:I].set(p["bi"])
        vb = vb.at[l, R_BOUT, 0:H].set(p["bout"])
        vb = vb.at[l, R_G1, 0:H].set(p["ln1_g"])
        vb = vb.at[l, R_B1, 0:H].set(p["ln1_b"])
        vb = vb.at[l, R_G2, 0:H].set(p["ln2_g"])
        vb = vb.at[l, R_B2, 0:H].set(p["ln2_b"])
    return wm, vb


def prepare_params(params):
    """One-time preprocessing (host/XLA side, not per-call kernel work).

    Algebraic fusion of the embedding projection (exact):
      in_linear(concat(e0..e3)) == sum_i (sqrt(EMB)*emb_i @ W_in[i*256:(i+1)*256]) + b
    """
    proj = [(math.sqrt(EMB) * params["emb"][i])
            @ params["w_in"][i * EMB:(i + 1) * EMB, :] for i in range(4)]
    wm, vb = _pack_weights(params["layers"])
    return dict(proj=proj, b_in=params["b_in"], wm=wm, vb=vb)


# ------------------------------- forward pass ---------------------------------
@jax.jit
def dist_forward(packed, input_ids, attn_mask):
    # Embedding + in_linear via 4 tiny gathers + bias (gather is glue, XLA side).
    h0 = packed["b_in"][None, None, :]
    for i in range(4):
        h0 = h0 + packed["proj"][i][input_ids[..., i]]          # [B, S, H]
    h0 = h0.reshape(M, H)                                       # fold batch

    mask_add = ((1.0 - attn_mask) * -10000.0).reshape(B, 1, S).astype(jnp.float32)

    out = pl.pallas_call(
        _bert_kernel,
        out_shape=jax.ShapeDtypeStruct((M, H), jnp.float32),
        grid=(1,),
        in_specs=[pl.BlockSpec((M, H), lambda i: (0, 0)),
                  pl.BlockSpec((B, 1, S), lambda i: (0, 0, 0)),
                  pl.BlockSpec((NLAYERS, WROWS, LANES), lambda i: (0, 0, 0)),
                  pl.BlockSpec((NLAYERS, VROWS, LANES), lambda i: (0, 0, 0))],
        out_specs=pl.BlockSpec((M, H), lambda i: (0, 0)),
        compiler_params=pltpu.CompilerParams(
            dimension_semantics=("arbitrary",)),
    )(h0, mask_add, packed["wm"], packed["vb"])
    return out.reshape(B, S, H)                                 # last_hidden_state


# ------------------------------ parameter init -------------------------------
def init_params(key):
    def dense(k, k_in, k_out):
        kw, _ = jax.random.split(k)
        return (0.02 * jax.random.normal(kw, (k_in, k_out), jnp.float32),
                jnp.zeros((k_out,), jnp.float32))

    keys = jax.random.split(key, 8 + NLAYERS)
    emb = [0.02 * jax.random.normal(keys[i], (VOCABS[i], EMB), jnp.float32)
           for i in range(4)]
    w_in, b_in = dense(keys[4], 4 * EMB, H)

    layers = []
    for li in range(NLAYERS):
        lk = jax.random.split(keys[8 + li], 6)
        wq, bq = dense(lk[0], H, H)
        wk, bk = dense(lk[1], H, H)
        wv, bv = dense(lk[2], H, H)
        wo, bo = dense(lk[3], H, H)
        wi, bi = dense(lk[4], H, I)
        wout, bout = dense(lk[5], I, H)
        layers.append(dict(
            wq=wq, bq=bq, wk=wk, bk=bk, wv=wv, bv=bv, wo=wo, bo=bo,
            ln1_g=jnp.ones((H,), jnp.float32), ln1_b=jnp.zeros((H,), jnp.float32),
            wi=wi, bi=bi, wout=wout, bout=bout,
            ln2_g=jnp.ones((H,), jnp.float32), ln2_b=jnp.zeros((H,), jnp.float32)))
    return dict(emb=emb, w_in=w_in, b_in=b_in, layers=layers)


# ----------------------------------- main ------------------------------------
if __name__ == "__main__":
    params = init_params(jax.random.PRNGKey(0))
    packed = prepare_params(params)

    key = jax.random.PRNGKey(0)
    input_ids = jnp.stack(
        [jax.random.randint(jax.random.fold_in(key, i), (B, S), 0, VOCABS[i])
         for i in range(4)], axis=-1)                        # [B, S, 4] int32
    # batch 0 fully valid, batch 1 has 4 padded positions (exercises the mask)
    attn_mask = jnp.ones((B, S), jnp.float32).at[1, S - 4:].set(0.0)

    out = dist_forward(packed, input_ids, attn_mask)         # last_hidden_state
    out = jax.block_until_ready(out)

    assert out.shape == (B, S, H)
    assert bool(jnp.isfinite(out).all())
    print("KERNEL_OK")
</pallas_src>

<mosaic_0001>
module attributes {stable_mosaic.version = 11 : i64} {
  func.func @_bert_kernel(%arg0: i32, %arg1: memref<32x32xf32, #tpu.memory_space<vmem>>, %arg2: memref<2x1x16xf32, #tpu.memory_space<vmem>>, %arg3: memref<4x320x128xf32, #tpu.memory_space<vmem>>, %arg4: memref<4x16x128xf32, #tpu.memory_space<vmem>>, %arg5: memref<32x32xf32, #tpu.memory_space<vmem>>) attributes {dimension_semantics = [#tpu.dimension_semantics<arbitrary>], iteration_bounds = array<i64: 1>, scalar_prefetch = 0 : i64, scratch_operands = 0 : i64, tpu.core_type = #tpu.core_type<tc>, window_params = [{pipeline_mode = #tpu.pipeline_mode<synchronous>, transform_indices = @transform_0, window_bounds = array<i64: 32, 32>}, {pipeline_mode = #tpu.pipeline_mode<synchronous>, transform_indices = @transform_1, window_bounds = array<i64: 2, 1, 16>}, {pipeline_mode = #tpu.pipeline_mode<synchronous>, transform_indices = @transform_2, window_bounds = array<i64: 4, 320, 128>}, {pipeline_mode = #tpu.pipeline_mode<synchronous>, transform_indices = @transform_3, window_bounds = array<i64: 4, 16, 128>}, {pipeline_mode = #tpu.pipeline_mode<synchronous>, transform_indices = @transform_4, window_bounds = array<i64: 32, 32>}]} {
    %c0 = arith.constant 0 : index
    %c0_0 = arith.constant 0 : index
    %0 = vector.load %arg1[%c0, %c0_0] : memref<32x32xf32, #tpu.memory_space<vmem>>, vector<32x32xf32>
    %c0_1 = arith.constant 0 : index
    %c0_2 = arith.constant 0 : index
    %c0_3 = arith.constant 0 : index
    %1 = vector.load %arg2[%c0_1, %c0_2, %c0_3] : memref<2x1x16xf32, #tpu.memory_space<vmem>>, vector<1x1x16xf32>
    %2 = vector.shape_cast %1 : vector<1x1x16xf32> to vector<1x16xf32>
    %c1 = arith.constant 1 : index
    %c0_4 = arith.constant 0 : index
    %c0_5 = arith.constant 0 : index
    %3 = vector.load %arg2[%c1, %c0_4, %c0_5] : memref<2x1x16xf32, #tpu.memory_space<vmem>>, vector<1x1x16xf32>
    %4 = vector.shape_cast %3 : vector<1x1x16xf32> to vector<1x16xf32>
    %c0_6 = arith.constant 0 : index
    %c0_7 = arith.constant 0 : index
    %c0_8 = arith.constant 0 : index
    %5 = vector.load %arg3[%c0_6, %c0_7, %c0_8] : memref<4x320x128xf32, #tpu.memory_space<vmem>>, vector<1x32x16xf32>
    %6 = vector.shape_cast %5 : vector<1x32x16xf32> to vector<32x16xf32>
    %c0_9 = arith.constant 0 : index
    %c32 = arith.constant 32 : index
    %c0_10 = arith.constant 0 : index
    %7 = vector.load %arg3[%c0_9, %c32, %c0_10] : memref<4x320x128xf32, #tpu.memory_space<vmem>>, vector<1x32x16xf32>
    %8 = vector.shape_cast %7 : vector<1x32x16xf32> to vector<32x16xf32>
    %c0_11 = arith.constant 0 : index
    %c64 = arith.constant 64 : index
    %c0_12 = arith.constant 0 : index
    %9 = vector.load %arg3[%c0_11, %c64, %c0_12] : memref<4x320x128xf32, #tpu.memory_space<vmem>>, vector<1x32x16xf32>
    %10 = vector.shape_cast %9 : vector<1x32x16xf32> to vector<32x16xf32>
    %c0_13 = arith.constant 0 : index
    %c0_14 = arith.constant 0 : index
    %c0_15 = arith.constant 0 : index
    %11 = vector.load %arg4[%c0_13, %c0_14, %c0_15] : memref<4x16x128xf32, #tpu.memory_space<vmem>>, vector<1x1x16xf32>
    %12 = vector.shape_cast %11 : vector<1x1x16xf32> to vector<1x16xf32>
    %c0_16 = arith.constant 0 : index
    %c1_17 = arith.constant 1 : index
    %c0_18 = arith.constant 0 : index
    %13 = vector.load %arg4[%c0_16, %c1_17, %c0_18] : memref<4x16x128xf32, #tpu.memory_space<vmem>>, vector<1x1x16xf32>
    %14 = vector.shape_cast %13 : vector<1x1x16xf32> to vector<1x16xf32>
    %c0_19 = arith.constant 0 : index
    %c2 = arith.constant 2 : index
    %c0_20 = arith.constant 0 : index
    %15 = vector.load %arg4[%c0_19, %c2, %c0_20] : memref<4x16x128xf32, #tpu.memory_space<vmem>>, vector<1x1x16xf32>
    %16 = vector.shape_cast %15 : vector<1x1x16xf32> to vector<1x16xf32>
    %cst = arith.constant dense<0.000000e+00> : vector<32x16xf32>
    %17 = tpu.matmul %0, %6, %cst {dimension_numbers = #tpu.dot_dimension_numbers<[1], [0], [0], [1], [0, 0, 1, 1], [], []>} : vector<32x32xf32>, vector<32x16xf32>, vector<32x16xf32> -> vector<32x16xf32>
    %18 = vector.broadcast %12 : vector<1x16xf32> to vector<32x16xf32>
    %19 = arith.addf %17, %18 : vector<32x16xf32>
    %cst_21 = arith.constant dense<0.000000e+00> : vector<32x16xf32>
    %20 = tpu.matmul %0, %8, %cst_21 {dimension_numbers = #tpu.dot_dimension_numbers<[1], [0], [0], [1], [0, 0, 1, 1], [], []>} : vector<32x32xf32>, vector<32x16xf32>, vector<32x16xf32> -> vector<32x16xf32>
    %21 = vector.broadcast %14 : vector<1x16xf32> to vector<32x16xf32>
    %22 = arith.addf %20, %21 : vector<32x16xf32>
    %cst_22 = arith.constant dense<0.000000e+00> : vector<32x16xf32>
    %23 = tpu.matmul %0, %10, %cst_22 {dimension_numbers = #tpu.dot_dimension_numbers<[1], [0], [0], [1], [0, 0, 1, 1], [], []>} : vector<32x32xf32>, vector<32x16xf32>, vector<32x16xf32> -> vector<32x16xf32>
    %24 = vector.broadcast %16 : vector<1x16xf32> to vector<32x16xf32>
    %25 = arith.addf %23, %24 : vector<32x16xf32>
    %26 = vector.extract_strided_slice %19 {offsets = [0, 0], sizes = [16, 16], strides = [1, 1]} : vector<32x16xf32> to vector<16x16xf32>
    %27 = vector.extract_strided_slice %22 {offsets = [0, 0], sizes = [16, 16], strides = [1, 1]} : vector<32x16xf32> to vector<16x16xf32>
    %28 = vector.extract_strided_slice %25 {offsets = [0, 0], sizes = [16, 16], strides = [1, 1]} : vector<32x16xf32> to vector<16x16xf32>
    %cst_23 = arith.constant dense<0.000000e+00> : vector<16x16xf32>
    %29 = tpu.matmul %26, %27, %cst_23 {dimension_numbers = #tpu.dot_dimension_numbers<[1], [1], [0], [0], [0, 0, 1, 0], [], []>} : vector<16x16xf32>, vector<16x16xf32>, vector<16x16xf32> -> vector<16x16xf32>
    %cst_24 = arith.constant 2.500000e-01 : f32
    %30 = vector.broadcast %cst_24 : f32 to vector<16x16xf32>
    %31 = arith.mulf %29, %30 : vector<16x16xf32>
    %32 = vector.broadcast %2 : vector<1x16xf32> to vector<16x16xf32>
    %33 = arith.addf %31, %32 : vector<16x16xf32>
    %cst_25 = arith.constant dense<0xFF800000> : vector<16xf32>
    %34 = vector.multi_reduction <maximumf>, %33, %cst_25 [1] : vector<16x16xf32> to vector<16xf32>
    %35 = vector.shape_cast %34 : vector<16xf32> to vector<16x1xf32>
    %36 = vector.broadcast %35 : vector<16x1xf32> to vector<16x16xf32>
    %37 = arith.subf %33, %36 : vector<16x16xf32>
    %38 = math.exp %37 : vector<16x16xf32>
    %cst_26 = arith.constant dense<0.000000e+00> : vector<16xf32>
    %39 = vector.multi_reduction <add>, %38, %cst_26 [1] : vector<16x16xf32> to vector<16xf32>
    %40 = vector.shape_cast %39 : vector<16xf32> to vector<16x1xf32>
    %41 = tpu.reciprocal %40 {approx = true} : vector<16x1xf32> -> vector<16x1xf32>
    %42 = vector.broadcast %41 : vector<16x1xf32> to vector<16x16xf32>
    %43 = arith.mulf %38, %42 : vector<16x16xf32>
    %cst_27 = arith.constant dense<0.000000e+00> : vector<16x16xf32>
    %44 = tpu.matmul %43, %28, %cst_27 {dimension_numbers = #tpu.dot_dimension_numbers<[1], [0], [0], [1], [0, 0, 1, 1], [], []>} : vector<16x16xf32>, vector<16x16xf32>, vector<16x16xf32> -> vector<16x16xf32>
    %45 = vector.extract_strided_slice %19 {offsets = [16, 0], sizes = [16, 16], strides = [1, 1]} : vector<32x16xf32> to vector<16x16xf32>
    %46 = vector.extract_strided_slice %22 {offsets = [16, 0], sizes = [16, 16], strides = [1, 1]} : vector<32x16xf32> to vector<16x16xf32>
    %47 = vector.extract_strided_slice %25 {offsets = [16, 0], sizes = [16, 16], strides = [1, 1]} : vector<32x16xf32> to vector<16x16xf32>
    %cst_28 = arith.constant dense<0.000000e+00> : vector<16x16xf32>
    %48 = tpu.matmul %45, %46, %cst_28 {dimension_numbers = #tpu.dot_dimension_numbers<[1], [1], [0], [0], [0, 0, 1, 0], [], []>} : vector<16x16xf32>, vector<16x16xf32>, vector<16x16xf32> -> vector<16x16xf32>
    %cst_29 = arith.constant 2.500000e-01 : f32
    %49 = vector.broadcast %cst_29 : f32 to vector<16x16xf32>
    %50 = arith.mulf %48, %49 : vector<16x16xf32>
    %51 = vector.broadcast %4 : vector<1x16xf32> to vector<16x16xf32>
    %52 = arith.addf %50, %51 : vector<16x16xf32>
    %cst_30 = arith.constant dense<0xFF800000> : vector<16xf32>
    %53 = vector.multi_reduction <maximumf>, %52, %cst_30 [1] : vector<16x16xf32> to vector<16xf32>
    %54 = vector.shape_cast %53 : vector<16xf32> to vector<16x1xf32>
    %55 = vector.broadcast %54 : vector<16x1xf32> to vector<16x16xf32>
    %56 = arith.subf %52, %55 : vector<16x16xf32>
    %57 = math.exp %56 : vector<16x16xf32>
    %cst_31 = arith.constant dense<0.000000e+00> : vector<16xf32>
    %58 = vector.multi_reduction <add>, %57, %cst_31 [1] : vector<16x16xf32> to vector<16xf32>
    %59 = vector.shape_cast %58 : vector<16xf32> to vector<16x1xf32>
    %60 = tpu.reciprocal %59 {approx = true} : vector<16x1xf32> -> vector<16x1xf32>
    %61 = vector.broadcast %60 : vector<16x1xf32> to vector<16x16xf32>
    %62 = arith.mulf %57, %61 : vector<16x16xf32>
    %cst_32 = arith.constant dense<0.000000e+00> : vector<16x16xf32>
    %63 = tpu.matmul %62, %47, %cst_32 {dimension_numbers = #tpu.dot_dimension_numbers<[1], [0], [0], [1], [0, 0, 1, 1], [], []>} : vector<16x16xf32>, vector<16x16xf32>, vector<16x16xf32> -> vector<16x16xf32>
    %64 = tpu.concatenate %44, %63 in 0 : vector<16x16xf32>, vector<16x16xf32> -> vector<32x16xf32>
    %c0_33 = arith.constant 0 : index
    %c192 = arith.constant 192 : index
    %c0_34 = arith.constant 0 : index
    %65 = vector.load %arg3[%c0_33, %c192, %c0_34] : memref<4x320x128xf32, #tpu.memory_space<vmem>>, vector<1x16x32xf32>
    %66 = vector.shape_cast %65 : vector<1x16x32xf32> to vector<16x32xf32>
    %cst_35 = arith.constant dense<0.000000e+00> : vector<32x32xf32>
    %67 = tpu.matmul %64, %66, %cst_35 {dimension_numbers = #tpu.dot_dimension_numbers<[1], [0], [0], [1], [0, 0, 1, 1], [], []>} : vector<32x16xf32>, vector<16x32xf32>, vector<32x32xf32> -> vector<32x32xf32>
    %c0_36 = arith.constant 0 : index
    %c96 = arith.constant 96 : index
    %c0_37 = arith.constant 0 : index
    %68 = vector.load %arg3[%c0_36, %c96, %c0_37] : memref<4x320x128xf32, #tpu.memory_space<vmem>>, vector<1x32x16xf32>
    %69 = vector.shape_cast %68 : vector<1x32x16xf32> to vector<32x16xf32>
    %c0_38 = arith.constant 0 : index
    %c128 = arith.constant 128 : index
    %c0_39 = arith.constant 0 : index
    %70 = vector.load %arg3[%c0_38, %c128, %c0_39] : memref<4x320x128xf32, #tpu.memory_space<vmem>>, vector<1x32x16xf32>
    %71 = vector.shape_cast %70 : vector<1x32x16xf32> to vector<32x16xf32>
    %c0_40 = arith.constant 0 : index
    %c160 = arith.constant 160 : index
    %c0_41 = arith.constant 0 : index
    %72 = vector.load %arg3[%c0_40, %c160, %c0_41] : memref<4x320x128xf32, #tpu.memory_space<vmem>>, vector<1x32x16xf32>
    %73 = vector.shape_cast %72 : vector<1x32x16xf32> to vector<32x16xf32>
    %c0_42 = arith.constant 0 : index
    %c3 = arith.constant 3 : index
    %c0_43 = arith.constant 0 : index
    %74 = vector.load %arg4[%c0_42, %c3, %c0_43] : memref<4x16x128xf32, #tpu.memory_space<vmem>>, vector<1x1x16xf32>
    %75 = vector.shape_cast %74 : vector<1x1x16xf32> to vector<1x16xf32>
    %c0_44 = arith.constant 0 : index
    %c4 = arith.constant 4 : index
    %c0_45 = arith.constant 0 : index
    %76 = vector.load %arg4[%c0_44, %c4, %c0_45] : memref<4x16x128xf32, #tpu.memory_space<vmem>>, vector<1x1x16xf32>
    %77 = vector.shape_cast %76 : vector<1x1x16xf32> to vector<1x16xf32>
    %c0_46 = arith.constant 0 : index
    %c5 = arith.constant 5 : index
    %c0_47 = arith.constant 0 : index
    %78 = vector.load %arg4[%c0_46, %c5, %c0_47] : memref<4x16x128xf32, #tpu.memory_space<vmem>>, vector<1x1x16xf32>
    %79 = vector.shape_cast %78 : vector<1x1x16xf32> to vector<1x16xf32>
    %cst_48 = arith.constant dense<0.000000e+00> : vector<32x16xf32>
    %80 = tpu.matmul %0, %69, %cst_48 {dimension_numbers = #tpu.dot_dimension_numbers<[1], [0], [0], [1], [0, 0, 1, 1], [], []>} : vector<32x32xf32>, vector<32x16xf32>, vector<32x16xf32> -> vector<32x16xf32>
    %81 = vector.broadcast %75 : vector<1x16xf32> to vector<32x16xf32>
    %82 = arith.addf %80, %81 : vector<32x16xf32>
    %cst_49 = arith.constant dense<0.000000e+00> : vector<32x16xf32>
    %83 = tpu.matmul %0, %71, %cst_49 {dimension_numbers = #tpu.dot_dimension_numbers<[1], [0], [0], [1], [0, 0, 1, 1], [], []>} : vector<32x32xf32>, vector<32x16xf32>, vector<32x16xf32> -> vector<32x16xf32>
    %84 = vector.broadcast %77 : vector<1x16xf32> to vector<32x16xf32>
    %85 = arith.addf %83, %84 : vector<32x16xf32>
    %cst_50 = arith.constant dense<0.000000e+00> : vector<32x16xf32>
    %86 = tpu.matmul %0, %73, %cst_50 {dimension_numbers = #tpu.dot_dimension_numbers<[1], [0], [0], [1], [0, 0, 1, 1], [], []>} : vector<32x32xf32>, vector<32x16xf32>, vector<32x16xf32> -> vector<32x16xf32>
    %87 = vector.broadcast %79 : vector<1x16xf32> to vector<32x16xf32>
    %88 = arith.addf %86, %87 : vector<32x16xf32>
    %89 = vector.extract_strided_slice %82 {offsets = [0, 0], sizes = [16, 16], strides = [1, 1]} : vector<32x16xf32> to vector<16x16xf32>
    %90 = vector.extract_strided_slice %85 {offsets = [0, 0], sizes = [16, 16], strides = [1, 1]} : vector<32x16xf32> to vector<16x16xf32>
    %91 = vector.extract_strided_slice %88 {offsets = [0, 0], sizes = [16, 16], strides = [1, 1]} : vector<32x16xf32> to vector<16x16xf32>
    %cst_51 = arith.constant dense<0.000000e+00> : vector<16x16xf32>
    %92 = tpu.matmul %89, %90, %cst_51 {dimension_numbers = #tpu.dot_dimension_numbers<[1], [1], [0], [0], [0, 0, 1, 0], [], []>} : vector<16x16xf32>, vector<16x16xf32>, vector<16x16xf32> -> vector<16x16xf32>
    %cst_52 = arith.constant 2.500000e-01 : f32
    %93 = vector.broadcast %cst_52 : f32 to vector<16x16xf32>
    %94 = arith.mulf %92, %93 : vector<16x16xf32>
    %95 = vector.broadcast %2 : vector<1x16xf32> to vector<16x16xf32>
    %96 = arith.addf %94, %95 : vector<16x16xf32>
    %cst_53 = arith.constant dense<0xFF800000> : vector<16xf32>
    %97 = vector.multi_reduction <maximumf>, %96, %cst_53 [1] : vector<16x16xf32> to vector<16xf32>
    %98 = vector.shape_cast %97 : vector<16xf32> to vector<16x1xf32>
    %99 = vector.broadcast %98 : vector<16x1xf32> to vector<16x16xf32>
    %100 = arith.subf %96, %99 : vector<16x16xf32>
    %101 = math.exp %100 : vector<16x16xf32>
    %cst_54 = arith.constant dense<0.000000e+00> : vector<16xf32>
    %102 = vector.multi_reduction <add>, %101, %cst_54 [1] : vector<16x16xf32> to vector<16xf32>
    %103 = vector.shape_cast %102 : vector<16xf32> to vector<16x1xf32>
    %104 = tpu.reciprocal %103 {approx = true} : vector<16x1xf32> -> vector<16x1xf32>
    %105 = vector.broadcast %104 : vector<16x1xf32> to vector<16x16xf32>
    %106 = arith.mulf %101, %105 : vector<16x16xf32>
    %cst_55 = arith.constant dense<0.000000e+00> : vector<16x16xf32>
    %107 = tpu.matmul %106, %91, %cst_55 {dimension_numbers = #tpu.dot_dimension_numbers<[1], [0], [0], [1], [0, 0, 1, 1], [], []>} : vector<16x16xf32>, vector<16x16xf32>, vector<16x16xf32> -> vector<16x16xf32>
    %108 = vector.extract_strided_slice %82 {offsets = [16, 0], sizes = [16, 16], strides = [1, 1]} : vector<32x16xf32> to vector<16x16xf32>
    %109 = vector.extract_strided_slice %85 {offsets = [16, 0], sizes = [16, 16], strides = [1, 1]} : vector<32x16xf32> to vector<16x16xf32>
    %110 = vector.extract_strided_slice %88 {offsets = [16, 0], sizes = [16, 16], strides = [1, 1]} : vector<32x16xf32> to vector<16x16xf32>
    %cst_56 = arith.constant dense<0.000000e+00> : vector<16x16xf32>
    %111 = tpu.matmul %108, %109, %cst_56 {dimension_numbers = #tpu.dot_dimension_numbers<[1], [1], [0], [0], [0, 0, 1, 0], [], []>} : vector<16x16xf32>, vector<16x16xf32>, vector<16x16xf32> -> vector<16x16xf32>
    %cst_57 = arith.constant 2.500000e-01 : f32
    %112 = vector.broadcast %cst_57 : f32 to vector<16x16xf32>
    %113 = arith.mulf %111, %112 : vector<16x16xf32>
    %114 = vector.broadcast %4 : vector<1x16xf32> to vector<16x16xf32>
    %115 = arith.addf %113, %114 : vector<16x16xf32>
    %cst_58 = arith.constant dense<0xFF800000> : vector<16xf32>
    %116 = vector.multi_reduction <maximumf>, %115, %cst_58 [1] : vector<16x16xf32> to vector<16xf32>
    %117 = vector.shape_cast %116 : vector<16xf32> to vector<16x1xf32>
    %118 = vector.broadcast %117 : vector<16x1xf32> to vector<16x16xf32>
    %119 = arith.subf %115, %118 : vector<16x16xf32>
    %120 = math.exp %119 : vector<16x16xf32>
    %cst_59 = arith.constant dense<0.000000e+00> : vector<16xf32>
    %121 = vector.multi_reduction <add>, %120, %cst_59 [1] : vector<16x16xf32> to vector<16xf32>
    %122 = vector.shape_cast %121 : vector<16xf32> to vector<16x1xf32>
    %123 = tpu.reciprocal %122 {approx = true} : vector<16x1xf32> -> vector<16x1xf32>
    %124 = vector.broadcast %123 : vector<16x1xf32> to vector<16x16xf32>
    %125 = arith.mulf %120, %124 : vector<16x16xf32>
    %cst_60 = arith.constant dense<0.000000e+00> : vector<16x16xf32>
    %126 = tpu.matmul %125, %110, %cst_60 {dimension_numbers = #tpu.dot_dimension_numbers<[1], [0], [0], [1], [0, 0, 1, 1], [], []>} : vector<16x16xf32>, vector<16x16xf32>, vector<16x16xf32> -> vector<16x16xf32>
    %127 = tpu.concatenate %107, %126 in 0 : vector<16x16xf32>, vector<16x16xf32> -> vector<32x16xf32>
    %c0_61 = arith.constant 0 : index
    %c208 = arith.constant 208 : index
    %c0_62 = arith.constant 0 : index
    %128 = vector.load %arg3[%c0_61, %c208, %c0_62] : memref<4x320x128xf32, #tpu.memory_space<vmem>>, vector<1x16x32xf32>
    %129 = vector.shape_cast %128 : vector<1x16x32xf32> to vector<16x32xf32>
    %cst_63 = arith.constant dense<0.000000e+00> : vector<32x32xf32>
    %130 = tpu.matmul %127, %129, %cst_63 {dimension_numbers = #tpu.dot_dimension_numbers<[1], [0], [0], [1], [0, 0, 1, 1], [], []>} : vector<32x16xf32>, vector<16x32xf32>, vector<32x32xf32> -> vector<32x32xf32>
    %131 = arith.addf %67, %130 : vector<32x32xf32>
    %c0_64 = arith.constant 0 : index
    %c6 = arith.constant 6 : index
    %c0_65 = arith.constant 0 : index
    %132 = vector.load %arg4[%c0_64, %c6, %c0_65] : memref<4x16x128xf32, #tpu.memory_space<vmem>>, vector<1x1x32xf32>
    %133 = vector.shape_cast %132 : vector<1x1x32xf32> to vector<1x32xf32>
    %c0_66 = arith.constant 0 : index
    %c9 = arith.constant 9 : index
    %c0_67 = arith.constant 0 : index
    %134 = vector.load %arg4[%c0_66, %c9, %c0_67] : memref<4x16x128xf32, #tpu.memory_space<vmem>>, vector<1x1x32xf32>
    %135 = vector.shape_cast %134 : vector<1x1x32xf32> to vector<1x32xf32>
    %c0_68 = arith.constant 0 : index
    %c10 = arith.constant 10 : index
    %c0_69 = arith.constant 0 : index
    %136 = vector.load %arg4[%c0_68, %c10, %c0_69] : memref<4x16x128xf32, #tpu.memory_space<vmem>>, vector<1x1x32xf32>
    %137 = vector.shape_cast %136 : vector<1x1x32xf32> to vector<1x32xf32>
    %138 = vector.broadcast %133 : vector<1x32xf32> to vector<32x32xf32>
    %139 = arith.addf %131, %138 : vector<32x32xf32>
    %140 = arith.addf %139, %0 : vector<32x32xf32>
    %cst_70 = arith.constant dense<0.000000e+00> : vector<32xf32>
    %141 = vector.multi_reduction <add>, %140, %cst_70 [1] : vector<32x32xf32> to vector<32xf32>
    %142 = vector.shape_cast %141 : vector<32xf32> to vector<32x1xf32>
    %cst_71 = arith.constant 3.200000e+01 : f32
    %143 = vector.broadcast %cst_71 : f32 to vector<32x1xf32>
    %144 = arith.divf %142, %143 : vector<32x1xf32>
    %145 = arith.mulf %140, %140 : vector<32x32xf32>
    %cst_72 = arith.constant dense<0.000000e+00> : vector<32xf32>
    %146 = vector.multi_reduction <add>, %145, %cst_72 [1] : vector<32x32xf32> to vector<32xf32>
    %147 = vector.shape_cast %146 : vector<32xf32> to vector<32x1xf32>
    %cst_73 = arith.constant 3.200000e+01 : f32
    %148 = vector.broadcast %cst_73 : f32 to vector<32x1xf32>
    %149 = arith.divf %147, %148 : vector<32x1xf32>
    %150 = arith.mulf %144, %144 : vector<32x1xf32>
    %151 = arith.subf %149, %150 : vector<32x1xf32>
    %152 = vector.broadcast %144 : vector<32x1xf32> to vector<32x32xf32>
    %153 = arith.subf %140, %152 : vector<32x32xf32>
    %cst_74 = arith.constant 9.99999996E-13 : f32
    %154 = vector.broadcast %cst_74 : f32 to vector<32x1xf32>
    %155 = arith.addf %151, %154 : vector<32x1xf32>
    %156 = math.rsqrt %155 : vector<32x1xf32>
    %157 = vector.broadcast %156 : vector<32x1xf32> to vector<32x32xf32>
    %158 = arith.mulf %153, %157 : vector<32x32xf32>
    %159 = vector.broadcast %135 : vector<1x32xf32> to vector<32x32xf32>
    %160 = arith.mulf %158, %159 : vector<32x32xf32>
    %161 = vector.broadcast %137 : vector<1x32xf32> to vector<32x32xf32>
    %162 = arith.addf %160, %161 : vector<32x32xf32>
    %c0_75 = arith.constant 0 : index
    %c224 = arith.constant 224 : index
    %c0_76 = arith.constant 0 : index
    %163 = vector.load %arg3[%c0_75, %c224, %c0_76] : memref<4x320x128xf32, #tpu.memory_space<vmem>>, vector<1x32x64xf32>
    %164 = vector.shape_cast %163 : vector<1x32x64xf32> to vector<32x64xf32>
    %c0_77 = arith.constant 0 : index
    %c7 = arith.constant 7 : index
    %c0_78 = arith.constant 0 : index
    %165 = vector.load %arg4[%c0_77, %c7, %c0_78] : memref<4x16x128xf32, #tpu.memory_space<vmem>>, vector<1x1x64xf32>
    %166 = vector.shape_cast %165 : vector<1x1x64xf32> to vector<1x64xf32>
    %c0_79 = arith.constant 0 : index
    %c256 = arith.constant 256 : index
    %c0_80 = arith.constant 0 : index
    %167 = vector.load %arg3[%c0_79, %c256, %c0_80] : memref<4x320x128xf32, #tpu.memory_space<vmem>>, vector<1x64x32xf32>
    %168 = vector.shape_cast %167 : vector<1x64x32xf32> to vector<64x32xf32>
    %c0_81 = arith.constant 0 : index
    %c8 = arith.constant 8 : index
    %c0_82 = arith.constant 0 : index
    %169 = vector.load %arg4[%c0_81, %c8, %c0_82] : memref<4x16x128xf32, #tpu.memory_space<vmem>>, vector<1x1x32xf32>
    %170 = vector.shape_cast %169 : vector<1x1x32xf32> to vector<1x32xf32>
    %c0_83 = arith.constant 0 : index
    %c11 = arith.constant 11 : index
    %c0_84 = arith.constant 0 : index
    %171 = vector.load %arg4[%c0_83, %c11, %c0_84] : memref<4x16x128xf32, #tpu.memory_space<vmem>>, vector<1x1x32xf32>
    %172 = vector.shape_cast %171 : vector<1x1x32xf32> to vector<1x32xf32>
    %c0_85 = arith.constant 0 : index
    %c12 = arith.constant 12 : index
    %c0_86 = arith.constant 0 : index
    %173 = vector.load %arg4[%c0_85, %c12, %c0_86] : memref<4x16x128xf32, #tpu.memory_space<vmem>>, vector<1x1x32xf32>
    %174 = vector.shape_cast %173 : vector<1x1x32xf32> to vector<1x32xf32>
    %cst_87 = arith.constant dense<0.000000e+00> : vector<32x64xf32>
    %175 = tpu.matmul %162, %164, %cst_87 {dimension_numbers = #tpu.dot_dimension_numbers<[1], [0], [0], [1], [0, 0, 1, 1], [], []>} : vector<32x32xf32>, vector<32x64xf32>, vector<32x64xf32> -> vector<32x64xf32>
    %176 = vector.broadcast %166 : vector<1x64xf32> to vector<32x64xf32>
    %177 = arith.addf %175, %176 : vector<32x64xf32>
    %cst_88 = arith.constant 5.000000e-01 : f32
    %178 = vector.broadcast %cst_88 : f32 to vector<32x64xf32>
    %179 = arith.mulf %178, %177 : vector<32x64xf32>
    %cst_89 = arith.constant 4.471500e-02 : f32
    %180 = vector.broadcast %cst_89 : f32 to vector<32x64xf32>
    %181 = arith.mulf %180, %177 : vector<32x64xf32>
    %182 = arith.mulf %181, %177 : vector<32x64xf32>
    %183 = arith.mulf %182, %177 : vector<32x64xf32>
    %184 = arith.addf %177, %183 : vector<32x64xf32>
    %cst_90 = arith.constant 0.797884583 : f32
    %185 = vector.broadcast %cst_90 : f32 to vector<32x64xf32>
    %186 = arith.mulf %185, %184 : vector<32x64xf32>
    %187 = math.tanh %186 : vector<32x64xf32>
    %cst_91 = arith.constant 1.000000e+00 : f32
    %188 = vector.broadcast %cst_91 : f32 to vector<32x64xf32>
    %189 = arith.addf %188, %187 : vector<32x64xf32>
    %190 = arith.mulf %179, %189 : vector<32x64xf32>
    %cst_92 = arith.constant dense<0.000000e+00> : vector<32x32xf32>
    %191 = tpu.matmul %190, %168, %cst_92 {dimension_numbers = #tpu.dot_dimension_numbers<[1], [0], [0], [1], [0, 0, 1, 1], [], []>} : vector<32x64xf32>, vector<64x32xf32>, vector<32x32xf32> -> vector<32x32xf32>
    %192 = vector.broadcast %170 : vector<1x32xf32> to vector<32x32xf32>
    %193 = arith.addf %191, %192 : vector<32x32xf32>
    %194 = arith.addf %193, %162 : vector<32x32xf32>
    %cst_93 = arith.constant dense<0.000000e+00> : vector<32xf32>
    %195 = vector.multi_reduction <add>, %194, %cst_93 [1] : vector<32x32xf32> to vector<32xf32>
    %196 = vector.shape_cast %195 : vector<32xf32> to vector<32x1xf32>
    %cst_94 = arith.constant 3.200000e+01 : f32
    %197 = vector.broadcast %cst_94 : f32 to vector<32x1xf32>
    %198 = arith.divf %196, %197 : vector<32x1xf32>
    %199 = arith.mulf %194, %194 : vector<32x32xf32>
    %cst_95 = arith.constant dense<0.000000e+00> : vector<32xf32>
    %200 = vector.multi_reduction <add>, %199, %cst_95 [1] : vector<32x32xf32> to vector<32xf32>
    %201 = vector.shape_cast %200 : vector<32xf32> to vector<32x1xf32>
    %cst_96 = arith.constant 3.200000e+01 : f32
    %202 = vector.broadcast %cst_96 : f32 to vector<32x1xf32>
    %203 = arith.divf %201, %202 : vector<32x1xf32>
    %204 = arith.mulf %198, %198 : vector<32x1xf32>
    %205 = arith.subf %203, %204 : vector<32x1xf32>
    %206 = vector.broadcast %198 : vector<32x1xf32> to vector<32x32xf32>
    %207 = arith.subf %194, %206 : vector<32x32xf32>
    %cst_97 = arith.constant 9.99999996E-13 : f32
    %208 = vector.broadcast %cst_97 : f32 to vector<32x1xf32>
    %209 = arith.addf %205, %208 : vector<32x1xf32>
    %210 = math.rsqrt %209 : vector<32x1xf32>
    %211 = vector.broadcast %210 : vector<32x1xf32> to vector<32x32xf32>
    %212 = arith.mulf %207, %211 : vector<32x32xf32>
    %213 = vector.broadcast %172 : vector<1x32xf32> to vector<32x32xf32>
    %214 = arith.mulf %212, %213 : vector<32x32xf32>
    %215 = vector.broadcast %174 : vector<1x32xf32> to vector<32x32xf32>
    %216 = arith.addf %214, %215 : vector<32x32xf32>
    %c1_98 = arith.constant 1 : index
    %c0_99 = arith.constant 0 : index
    %c0_100 = arith.constant 0 : index
    %217 = vector.load %arg3[%c1_98, %c0_99, %c0_100] : memref<4x320x128xf32, #tpu.memory_space<vmem>>, vector<1x32x16xf32>
    %218 = vector.shape_cast %217 : vector<1x32x16xf32> to vector<32x16xf32>
    %c1_101 = arith.constant 1 : index
    %c32_102 = arith.constant 32 : index
    %c0_103 = arith.constant 0 : index
    %219 = vector.load %arg3[%c1_101, %c32_102, %c0_103] : memref<4x320x128xf32, #tpu.memory_space<vmem>>, vector<1x32x16xf32>
    %220 = vector.shape_cast %219 : vector<1x32x16xf32> to vector<32x16xf32>
    %c1_104 = arith.constant 1 : index
    %c64_105 = arith.constant 64 : index
    %c0_106 = arith.constant 0 : index
    %221 = vector.load %arg3[%c1_104, %c64_105, %c0_106] : memref<4x320x128xf32, #tpu.memory_space<vmem>>, vector<1x32x16xf32>
    %222 = vector.shape_cast %221 : vector<1x32x16xf32> to vector<32x16xf32>
    %c1_107 = arith.constant 1 : index
    %c0_108 = arith.constant 0 : index
    %c0_109 = arith.constant 0 : index
    %223 = vector.load %arg4[%c1_107, %c0_108, %c0_109] : memref<4x16x128xf32, #tpu.memory_space<vmem>>, vector<1x1x16xf32>
    %224 = vector.shape_cast %223 : vector<1x1x16xf32> to vector<1x16xf32>
    %c1_110 = arith.constant 1 : index
    %c1_111 = arith.constant 1 : index
    %c0_112 = arith.constant 0 : index
    %225 = vector.load %arg4[%c1_110, %c1_111, %c0_112] : memref<4x16x128xf32, #tpu.memory_space<vmem>>, vector<1x1x16xf32>
    %226 = vector.shape_cast %225 : vector<1x1x16xf32> to vector<1x16xf32>
    %c1_113 = arith.constant 1 : index
    %c2_114 = arith.constant 2 : index
    %c0_115 = arith.constant 0 : index
    %227 = vector.load %arg4[%c1_113, %c2_114, %c0_115] : memref<4x16x128xf32, #tpu.memory_space<vmem>>, vector<1x1x16xf32>
    %228 = vector.shape_cast %227 : vector<1x1x16xf32> to vector<1x16xf32>
    %cst_116 = arith.constant dense<0.000000e+00> : vector<32x16xf32>
    %229 = tpu.matmul %216, %218, %cst_116 {dimension_numbers = #tpu.dot_dimension_numbers<[1], [0], [0], [1], [0, 0, 1, 1], [], []>} : vector<32x32xf32>, vector<32x16xf32>, vector<32x16xf32> -> vector<32x16xf32>
    %230 = vector.broadcast %224 : vector<1x16xf32> to vector<32x16xf32>
    %231 = arith.addf %229, %230 : vector<32x16xf32>
    %cst_117 = arith.constant dense<0.000000e+00> : vector<32x16xf32>
    %232 = tpu.matmul %216, %220, %cst_117 {dimension_numbers = #tpu.dot_dimension_numbers<[1], [0], [0], [1], [0, 0, 1, 1], [], []>} : vector<32x32xf32>, vector<32x16xf32>, vector<32x16xf32> -> vector<32x16xf32>
    %233 = vector.broadcast %226 : vector<1x16xf32> to vector<32x16xf32>
    %234 = arith.addf %232, %233 : vector<32x16xf32>
    %cst_118 = arith.constant dense<0.000000e+00> : vector<32x16xf32>
    %235 = tpu.matmul %216, %222, %cst_118 {dimension_numbers = #tpu.dot_dimension_numbers<[1], [0], [0], [1], [0, 0, 1, 1], [], []>} : vector<32x32xf32>, vector<32x16xf32>, vector<32x16xf32> -> vector<32x16xf32>
    %236 = vector.broadcast %228 : vector<1x16xf32> to vector<32x16xf32>
    %237 = arith.addf %235, %236 : vector<32x16xf32>
    %238 = vector.extract_strided_slice %231 {offsets = [0, 0], sizes = [16, 16], strides = [1, 1]} : vector<32x16xf32> to vector<16x16xf32>
    %239 = vector.extract_strided_slice %234 {offsets = [0, 0], sizes = [16, 16], strides = [1, 1]} : vector<32x16xf32> to vector<16x16xf32>
    %240 = vector.extract_strided_slice %237 {offsets = [0, 0], sizes = [16, 16], strides = [1, 1]} : vector<32x16xf32> to vector<16x16xf32>
    %cst_119 = arith.constant dense<0.000000e+00> : vector<16x16xf32>
    %241 = tpu.matmul %238, %239, %cst_119 {dimension_numbers = #tpu.dot_dimension_numbers<[1], [1], [0], [0], [0, 0, 1, 0], [], []>} : vector<16x16xf32>, vector<16x16xf32>, vector<16x16xf32> -> vector<16x16xf32>
    %cst_120 = arith.constant 2.500000e-01 : f32
    %242 = vector.broadcast %cst_120 : f32 to vector<16x16xf32>
    %243 = arith.mulf %241, %242 : vector<16x16xf32>
    %244 = vector.broadcast %2 : vector<1x16xf32> to vector<16x16xf32>
    %245 = arith.addf %243, %244 : vector<16x16xf32>
    %cst_121 = arith.constant dense<0xFF800000> : vector<16xf32>
    %246 = vector.multi_reduction <maximumf>, %245, %cst_121 [1] : vector<16x16xf32> to vector<16xf32>
    %247 = vector.shape_cast %246 : vector<16xf32> to vector<16x1xf32>
    %248 = vector.broadcast %247 : vector<16x1xf32> to vector<16x16xf32>
    %249 = arith.subf %245, %248 : vector<16x16xf32>
    %250 = math.exp %249 : vector<16x16xf32>
    %cst_122 = arith.constant dense<0.000000e+00> : vector<16xf32>
    %251 = vector.multi_reduction <add>, %250, %cst_122 [1] : vector<16x16xf32> to vector<16xf32>
    %252 = vector.shape_cast %251 : vector<16xf32> to vector<16x1xf32>
    %253 = tpu.reciprocal %252 {approx = true} : vector<16x1xf32> -> vector<16x1xf32>
    %254 = vector.broadcast %253 : vector<16x1xf32> to vector<16x16xf32>
    %255 = arith.mulf %250, %254 : vector<16x16xf32>
    %cst_123 = arith.constant dense<0.000000e+00> : vector<16x16xf32>
    %256 = tpu.matmul %255, %240, %cst_123 {dimension_numbers = #tpu.dot_dimension_numbers<[1], [0], [0], [1], [0, 0, 1, 1], [], []>} : vector<16x16xf32>, vector<16x16xf32>, vector<16x16xf32> -> vector<16x16xf32>
    %257 = vector.extract_strided_slice %231 {offsets = [16, 0], sizes = [16, 16], strides = [1, 1]} : vector<32x16xf32> to vector<16x16xf32>
    %258 = vector.extract_strided_slice %234 {offsets = [16, 0], sizes = [16, 16], strides = [1, 1]} : vector<32x16xf32> to vector<16x16xf32>
    %259 = vector.extract_strided_slice %237 {offsets = [16, 0], sizes = [16, 16], strides = [1, 1]} : vector<32x16xf32> to vector<16x16xf32>
    %cst_124 = arith.constant dense<0.000000e+00> : vector<16x16xf32>
    %260 = tpu.matmul %257, %258, %cst_124 {dimension_numbers = #tpu.dot_dimension_numbers<[1], [1], [0], [0], [0, 0, 1, 0], [], []>} : vector<16x16xf32>, vector<16x16xf32>, vector<16x16xf32> -> vector<16x16xf32>
    %cst_125 = arith.constant 2.500000e-01 : f32
    %261 = vector.broadcast %cst_125 : f32 to vector<16x16xf32>
    %262 = arith.mulf %260, %261 : vector<16x16xf32>
    %263 = vector.broadcast %4 : vector<1x16xf32> to vector<16x16xf32>
    %264 = arith.addf %262, %263 : vector<16x16xf32>
    %cst_126 = arith.constant dense<0xFF800000> : vector<16xf32>
    %265 = vector.multi_reduction <maximumf>, %264, %cst_126 [1] : vector<16x16xf32> to vector<16xf32>
    %266 = vector.shape_cast %265 : vector<16xf32> to vector<16x1xf32>
    %267 = vector.broadcast %266 : vector<16x1xf32> to vector<16x16xf32>
    %268 = arith.subf %264, %267 : vector<16x16xf32>
    %269 = math.exp %268 : vector<16x16xf32>
    %cst_127 = arith.constant dense<0.000000e+00> : vector<16xf32>
    %270 = vector.multi_reduction <add>, %269, %cst_127 [1] : vector<16x16xf32> to vector<16xf32>
    %271 = vector.shape_cast %270 : vector<16xf32> to vector<16x1xf32>
    %272 = tpu.reciprocal %271 {approx = true} : vector<16x1xf32> -> vector<16x1xf32>
    %273 = vector.broadcast %272 : vector<16x1xf32> to vector<16x16xf32>
    %274 = arith.mulf %269, %273 : vector<16x16xf32>
    %cst_128 = arith.constant dense<0.000000e+00> : vector<16x16xf32>
    %275 = tpu.matmul %274, %259, %cst_128 {dimension_numbers = #tpu.dot_dimension_numbers<[1], [0], [0], [1], [0, 0, 1, 1], [], []>} : vector<16x16xf32>, vector<16x16xf32>, vector<16x16xf32> -> vector<16x16xf32>
    %276 = tpu.concatenate %256, %275 in 0 : vector<16x16xf32>, vector<16x16xf32> -> vector<32x16xf32>
    %c1_129 = arith.constant 1 : index
    %c192_130 = arith.constant 192 : index
    %c0_131 = arith.constant 0 : index
    %277 = vector.load %arg3[%c1_129, %c192_130, %c0_131] : memref<4x320x128xf32, #tpu.memory_space<vmem>>, vector<1x16x32xf32>
    %278 = vector.shape_cast %277 : vector<1x16x32xf32> to vector<16x32xf32>
    %cst_132 = arith.constant dense<0.000000e+00> : vector<32x32xf32>
    %279 = tpu.matmul %276, %278, %cst_132 {dimension_numbers = #tpu.dot_dimension_numbers<[1], [0], [0], [1], [0, 0, 1, 1], [], []>} : vector<32x16xf32>, vector<16x32xf32>, vector<32x32xf32> -> vector<32x32xf32>
    %c1_133 = arith.constant 1 : index
    %c96_134 = arith.constant 96 : index
    %c0_135 = arith.constant 0 : index
    %280 = vector.load %arg3[%c1_133, %c96_134, %c0_135] : memref<4x320x128xf32, #tpu.memory_space<vmem>>, vector<1x32x16xf32>
    %281 = vector.shape_cast %280 : vector<1x32x16xf32> to vector<32x16xf32>
    %c1_136 = arith.constant 1 : index
    %c128_137 = arith.constant 128 : index
    %c0_138 = arith.constant 0 : index
    %282 = vector.load %arg3[%c1_136, %c128_137, %c0_138] : memref<4x320x128xf32, #tpu.memory_space<vmem>>, vector<1x32x16xf32>
    %283 = vector.shape_cast %282 : vector<1x32x16xf32> to vector<32x16xf32>
    %c1_139 = arith.constant 1 : index
    %c160_140 = arith.constant 160 : index
    %c0_141 = arith.constant 0 : index
    %284 = vector.load %arg3[%c1_139, %c160_140, %c0_141] : memref<4x320x128xf32, #tpu.memory_space<vmem>>, vector<1x32x16xf32>
    %285 = vector.shape_cast %284 : vector<1x32x16xf32> to vector<32x16xf32>
    %c1_142 = arith.constant 1 : index
    %c3_143 = arith.constant 3 : index
    %c0_144 = arith.constant 0 : index
    %286 = vector.load %arg4[%c1_142, %c3_143, %c0_144] : memref<4x16x128xf32, #tpu.memory_space<vmem>>, vector<1x1x16xf32>
    %287 = vector.shape_cast %286 : vector<1x1x16xf32> to vector<1x16xf32>
    %c1_145 = arith.constant 1 : index
    %c4_146 = arith.constant 4 : index
    %c0_147 = arith.constant 0 : index
    %288 = vector.load %arg4[%c1_145, %c4_146, %c0_147] : memref<4x16x128xf32, #tpu.memory_space<vmem>>, vector<1x1x16xf32>
    %289 = vector.shape_cast %288 : vector<1x1x16xf32> to vector<1x16xf32>
    %c1_148 = arith.constant 1 : index
    %c5_149 = arith.constant 5 : index
    %c0_150 = arith.constant 0 : index
    %290 = vector.load %arg4[%c1_148, %c5_149, %c0_150] : memref<4x16x128xf32, #tpu.memory_space<vmem>>, vector<1x1x16xf32>
    %291 = vector.shape_cast %290 : vector<1x1x16xf32> to vector<1x16xf32>
    %cst_151 = arith.constant dense<0.000000e+00> : vector<32x16xf32>
    %292 = tpu.matmul %216, %281, %cst_151 {dimension_numbers = #tpu.dot_dimension_numbers<[1], [0], [0], [1], [0, 0, 1, 1], [], []>} : vector<32x32xf32>, vector<32x16xf32>, vector<32x16xf32> -> vector<32x16xf32>
    %293 = vector.broadcast %287 : vector<1x16xf32> to vector<32x16xf32>
    %294 = arith.addf %292, %293 : vector<32x16xf32>
    %cst_152 = arith.constant dense<0.000000e+00> : vector<32x16xf32>
    %295 = tpu.matmul %216, %283, %cst_152 {dimension_numbers = #tpu.dot_dimension_numbers<[1], [0], [0], [1], [0, 0, 1, 1], [], []>} : vector<32x32xf32>, vector<32x16xf32>, vector<32x16xf32> -> vector<32x16xf32>
    %296 = vector.broadcast %289 : vector<1x16xf32> to vector<32x16xf32>
    %297 = arith.addf %295, %296 : vector<32x16xf32>
    %cst_153 = arith.constant dense<0.000000e+00> : vector<32x16xf32>
    %298 = tpu.matmul %216, %285, %cst_153 {dimension_numbers = #tpu.dot_dimension_numbers<[1], [0], [0], [1], [0, 0, 1, 1], [], []>} : vector<32x32xf32>, vector<32x16xf32>, vector<32x16xf32> -> vector<32x16xf32>
    %299 = vector.broadcast %291 : vector<1x16xf32> to vector<32x16xf32>
    %300 = arith.addf %298, %299 : vector<32x16xf32>
    %301 = vector.extract_strided_slice %294 {offsets = [0, 0], sizes = [16, 16], strides = [1, 1]} : vector<32x16xf32> to vector<16x16xf32>
    %302 = vector.extract_strided_slice %297 {offsets = [0, 0], sizes = [16, 16], strides = [1, 1]} : vector<32x16xf32> to vector<16x16xf32>
    %303 = vector.extract_strided_slice %300 {offsets = [0, 0], sizes = [16, 16], strides = [1, 1]} : vector<32x16xf32> to vector<16x16xf32>
    %cst_154 = arith.constant dense<0.000000e+00> : vector<16x16xf32>
    %304 = tpu.matmul %301, %302, %cst_154 {dimension_numbers = #tpu.dot_dimension_numbers<[1], [1], [0], [0], [0, 0, 1, 0], [], []>} : vector<16x16xf32>, vector<16x16xf32>, vector<16x16xf32> -> vector<16x16xf32>
    %cst_155 = arith.constant 2.500000e-01 : f32
    %305 = vector.broadcast %cst_155 : f32 to vector<16x16xf32>
    %306 = arith.mulf %304, %305 : vector<16x16xf32>
    %307 = vector.broadcast %2 : vector<1x16xf32> to vector<16x16xf32>
    %308 = arith.addf %306, %307 : vector<16x16xf32>
    %cst_156 = arith.constant dense<0xFF800000> : vector<16xf32>
    %309 = vector.multi_reduction <maximumf>, %308, %cst_156 [1] : vector<16x16xf32> to vector<16xf32>
    %310 = vector.shape_cast %309 : vector<16xf32> to vector<16x1xf32>
    %311 = vector.broadcast %310 : vector<16x1xf32> to vector<16x16xf32>
    %312 = arith.subf %308, %311 : vector<16x16xf32>
    %313 = math.exp %312 : vector<16x16xf32>
    %cst_157 = arith.constant dense<0.000000e+00> : vector<16xf32>
    %314 = vector.multi_reduction <add>, %313, %cst_157 [1] : vector<16x16xf32> to vector<16xf32>
    %315 = vector.shape_cast %314 : vector<16xf32> to vector<16x1xf32>
    %316 = tpu.reciprocal %315 {approx = true} : vector<16x1xf32> -> vector<16x1xf32>
    %317 = vector.broadcast %316 : vector<16x1xf32> to vector<16x16xf32>
    %318 = arith.mulf %313, %317 : vector<16x16xf32>
    %cst_158 = arith.constant dense<0.000000e+00> : vector<16x16xf32>
    %319 = tpu.matmul %318, %303, %cst_158 {dimension_numbers = #tpu.dot_dimension_numbers<[1], [0], [0], [1], [0, 0, 1, 1], [], []>} : vector<16x16xf32>, vector<16x16xf32>, vector<16x16xf32> -> vector<16x16xf32>
    %320 = vector.extract_strided_slice %294 {offsets = [16, 0], sizes = [16, 16], strides = [1, 1]} : vector<32x16xf32> to vector<16x16xf32>
    %321 = vector.extract_strided_slice %297 {offsets = [16, 0], sizes = [16, 16], strides = [1, 1]} : vector<32x16xf32> to vector<16x16xf32>
    %322 = vector.extract_strided_slice %300 {offsets = [16, 0], sizes = [16, 16], strides = [1, 1]} : vector<32x16xf32> to vector<16x16xf32>
    %cst_159 = arith.constant dense<0.000000e+00> : vector<16x16xf32>
    %323 = tpu.matmul %320, %321, %cst_159 {dimension_numbers = #tpu.dot_dimension_numbers<[1], [1], [0], [0], [0, 0, 1, 0], [], []>} : vector<16x16xf32>, vector<16x16xf32>, vector<16x16xf32> -> vector<16x16xf32>
    %cst_160 = arith.constant 2.500000e-01 : f32
    %324 = vector.broadcast %cst_160 : f32 to vector<16x16xf32>
    %325 = arith.mulf %323, %324 : vector<16x16xf32>
    %326 = vector.broadcast %4 : vector<1x16xf32> to vector<16x16xf32>
    %327 = arith.addf %325, %326 : vector<16x16xf32>
    %cst_161 = arith.constant dense<0xFF800000> : vector<16xf32>
    %328 = vector.multi_reduction <maximumf>, %327, %cst_161 [1] : vector<16x16xf32> to vector<16xf32>
    %329 = vector.shape_cast %328 : vector<16xf32> to vector<16x1xf32>
    %330 = vector.broadcast %329 : vector<16x1xf32> to vector<16x16xf32>
    %331 = arith.subf %327, %330 : vector<16x16xf32>
    %332 = math.exp %331 : vector<16x16xf32>
    %cst_162 = arith.constant dense<0.000000e+00> : vector<16xf32>
    %333 = vector.multi_reduction <add>, %332, %cst_162 [1] : vector<16x16xf32> to vector<16xf32>
    %334 = vector.shape_cast %333 : vector<16xf32> to vector<16x1xf32>
    %335 = tpu.reciprocal %334 {approx = true} : vector<16x1xf32> -> vector<16x1xf32>
    %336 = vector.broadcast %335 : vector<16x1xf32> to vector<16x16xf32>
    %337 = arith.mulf %332, %336 : vector<16x16xf32>
    %cst_163 = arith.constant dense<0.000000e+00> : vector<16x16xf32>
    %338 = tpu.matmul %337, %322, %cst_163 {dimension_numbers = #tpu.dot_dimension_numbers<[1], [0], [0], [1], [0, 0, 1, 1], [], []>} : vector<16x16xf32>, vector<16x16xf32>, vector<16x16xf32> -> vector<16x16xf32>
    %339 = tpu.concatenate %319, %338 in 0 : vector<16x16xf32>, vector<16x16xf32> -> vector<32x16xf32>
    %c1_164 = arith.constant 1 : index
    %c208_165 = arith.constant 208 : index
    %c0_166 = arith.constant 0 : index
    %340 = vector.load %arg3[%c1_164, %c208_165, %c0_166] : memref<4x320x128xf32, #tpu.memory_space<vmem>>, vector<1x16x32xf32>
    %341 = vector.shape_cast %340 : vector<1x16x32xf32> to vector<16x32xf32>
    %cst_167 = arith.constant dense<0.000000e+00> : vector<32x32xf32>
    %342 = tpu.matmul %339, %341, %cst_167 {dimension_numbers = #tpu.dot_dimension_numbers<[1], [0], [0], [1], [0, 0, 1, 1], [], []>} : vector<32x16xf32>, vector<16x32xf32>, vector<32x32xf32> -> vector<32x32xf32>
    %343 = arith.addf %279, %342 : vector<32x32xf32>
    %c1_168 = arith.constant 1 : index
    %c6_169 = arith.constant 6 : index
    %c0_170 = arith.constant 0 : index
    %344 = vector.load %arg4[%c1_168, %c6_169, %c0_170] : memref<4x16x128xf32, #tpu.memory_space<vmem>>, vector<1x1x32xf32>
    %345 = vector.shape_cast %344 : vector<1x1x32xf32> to vector<1x32xf32>
    %c1_171 = arith.constant 1 : index
    %c9_172 = arith.constant 9 : index
    %c0_173 = arith.constant 0 : index
    %346 = vector.load %arg4[%c1_171, %c9_172, %c0_173] : memref<4x16x128xf32, #tpu.memory_space<vmem>>, vector<1x1x32xf32>
    %347 = vector.shape_cast %346 : vector<1x1x32xf32> to vector<1x32xf32>
    %c1_174 = arith.constant 1 : index
    %c10_175 = arith.constant 10 : index
    %c0_176 = arith.constant 0 : index
    %348 = vector.load %arg4[%c1_174, %c10_175, %c0_176] : memref<4x16x128xf32, #tpu.memory_space<vmem>>, vector<1x1x32xf32>
    %349 = vector.shape_cast %348 : vector<1x1x32xf32> to vector<1x32xf32>
    %350 = vector.broadcast %345 : vector<1x32xf32> to vector<32x32xf32>
    %351 = arith.addf %343, %350 : vector<32x32xf32>
    %352 = arith.addf %351, %216 : vector<32x32xf32>
    %cst_177 = arith.constant dense<0.000000e+00> : vector<32xf32>
    %353 = vector.multi_reduction <add>, %352, %cst_177 [1] : vector<32x32xf32> to vector<32xf32>
    %354 = vector.shape_cast %353 : vector<32xf32> to vector<32x1xf32>
    %cst_178 = arith.constant 3.200000e+01 : f32
    %355 = vector.broadcast %cst_178 : f32 to vector<32x1xf32>
    %356 = arith.divf %354, %355 : vector<32x1xf32>
    %357 = arith.mulf %352, %352 : vector<32x32xf32>
    %cst_179 = arith.constant dense<0.000000e+00> : vector<32xf32>
    %358 = vector.multi_reduction <add>, %357, %cst_179 [1] : vector<32x32xf32> to vector<32xf32>
    %359 = vector.shape_cast %358 : vector<32xf32> to vector<32x1xf32>
    %cst_180 = arith.constant 3.200000e+01 : f32
    %360 = vector.broadcast %cst_180 : f32 to vector<32x1xf32>
    %361 = arith.divf %359, %360 : vector<32x1xf32>
    %362 = arith.mulf %356, %356 : vector<32x1xf32>
    %363 = arith.subf %361, %362 : vector<32x1xf32>
    %364 = vector.broadcast %356 : vector<32x1xf32> to vector<32x32xf32>
    %365 = arith.subf %352, %364 : vector<32x32xf32>
    %cst_181 = arith.constant 9.99999996E-13 : f32
    %366 = vector.broadcast %cst_181 : f32 to vector<32x1xf32>
    %367 = arith.addf %363, %366 : vector<32x1xf32>
    %368 = math.rsqrt %367 : vector<32x1xf32>
    %369 = vector.broadcast %368 : vector<32x1xf32> to vector<32x32xf32>
    %370 = arith.mulf %365, %369 : vector<32x32xf32>
    %371 = vector.broadcast %347 : vector<1x32xf32> to vector<32x32xf32>
    %372 = arith.mulf %370, %371 : vector<32x32xf32>
    %373 = vector.broadcast %349 : vector<1x32xf32> to vector<32x32xf32>
    %374 = arith.addf %372, %373 : vector<32x32xf32>
    %c1_182 = arith.constant 1 : index
    %c224_183 = arith.constant 224 : index
    %c0_184 = arith.constant 0 : index
    %375 = vector.load %arg3[%c1_182, %c224_183, %c0_184] : memref<4x320x128xf32, #tpu.memory_space<vmem>>, vector<1x32x64xf32>
    %376 = vector.shape_cast %375 : vector<1x32x64xf32> to vector<32x64xf32>
    %c1_185 = arith.constant 1 : index
    %c7_186 = arith.constant 7 : index
    %c0_187 = arith.constant 0 : index
    %377 = vector.load %arg4[%c1_185, %c7_186, %c0_187] : memref<4x16x128xf32, #tpu.memory_space<vmem>>, vector<1x1x64xf32>
    %378 = vector.shape_cast %377 : vector<1x1x64xf32> to vector<1x64xf32>
    %c1_188 = arith.constant 1 : index
    %c256_189 = arith.constant 256 : index
    %c0_190 = arith.constant 0 : index
    %379 = vector.load %arg3[%c1_188, %c256_189, %c0_190] : memref<4x320x128xf32, #tpu.memory_space<vmem>>, vector<1x64x32xf32>
    %380 = vector.shape_cast %379 : vector<1x64x32xf32> to vector<64x32xf32>
    %c1_191 = arith.constant 1 : index
    %c8_192 = arith.constant 8 : index
    %c0_193 = arith.constant 0 : index
    %381 = vector.load %arg4[%c1_191, %c8_192, %c0_193] : memref<4x16x128xf32, #tpu.memory_space<vmem>>, vector<1x1x32xf32>
    %382 = vector.shape_cast %381 : vector<1x1x32xf32> to vector<1x32xf32>
    %c1_194 = arith.constant 1 : index
    %c11_195 = arith.constant 11 : index
    %c0_196 = arith.constant 0 : index
    %383 = vector.load %arg4[%c1_194, %c11_195, %c0_196] : memref<4x16x128xf32, #tpu.memory_space<vmem>>, vector<1x1x32xf32>
    %384 = vector.shape_cast %383 : vector<1x1x32xf32> to vector<1x32xf32>
    %c1_197 = arith.constant 1 : index
    %c12_198 = arith.constant 12 : index
    %c0_199 = arith.constant 0 : index
    %385 = vector.load %arg4[%c1_197, %c12_198, %c0_199] : memref<4x16x128xf32, #tpu.memory_space<vmem>>, vector<1x1x32xf32>
    %386 = vector.shape_cast %385 : vector<1x1x32xf32> to vector<1x32xf32>
    %cst_200 = arith.constant dense<0.000000e+00> : vector<32x64xf32>
    %387 = tpu.matmul %374, %376, %cst_200 {dimension_numbers = #tpu.dot_dimension_numbers<[1], [0], [0], [1], [0, 0, 1, 1], [], []>} : vector<32x32xf32>, vector<32x64xf32>, vector<32x64xf32> -> vector<32x64xf32>
    %388 = vector.broadcast %378 : vector<1x64xf32> to vector<32x64xf32>
    %389 = arith.addf %387, %388 : vector<32x64xf32>
    %cst_201 = arith.constant 5.000000e-01 : f32
    %390 = vector.broadcast %cst_201 : f32 to vector<32x64xf32>
    %391 = arith.mulf %390, %389 : vector<32x64xf32>
    %cst_202 = arith.constant 4.471500e-02 : f32
    %392 = vector.broadcast %cst_202 : f32 to vector<32x64xf32>
    %393 = arith.mulf %392, %389 : vector<32x64xf32>
    %394 = arith.mulf %393, %389 : vector<32x64xf32>
    %395 = arith.mulf %394, %389 : vector<32x64xf32>
    %396 = arith.addf %389, %395 : vector<32x64xf32>
    %cst_203 = arith.constant 0.797884583 : f32
    %397 = vector.broadcast %cst_203 : f32 to vector<32x64xf32>
    %398 = arith.mulf %397, %396 : vector<32x64xf32>
    %399 = math.tanh %398 : vector<32x64xf32>
    %cst_204 = arith.constant 1.000000e+00 : f32
    %400 = vector.broadcast %cst_204 : f32 to vector<32x64xf32>
    %401 = arith.addf %400, %399 : vector<32x64xf32>
    %402 = arith.mulf %391, %401 : vector<32x64xf32>
    %cst_205 = arith.constant dense<0.000000e+00> : vector<32x32xf32>
    %403 = tpu.matmul %402, %380, %cst_205 {dimension_numbers = #tpu.dot_dimension_numbers<[1], [0], [0], [1], [0, 0, 1, 1], [], []>} : vector<32x64xf32>, vector<64x32xf32>, vector<32x32xf32> -> vector<32x32xf32>
    %404 = vector.broadcast %382 : vector<1x32xf32> to vector<32x32xf32>
    %405 = arith.addf %403, %404 : vector<32x32xf32>
    %406 = arith.addf %405, %374 : vector<32x32xf32>
    %cst_206 = arith.constant dense<0.000000e+00> : vector<32xf32>
    %407 = vector.multi_reduction <add>, %406, %cst_206 [1] : vector<32x32xf32> to vector<32xf32>
    %408 = vector.shape_cast %407 : vector<32xf32> to vector<32x1xf32>
    %cst_207 = arith.constant 3.200000e+01 : f32
    %409 = vector.broadcast %cst_207 : f32 to vector<32x1xf32>
    %410 = arith.divf %408, %409 : vector<32x1xf32>
    %411 = arith.mulf %406, %406 : vector<32x32xf32>
    %cst_208 = arith.constant dense<0.000000e+00> : vector<32xf32>
    %412 = vector.multi_reduction <add>, %411, %cst_208 [1] : vector<32x32xf32> to vector<32xf32>
    %413 = vector.shape_cast %412 : vector<32xf32> to vector<32x1xf32>
    %cst_209 = arith.constant 3.200000e+01 : f32
    %414 = vector.broadcast %cst_209 : f32 to vector<32x1xf32>
    %415 = arith.divf %413, %414 : vector<32x1xf32>
    %416 = arith.mulf %410, %410 : vector<32x1xf32>
    %417 = arith.subf %415, %416 : vector<32x1xf32>
    %418 = vector.broadcast %410 : vector<32x1xf32> to vector<32x32xf32>
    %419 = arith.subf %406, %418 : vector<32x32xf32>
    %cst_210 = arith.constant 9.99999996E-13 : f32
    %420 = vector.broadcast %cst_210 : f32 to vector<32x1xf32>
    %421 = arith.addf %417, %420 : vector<32x1xf32>
    %422 = math.rsqrt %421 : vector<32x1xf32>
    %423 = vector.broadcast %422 : vector<32x1xf32> to vector<32x32xf32>
    %424 = arith.mulf %419, %423 : vector<32x32xf32>
    %425 = vector.broadcast %384 : vector<1x32xf32> to vector<32x32xf32>
    %426 = arith.mulf %424, %425 : vector<32x32xf32>
    %427 = vector.broadcast %386 : vector<1x32xf32> to vector<32x32xf32>
    %428 = arith.addf %426, %427 : vector<32x32xf32>
    %c2_211 = arith.constant 2 : index
    %c0_212 = arith.constant 0 : index
    %c0_213 = arith.constant 0 : index
    %429 = vector.load %arg3[%c2_211, %c0_212, %c0_213] : memref<4x320x128xf32, #tpu.memory_space<vmem>>, vector<1x32x16xf32>
    %430 = vector.shape_cast %429 : vector<1x32x16xf32> to vector<32x16xf32>
    %c2_214 = arith.constant 2 : index
    %c32_215 = arith.constant 32 : index
    %c0_216 = arith.constant 0 : index
    %431 = vector.load %arg3[%c2_214, %c32_215, %c0_216] : memref<4x320x128xf32, #tpu.memory_space<vmem>>, vector<1x32x16xf32>
    %432 = vector.shape_cast %431 : vector<1x32x16xf32> to vector<32x16xf32>
    %c2_217 = arith.constant 2 : index
    %c64_218 = arith.constant 64 : index
    %c0_219 = arith.constant 0 : index
    %433 = vector.load %arg3[%c2_217, %c64_218, %c0_219] : memref<4x320x128xf32, #tpu.memory_space<vmem>>, vector<1x32x16xf32>
    %434 = vector.shape_cast %433 : vector<1x32x16xf32> to vector<32x16xf32>
    %c2_220 = arith.constant 2 : index
    %c0_221 = arith.constant 0 : index
    %c0_222 = arith.constant 0 : index
    %435 = vector.load %arg4[%c2_220, %c0_221, %c0_222] : memref<4x16x128xf32, #tpu.memory_space<vmem>>, vector<1x1x16xf32>
    %436 = vector.shape_cast %435 : vector<1x1x16xf32> to vector<1x16xf32>
    %c2_223 = arith.constant 2 : index
    %c1_224 = arith.constant 1 : index
    %c0_225 = arith.constant 0 : index
    %437 = vector.load %arg4[%c2_223, %c1_224, %c0_225] : memref<4x16x128xf32, #tpu.memory_space<vmem>>, vector<1x1x16xf32>
    %438 = vector.shape_cast %437 : vector<1x1x16xf32> to vector<1x16xf32>
    %c2_226 = arith.constant 2 : index
    %c2_227 = arith.constant 2 : index
    %c0_228 = arith.constant 0 : index
    %439 = vector.load %arg4[%c2_226, %c2_227, %c0_228] : memref<4x16x128xf32, #tpu.memory_space<vmem>>, vector<1x1x16xf32>
    %440 = vector.shape_cast %439 : vector<1x1x16xf32> to vector<1x16xf32>
    %cst_229 = arith.constant dense<0.000000e+00> : vector<32x16xf32>
    %441 = tpu.matmul %428, %430, %cst_229 {dimension_numbers = #tpu.dot_dimension_numbers<[1], [0], [0], [1], [0, 0, 1, 1], [], []>} : vector<32x32xf32>, vector<32x16xf32>, vector<32x16xf32> -> vector<32x16xf32>
    %442 = vector.broadcast %436 : vector<1x16xf32> to vector<32x16xf32>
    %443 = arith.addf %441, %442 : vector<32x16xf32>
    %cst_230 = arith.constant dense<0.000000e+00> : vector<32x16xf32>
    %444 = tpu.matmul %428, %432, %cst_230 {dimension_numbers = #tpu.dot_dimension_numbers<[1], [0], [0], [1], [0, 0, 1, 1], [], []>} : vector<32x32xf32>, vector<32x16xf32>, vector<32x16xf32> -> vector<32x16xf32>
    %445 = vector.broadcast %438 : vector<1x16xf32> to vector<32x16xf32>
    %446 = arith.addf %444, %445 : vector<32x16xf32>
    %cst_231 = arith.constant dense<0.000000e+00> : vector<32x16xf32>
    %447 = tpu.matmul %428, %434, %cst_231 {dimension_numbers = #tpu.dot_dimension_numbers<[1], [0], [0], [1], [0, 0, 1, 1], [], []>} : vector<32x32xf32>, vector<32x16xf32>, vector<32x16xf32> -> vector<32x16xf32>
    %448 = vector.broadcast %440 : vector<1x16xf32> to vector<32x16xf32>
    %449 = arith.addf %447, %448 : vector<32x16xf32>
    %450 = vector.extract_strided_slice %443 {offsets = [0, 0], sizes = [16, 16], strides = [1, 1]} : vector<32x16xf32> to vector<16x16xf32>
    %451 = vector.extract_strided_slice %446 {offsets = [0, 0], sizes = [16, 16], strides = [1, 1]} : vector<32x16xf32> to vector<16x16xf32>
    %452 = vector.extract_strided_slice %449 {offsets = [0, 0], sizes = [16, 16], strides = [1, 1]} : vector<32x16xf32> to vector<16x16xf32>
    %cst_232 = arith.constant dense<0.000000e+00> : vector<16x16xf32>
    %453 = tpu.matmul %450, %451, %cst_232 {dimension_numbers = #tpu.dot_dimension_numbers<[1], [1], [0], [0], [0, 0, 1, 0], [], []>} : vector<16x16xf32>, vector<16x16xf32>, vector<16x16xf32> -> vector<16x16xf32>
    %cst_233 = arith.constant 2.500000e-01 : f32
    %454 = vector.broadcast %cst_233 : f32 to vector<16x16xf32>
    %455 = arith.mulf %453, %454 : vector<16x16xf32>
    %456 = vector.broadcast %2 : vector<1x16xf32> to vector<16x16xf32>
    %457 = arith.addf %455, %456 : vector<16x16xf32>
    %cst_234 = arith.constant dense<0xFF800000> : vector<16xf32>
    %458 = vector.multi_reduction <maximumf>, %457, %cst_234 [1] : vector<16x16xf32> to vector<16xf32>
    %459 = vector.shape_cast %458 : vector<16xf32> to vector<16x1xf32>
    %460 = vector.broadcast %459 : vector<16x1xf32> to vector<16x16xf32>
    %461 = arith.subf %457, %460 : vector<16x16xf32>
    %462 = math.exp %461 : vector<16x16xf32>
    %cst_235 = arith.constant dense<0.000000e+00> : vector<16xf32>
    %463 = vector.multi_reduction <add>, %462, %cst_235 [1] : vector<16x16xf32> to vector<16xf32>
    %464 = vector.shape_cast %463 : vector<16xf32> to vector<16x1xf32>
    %465 = tpu.reciprocal %464 {approx = true} : vector<16x1xf32> -> vector<16x1xf32>
    %466 = vector.broadcast %465 : vector<16x1xf32> to vector<16x16xf32>
    %467 = arith.mulf %462, %466 : vector<16x16xf32>
    %cst_236 = arith.constant dense<0.000000e+00> : vector<16x16xf32>
    %468 = tpu.matmul %467, %452, %cst_236 {dimension_numbers = #tpu.dot_dimension_numbers<[1], [0], [0], [1], [0, 0, 1, 1], [], []>} : vector<16x16xf32>, vector<16x16xf32>, vector<16x16xf32> -> vector<16x16xf32>
    %469 = vector.extract_strided_slice %443 {offsets = [16, 0], sizes = [16, 16], strides = [1, 1]} : vector<32x16xf32> to vector<16x16xf32>
    %470 = vector.extract_strided_slice %446 {offsets = [16, 0], sizes = [16, 16], strides = [1, 1]} : vector<32x16xf32> to vector<16x16xf32>
    %471 = vector.extract_strided_slice %449 {offsets = [16, 0], sizes = [16, 16], strides = [1, 1]} : vector<32x16xf32> to vector<16x16xf32>
    %cst_237 = arith.constant dense<0.000000e+00> : vector<16x16xf32>
    %472 = tpu.matmul %469, %470, %cst_237 {dimension_numbers = #tpu.dot_dimension_numbers<[1], [1], [0], [0], [0, 0, 1, 0], [], []>} : vector<16x16xf32>, vector<16x16xf32>, vector<16x16xf32> -> vector<16x16xf32>
    %cst_238 = arith.constant 2.500000e-01 : f32
    %473 = vector.broadcast %cst_238 : f32 to vector<16x16xf32>
    %474 = arith.mulf %472, %473 : vector<16x16xf32>
    %475 = vector.broadcast %4 : vector<1x16xf32> to vector<16x16xf32>
    %476 = arith.addf %474, %475 : vector<16x16xf32>
    %cst_239 = arith.constant dense<0xFF800000> : vector<16xf32>
    %477 = vector.multi_reduction <maximumf>, %476, %cst_239 [1] : vector<16x16xf32> to vector<16xf32>
    %478 = vector.shape_cast %477 : vector<16xf32> to vector<16x1xf32>
    %479 = vector.broadcast %478 : vector<16x1xf32> to vector<16x16xf32>
    %480 = arith.subf %476, %479 : vector<16x16xf32>
    %481 = math.exp %480 : vector<16x16xf32>
    %cst_240 = arith.constant dense<0.000000e+00> : vector<16xf32>
    %482 = vector.multi_reduction <add>, %481, %cst_240 [1] : vector<16x16xf32> to vector<16xf32>
    %483 = vector.shape_cast %482 : vector<16xf32> to vector<16x1xf32>
    %484 = tpu.reciprocal %483 {approx = true} : vector<16x1xf32> -> vector<16x1xf32>
    %485 = vector.broadcast %484 : vector<16x1xf32> to vector<16x16xf32>
    %486 = arith.mulf %481, %485 : vector<16x16xf32>
    %cst_241 = arith.constant dense<0.000000e+00> : vector<16x16xf32>
    %487 = tpu.matmul %486, %471, %cst_241 {dimension_numbers = #tpu.dot_dimension_numbers<[1], [0], [0], [1], [0, 0, 1, 1], [], []>} : vector<16x16xf32>, vector<16x16xf32>, vector<16x16xf32> -> vector<16x16xf32>
    %488 = tpu.concatenate %468, %487 in 0 : vector<16x16xf32>, vector<16x16xf32> -> vector<32x16xf32>
    %c2_242 = arith.constant 2 : index
    %c192_243 = arith.constant 192 : index
    %c0_244 = arith.constant 0 : index
    %489 = vector.load %arg3[%c2_242, %c192_243, %c0_244] : memref<4x320x128xf32, #tpu.memory_space<vmem>>, vector<1x16x32xf32>
    %490 = vector.shape_cast %489 : vector<1x16x32xf32> to vector<16x32xf32>
    %cst_245 = arith.constant dense<0.000000e+00> : vector<32x32xf32>
    %491 = tpu.matmul %488, %490, %cst_245 {dimension_numbers = #tpu.dot_dimension_numbers<[1], [0], [0], [1], [0, 0, 1, 1], [], []>} : vector<32x16xf32>, vector<16x32xf32>, vector<32x32xf32> -> vector<32x32xf32>
    %c2_246 = arith.constant 2 : index
    %c96_247 = arith.constant 96 : index
    %c0_248 = arith.constant 0 : index
    %492 = vector.load %arg3[%c2_246, %c96_247, %c0_248] : memref<4x320x128xf32, #tpu.memory_space<vmem>>, vector<1x32x16xf32>
    %493 = vector.shape_cast %492 : vector<1x32x16xf32> to vector<32x16xf32>
    %c2_249 = arith.constant 2 : index
    %c128_250 = arith.constant 128 : index
    %c0_251 = arith.constant 0 : index
    %494 = vector.load %arg3[%c2_249, %c128_250, %c0_251] : memref<4x320x128xf32, #tpu.memory_space<vmem>>, vector<1x32x16xf32>
    %495 = vector.shape_cast %494 : vector<1x32x16xf32> to vector<32x16xf32>
    %c2_252 = arith.constant 2 : index
    %c160_253 = arith.constant 160 : index
    %c0_254 = arith.constant 0 : index
    %496 = vector.load %arg3[%c2_252, %c160_253, %c0_254] : memref<4x320x128xf32, #tpu.memory_space<vmem>>, vector<1x32x16xf32>
    %497 = vector.shape_cast %496 : vector<1x32x16xf32> to vector<32x16xf32>
    %c2_255 = arith.constant 2 : index
    %c3_256 = arith.constant 3 : index
    %c0_257 = arith.constant 0 : index
    %498 = vector.load %arg4[%c2_255, %c3_256, %c0_257] : memref<4x16x128xf32, #tpu.memory_space<vmem>>, vector<1x1x16xf32>
    %499 = vector.shape_cast %498 : vector<1x1x16xf32> to vector<1x16xf32>
    %c2_258 = arith.constant 2 : index
    %c4_259 = arith.constant 4 : index
    %c0_260 = arith.constant 0 : index
    %500 = vector.load %arg4[%c2_258, %c4_259, %c0_260] : memref<4x16x128xf32, #tpu.memory_space<vmem>>, vector<1x1x16xf32>
    %501 = vector.shape_cast %500 : vector<1x1x16xf32> to vector<1x16xf32>
    %c2_261 = arith.constant 2 : index
    %c5_262 = arith.constant 5 : index
    %c0_263 = arith.constant 0 : index
    %502 = vector.load %arg4[%c2_261, %c5_262, %c0_263] : memref<4x16x128xf32, #tpu.memory_space<vmem>>, vector<1x1x16xf32>
    %503 = vector.shape_cast %502 : vector<1x1x16xf32> to vector<1x16xf32>
    %cst_264 = arith.constant dense<0.000000e+00> : vector<32x16xf32>
    %504 = tpu.matmul %428, %493, %cst_264 {dimension_numbers = #tpu.dot_dimension_numbers<[1], [0], [0], [1], [0, 0, 1, 1], [], []>} : vector<32x32xf32>, vector<32x16xf32>, vector<32x16xf32> -> vector<32x16xf32>
    %505 = vector.broadcast %499 : vector<1x16xf32> to vector<32x16xf32>
    %506 = arith.addf %504, %505 : vector<32x16xf32>
    %cst_265 = arith.constant dense<0.000000e+00> : vector<32x16xf32>
    %507 = tpu.matmul %428, %495, %cst_265 {dimension_numbers = #tpu.dot_dimension_numbers<[1], [0], [0], [1], [0, 0, 1, 1], [], []>} : vector<32x32xf32>, vector<32x16xf32>, vector<32x16xf32> -> vector<32x16xf32>
    %508 = vector.broadcast %501 : vector<1x16xf32> to vector<32x16xf32>
    %509 = arith.addf %507, %508 : vector<32x16xf32>
    %cst_266 = arith.constant dense<0.000000e+00> : vector<32x16xf32>
    %510 = tpu.matmul %428, %497, %cst_266 {dimension_numbers = #tpu.dot_dimension_numbers<[1], [0], [0], [1], [0, 0, 1, 1], [], []>} : vector<32x32xf32>, vector<32x16xf32>, vector<32x16xf32> -> vector<32x16xf32>
    %511 = vector.broadcast %503 : vector<1x16xf32> to vector<32x16xf32>
    %512 = arith.addf %510, %511 : vector<32x16xf32>
    %513 = vector.extract_strided_slice %506 {offsets = [0, 0], sizes = [16, 16], strides = [1, 1]} : vector<32x16xf32> to vector<16x16xf32>
    %514 = vector.extract_strided_slice %509 {offsets = [0, 0], sizes = [16, 16], strides = [1, 1]} : vector<32x16xf32> to vector<16x16xf32>
    %515 = vector.extract_strided_slice %512 {offsets = [0, 0], sizes = [16, 16], strides = [1, 1]} : vector<32x16xf32> to vector<16x16xf32>
    %cst_267 = arith.constant dense<0.000000e+00> : vector<16x16xf32>
    %516 = tpu.matmul %513, %514, %cst_267 {dimension_numbers = #tpu.dot_dimension_numbers<[1], [1], [0], [0], [0, 0, 1, 0], [], []>} : vector<16x16xf32>, vector<16x16xf32>, vector<16x16xf32> -> vector<16x16xf32>
    %cst_268 = arith.constant 2.500000e-01 : f32
    %517 = vector.broadcast %cst_268 : f32 to vector<16x16xf32>
    %518 = arith.mulf %516, %517 : vector<16x16xf32>
    %519 = vector.broadcast %2 : vector<1x16xf32> to vector<16x16xf32>
    %520 = arith.addf %518, %519 : vector<16x16xf32>
    %cst_269 = arith.constant dense<0xFF800000> : vector<16xf32>
    %521 = vector.multi_reduction <maximumf>, %520, %cst_269 [1] : vector<16x16xf32> to vector<16xf32>
    %522 = vector.shape_cast %521 : vector<16xf32> to vector<16x1xf32>
    %523 = vector.broadcast %522 : vector<16x1xf32> to vector<16x16xf32>
    %524 = arith.subf %520, %523 : vector<16x16xf32>
    %525 = math.exp %524 : vector<16x16xf32>
    %cst_270 = arith.constant dense<0.000000e+00> : vector<16xf32>
    %526 = vector.multi_reduction <add>, %525, %cst_270 [1] : vector<16x16xf32> to vector<16xf32>
    %527 = vector.shape_cast %526 : vector<16xf32> to vector<16x1xf32>
    %528 = tpu.reciprocal %527 {approx = true} : vector<16x1xf32> -> vector<16x1xf32>
    %529 = vector.broadcast %528 : vector<16x1xf32> to vector<16x16xf32>
    %530 = arith.mulf %525, %529 : vector<16x16xf32>
    %cst_271 = arith.constant dense<0.000000e+00> : vector<16x16xf32>
    %531 = tpu.matmul %530, %515, %cst_271 {dimension_numbers = #tpu.dot_dimension_numbers<[1], [0], [0], [1], [0, 0, 1, 1], [], []>} : vector<16x16xf32>, vector<16x16xf32>, vector<16x16xf32> -> vector<16x16xf32>
    %532 = vector.extract_strided_slice %506 {offsets = [16, 0], sizes = [16, 16], strides = [1, 1]} : vector<32x16xf32> to vector<16x16xf32>
    %533 = vector.extract_strided_slice %509 {offsets = [16, 0], sizes = [16, 16], strides = [1, 1]} : vector<32x16xf32> to vector<16x16xf32>
    %534 = vector.extract_strided_slice %512 {offsets = [16, 0], sizes = [16, 16], strides = [1, 1]} : vector<32x16xf32> to vector<16x16xf32>
    %cst_272 = arith.constant dense<0.000000e+00> : vector<16x16xf32>
    %535 = tpu.matmul %532, %533, %cst_272 {dimension_numbers = #tpu.dot_dimension_numbers<[1], [1], [0], [0], [0, 0, 1, 0], [], []>} : vector<16x16xf32>, vector<16x16xf32>, vector<16x16xf32> -> vector<16x16xf32>
    %cst_273 = arith.constant 2.500000e-01 : f32
    %536 = vector.broadcast %cst_273 : f32 to vector<16x16xf32>
    %537 = arith.mulf %535, %536 : vector<16x16xf32>
    %538 = vector.broadcast %4 : vector<1x16xf32> to vector<16x16xf32>
    %539 = arith.addf %537, %538 : vector<16x16xf32>
    %cst_274 = arith.constant dense<0xFF800000> : vector<16xf32>
    %540 = vector.multi_reduction <maximumf>, %539, %cst_274 [1] : vector<16x16xf32> to vector<16xf32>
    %541 = vector.shape_cast %540 : vector<16xf32> to vector<16x1xf32>
    %542 = vector.broadcast %541 : vector<16x1xf32> to vector<16x16xf32>
    %543 = arith.subf %539, %542 : vector<16x16xf32>
    %544 = math.exp %543 : vector<16x16xf32>
    %cst_275 = arith.constant dense<0.000000e+00> : vector<16xf32>
    %545 = vector.multi_reduction <add>, %544, %cst_275 [1] : vector<16x16xf32> to vector<16xf32>
    %546 = vector.shape_cast %545 : vector<16xf32> to vector<16x1xf32>
    %547 = tpu.reciprocal %546 {approx = true} : vector<16x1xf32> -> vector<16x1xf32>
    %548 = vector.broadcast %547 : vector<16x1xf32> to vector<16x16xf32>
    %549 = arith.mulf %544, %548 : vector<16x16xf32>
    %cst_276 = arith.constant dense<0.000000e+00> : vector<16x16xf32>
    %550 = tpu.matmul %549, %534, %cst_276 {dimension_numbers = #tpu.dot_dimension_numbers<[1], [0], [0], [1], [0, 0, 1, 1], [], []>} : vector<16x16xf32>, vector<16x16xf32>, vector<16x16xf32> -> vector<16x16xf32>
    %551 = tpu.concatenate %531, %550 in 0 : vector<16x16xf32>, vector<16x16xf32> -> vector<32x16xf32>
    %c2_277 = arith.constant 2 : index
    %c208_278 = arith.constant 208 : index
    %c0_279 = arith.constant 0 : index
    %552 = vector.load %arg3[%c2_277, %c208_278, %c0_279] : memref<4x320x128xf32, #tpu.memory_space<vmem>>, vector<1x16x32xf32>
    %553 = vector.shape_cast %552 : vector<1x16x32xf32> to vector<16x32xf32>
    %cst_280 = arith.constant dense<0.000000e+00> : vector<32x32xf32>
    %554 = tpu.matmul %551, %553, %cst_280 {dimension_numbers = #tpu.dot_dimension_numbers<[1], [0], [0], [1], [0, 0, 1, 1], [], []>} : vector<32x16xf32>, vector<16x32xf32>, vector<32x32xf32> -> vector<32x32xf32>
    %555 = arith.addf %491, %554 : vector<32x32xf32>
    %c2_281 = arith.constant 2 : index
    %c6_282 = arith.constant 6 : index
    %c0_283 = arith.constant 0 : index
    %556 = vector.load %arg4[%c2_281, %c6_282, %c0_283] : memref<4x16x128xf32, #tpu.memory_space<vmem>>, vector<1x1x32xf32>
    %557 = vector.shape_cast %556 : vector<1x1x32xf32> to vector<1x32xf32>
    %c2_284 = arith.constant 2 : index
    %c9_285 = arith.constant 9 : index
    %c0_286 = arith.constant 0 : index
    %558 = vector.load %arg4[%c2_284, %c9_285, %c0_286] : memref<4x16x128xf32, #tpu.memory_space<vmem>>, vector<1x1x32xf32>
    %559 = vector.shape_cast %558 : vector<1x1x32xf32> to vector<1x32xf32>
    %c2_287 = arith.constant 2 : index
    %c10_288 = arith.constant 10 : index
    %c0_289 = arith.constant 0 : index
    %560 = vector.load %arg4[%c2_287, %c10_288, %c0_289] : memref<4x16x128xf32, #tpu.memory_space<vmem>>, vector<1x1x32xf32>
    %561 = vector.shape_cast %560 : vector<1x1x32xf32> to vector<1x32xf32>
    %562 = vector.broadcast %557 : vector<1x32xf32> to vector<32x32xf32>
    %563 = arith.addf %555, %562 : vector<32x32xf32>
    %564 = arith.addf %563, %428 : vector<32x32xf32>
    %cst_290 = arith.constant dense<0.000000e+00> : vector<32xf32>
    %565 = vector.multi_reduction <add>, %564, %cst_290 [1] : vector<32x32xf32> to vector<32xf32>
    %566 = vector.shape_cast %565 : vector<32xf32> to vector<32x1xf32>
    %cst_291 = arith.constant 3.200000e+01 : f32
    %567 = vector.broadcast %cst_291 : f32 to vector<32x1xf32>
    %568 = arith.divf %566, %567 : vector<32x1xf32>
    %569 = arith.mulf %564, %564 : vector<32x32xf32>
    %cst_292 = arith.constant dense<0.000000e+00> : vector<32xf32>
    %570 = vector.multi_reduction <add>, %569, %cst_292 [1] : vector<32x32xf32> to vector<32xf32>
    %571 = vector.shape_cast %570 : vector<32xf32> to vector<32x1xf32>
    %cst_293 = arith.constant 3.200000e+01 : f32
    %572 = vector.broadcast %cst_293 : f32 to vector<32x1xf32>
    %573 = arith.divf %571, %572 : vector<32x1xf32>
    %574 = arith.mulf %568, %568 : vector<32x1xf32>
    %575 = arith.subf %573, %574 : vector<32x1xf32>
    %576 = vector.broadcast %568 : vector<32x1xf32> to vector<32x32xf32>
    %577 = arith.subf %564, %576 : vector<32x32xf32>
    %cst_294 = arith.constant 9.99999996E-13 : f32
    %578 = vector.broadcast %cst_294 : f32 to vector<32x1xf32>
    %579 = arith.addf %575, %578 : vector<32x1xf32>
    %580 = math.rsqrt %579 : vector<32x1xf32>
    %581 = vector.broadcast %580 : vector<32x1xf32> to vector<32x32xf32>
    %582 = arith.mulf %577, %581 : vector<32x32xf32>
    %583 = vector.broadcast %559 : vector<1x32xf32> to vector<32x32xf32>
    %584 = arith.mulf %582, %583 : vector<32x32xf32>
    %585 = vector.broadcast %561 : vector<1x32xf32> to vector<32x32xf32>
    %586 = arith.addf %584, %585 : vector<32x32xf32>
    %c2_295 = arith.constant 2 : index
    %c224_296 = arith.constant 224 : index
    %c0_297 = arith.constant 0 : index
    %587 = vector.load %arg3[%c2_295, %c224_296, %c0_297] : memref<4x320x128xf32, #tpu.memory_space<vmem>>, vector<1x32x64xf32>
    %588 = vector.shape_cast %587 : vector<1x32x64xf32> to vector<32x64xf32>
    %c2_298 = arith.constant 2 : index
    %c7_299 = arith.constant 7 : index
    %c0_300 = arith.constant 0 : index
    %589 = vector.load %arg4[%c2_298, %c7_299, %c0_300] : memref<4x16x128xf32, #tpu.memory_space<vmem>>, vector<1x1x64xf32>
    %590 = vector.shape_cast %589 : vector<1x1x64xf32> to vector<1x64xf32>
    %cst_301 = arith.constant dense<0.000000e+00> : vector<32x64xf32>
    %591 = tpu.matmul %586, %588, %cst_301 {dimension_numbers = #tpu.dot_dimension_numbers<[1], [0], [0], [1], [0, 0, 1, 1], [], []>} : vector<32x32xf32>, vector<32x64xf32>, vector<32x64xf32> -> vector<32x64xf32>
    %592 = vector.broadcast %590 : vector<1x64xf32> to vector<32x64xf32>
    %593 = arith.addf %591, %592 : vector<32x64xf32>
    %594 = math.roundeven %593 : vector<32x64xf32>
    %cst_302 = arith.constant -1.280000e+02 : f32
    %cst_303 = arith.constant 1.270000e+02 : f32
    %595 = vector.broadcast %cst_302 : f32 to vector<32x64xf32>
    %596 = arith.maximumf %595, %594 : vector<32x64xf32>
    %597 = vector.broadcast %cst_303 : f32 to vector<32x64xf32>
    %598 = arith.minimumf %597, %596 : vector<32x64xf32>
    %599 = math.roundeven %586 : vector<32x32xf32>
    %cst_304 = arith.constant -1.280000e+02 : f32
    %cst_305 = arith.constant 1.270000e+02 : f32
    %600 = vector.broadcast %cst_304 : f32 to vector<32x32xf32>
    %601 = arith.maximumf %600, %599 : vector<32x32xf32>
    %602 = vector.broadcast %cst_305 : f32 to vector<32x32xf32>
    %603 = arith.minimumf %602, %601 : vector<32x32xf32>
    %c2_306 = arith.constant 2 : index
    %c256_307 = arith.constant 256 : index
    %c0_308 = arith.constant 0 : index
    %604 = vector.load %arg3[%c2_306, %c256_307, %c0_308] : memref<4x320x128xf32, #tpu.memory_space<vmem>>, vector<1x64x32xf32>
    %605 = vector.shape_cast %604 : vector<1x64x32xf32> to vector<64x32xf32>
    %c2_309 = arith.constant 2 : index
    %c8_310 = arith.constant 8 : index
    %c0_311 = arith.constant 0 : index
    %606 = vector.load %arg4[%c2_309, %c8_310, %c0_311] : memref<4x16x128xf32, #tpu.memory_space<vmem>>, vector<1x1x32xf32>
    %607 = vector.shape_cast %606 : vector<1x1x32xf32> to vector<1x32xf32>
    %c2_312 = arith.constant 2 : index
    %c11_313 = arith.constant 11 : index
    %c0_314 = arith.constant 0 : index
    %608 = vector.load %arg4[%c2_312, %c11_313, %c0_314] : memref<4x16x128xf32, #tpu.memory_space<vmem>>, vector<1x1x32xf32>
    %609 = vector.shape_cast %608 : vector<1x1x32xf32> to vector<1x32xf32>
    %c2_315 = arith.constant 2 : index
    %c12_316 = arith.constant 12 : index
    %c0_317 = arith.constant 0 : index
    %610 = vector.load %arg4[%c2_315, %c12_316, %c0_317] : memref<4x16x128xf32, #tpu.memory_space<vmem>>, vector<1x1x32xf32>
    %611 = vector.shape_cast %610 : vector<1x1x32xf32> to vector<1x32xf32>
    %cst_318 = arith.constant 5.000000e-01 : f32
    %612 = vector.broadcast %cst_318 : f32 to vector<32x64xf32>
    %613 = arith.mulf %612, %598 : vector<32x64xf32>
    %cst_319 = arith.constant 4.471500e-02 : f32
    %614 = vector.broadcast %cst_319 : f32 to vector<32x64xf32>
    %615 = arith.mulf %614, %598 : vector<32x64xf32>
    %616 = arith.mulf %615, %598 : vector<32x64xf32>
    %617 = arith.mulf %616, %598 : vector<32x64xf32>
    %618 = arith.addf %598, %617 : vector<32x64xf32>
    %cst_320 = arith.constant 0.797884583 : f32
    %619 = vector.broadcast %cst_320 : f32 to vector<32x64xf32>
    %620 = arith.mulf %619, %618 : vector<32x64xf32>
    %621 = math.tanh %620 : vector<32x64xf32>
    %cst_321 = arith.constant 1.000000e+00 : f32
    %622 = vector.broadcast %cst_321 : f32 to vector<32x64xf32>
    %623 = arith.addf %622, %621 : vector<32x64xf32>
    %624 = arith.mulf %613, %623 : vector<32x64xf32>
    %cst_322 = arith.constant dense<0.000000e+00> : vector<32x32xf32>
    %625 = tpu.matmul %624, %605, %cst_322 {dimension_numbers = #tpu.dot_dimension_numbers<[1], [0], [0], [1], [0, 0, 1, 1], [], []>} : vector<32x64xf32>, vector<64x32xf32>, vector<32x32xf32> -> vector<32x32xf32>
    %626 = vector.broadcast %607 : vector<1x32xf32> to vector<32x32xf32>
    %627 = arith.addf %625, %626 : vector<32x32xf32>
    %628 = arith.addf %627, %603 : vector<32x32xf32>
    %cst_323 = arith.constant dense<0.000000e+00> : vector<32xf32>
    %629 = vector.multi_reduction <add>, %628, %cst_323 [1] : vector<32x32xf32> to vector<32xf32>
    %630 = vector.shape_cast %629 : vector<32xf32> to vector<32x1xf32>
    %cst_324 = arith.constant 3.200000e+01 : f32
    %631 = vector.broadcast %cst_324 : f32 to vector<32x1xf32>
    %632 = arith.divf %630, %631 : vector<32x1xf32>
    %633 = arith.mulf %628, %628 : vector<32x32xf32>
    %cst_325 = arith.constant dense<0.000000e+00> : vector<32xf32>
    %634 = vector.multi_reduction <add>, %633, %cst_325 [1] : vector<32x32xf32> to vector<32xf32>
    %635 = vector.shape_cast %634 : vector<32xf32> to vector<32x1xf32>
    %cst_326 = arith.constant 3.200000e+01 : f32
    %636 = vector.broadcast %cst_326 : f32 to vector<32x1xf32>
    %637 = arith.divf %635, %636 : vector<32x1xf32>
    %638 = arith.mulf %632, %632 : vector<32x1xf32>
    %639 = arith.subf %637, %638 : vector<32x1xf32>
    %640 = vector.broadcast %632 : vector<32x1xf32> to vector<32x32xf32>
    %641 = arith.subf %628, %640 : vector<32x32xf32>
    %cst_327 = arith.constant 9.99999996E-13 : f32
    %642 = vector.broadcast %cst_327 : f32 to vector<32x1xf32>
    %643 = arith.addf %639, %642 : vector<32x1xf32>
    %644 = math.rsqrt %643 : vector<32x1xf32>
    %645 = vector.broadcast %644 : vector<32x1xf32> to vector<32x32xf32>
    %646 = arith.mulf %641, %645 : vector<32x32xf32>
    %647 = vector.broadcast %609 : vector<1x32xf32> to vector<32x32xf32>
    %648 = arith.mulf %646, %647 : vector<32x32xf32>
    %649 = vector.broadcast %611 : vector<1x32xf32> to vector<32x32xf32>
    %650 = arith.addf %648, %649 : vector<32x32xf32>
    %c3_328 = arith.constant 3 : index
    %c0_329 = arith.constant 0 : index
    %c0_330 = arith.constant 0 : index
    %651 = vector.load %arg3[%c3_328, %c0_329, %c0_330] : memref<4x320x128xf32, #tpu.memory_space<vmem>>, vector<1x32x16xf32>
    %652 = vector.shape_cast %651 : vector<1x32x16xf32> to vector<32x16xf32>
    %c3_331 = arith.constant 3 : index
    %c32_332 = arith.constant 32 : index
    %c0_333 = arith.constant 0 : index
    %653 = vector.load %arg3[%c3_331, %c32_332, %c0_333] : memref<4x320x128xf32, #tpu.memory_space<vmem>>, vector<1x32x16xf32>
    %654 = vector.shape_cast %653 : vector<1x32x16xf32> to vector<32x16xf32>
    %c3_334 = arith.constant 3 : index
    %c64_335 = arith.constant 64 : index
    %c0_336 = arith.constant 0 : index
    %655 = vector.load %arg3[%c3_334, %c64_335, %c0_336] : memref<4x320x128xf32, #tpu.memory_space<vmem>>, vector<1x32x16xf32>
    %656 = vector.shape_cast %655 : vector<1x32x16xf32> to vector<32x16xf32>
    %c3_337 = arith.constant 3 : index
    %c0_338 = arith.constant 0 : index
    %c0_339 = arith.constant 0 : index
    %657 = vector.load %arg4[%c3_337, %c0_338, %c0_339] : memref<4x16x128xf32, #tpu.memory_space<vmem>>, vector<1x1x16xf32>
    %658 = vector.shape_cast %657 : vector<1x1x16xf32> to vector<1x16xf32>
    %c3_340 = arith.constant 3 : index
    %c1_341 = arith.constant 1 : index
    %c0_342 = arith.constant 0 : index
    %659 = vector.load %arg4[%c3_340, %c1_341, %c0_342] : memref<4x16x128xf32, #tpu.memory_space<vmem>>, vector<1x1x16xf32>
    %660 = vector.shape_cast %659 : vector<1x1x16xf32> to vector<1x16xf32>
    %c3_343 = arith.constant 3 : index
    %c2_344 = arith.constant 2 : index
    %c0_345 = arith.constant 0 : index
    %661 = vector.load %arg4[%c3_343, %c2_344, %c0_345] : memref<4x16x128xf32, #tpu.memory_space<vmem>>, vector<1x1x16xf32>
    %662 = vector.shape_cast %661 : vector<1x1x16xf32> to vector<1x16xf32>
    %cst_346 = arith.constant dense<0.000000e+00> : vector<32x16xf32>
    %663 = tpu.matmul %650, %652, %cst_346 {dimension_numbers = #tpu.dot_dimension_numbers<[1], [0], [0], [1], [0, 0, 1, 1], [], []>} : vector<32x32xf32>, vector<32x16xf32>, vector<32x16xf32> -> vector<32x16xf32>
    %664 = vector.broadcast %658 : vector<1x16xf32> to vector<32x16xf32>
    %665 = arith.addf %663, %664 : vector<32x16xf32>
    %cst_347 = arith.constant dense<0.000000e+00> : vector<32x16xf32>
    %666 = tpu.matmul %650, %654, %cst_347 {dimension_numbers = #tpu.dot_dimension_numbers<[1], [0], [0], [1], [0, 0, 1, 1], [], []>} : vector<32x32xf32>, vector<32x16xf32>, vector<32x16xf32> -> vector<32x16xf32>
    %667 = vector.broadcast %660 : vector<1x16xf32> to vector<32x16xf32>
    %668 = arith.addf %666, %667 : vector<32x16xf32>
    %cst_348 = arith.constant dense<0.000000e+00> : vector<32x16xf32>
    %669 = tpu.matmul %650, %656, %cst_348 {dimension_numbers = #tpu.dot_dimension_numbers<[1], [0], [0], [1], [0, 0, 1, 1], [], []>} : vector<32x32xf32>, vector<32x16xf32>, vector<32x16xf32> -> vector<32x16xf32>
    %670 = vector.broadcast %662 : vector<1x16xf32> to vector<32x16xf32>
    %671 = arith.addf %669, %670 : vector<32x16xf32>
    %672 = vector.extract_strided_slice %665 {offsets = [0, 0], sizes = [16, 16], strides = [1, 1]} : vector<32x16xf32> to vector<16x16xf32>
    %673 = vector.extract_strided_slice %668 {offsets = [0, 0], sizes = [16, 16], strides = [1, 1]} : vector<32x16xf32> to vector<16x16xf32>
    %674 = vector.extract_strided_slice %671 {offsets = [0, 0], sizes = [16, 16], strides = [1, 1]} : vector<32x16xf32> to vector<16x16xf32>
    %cst_349 = arith.constant dense<0.000000e+00> : vector<16x16xf32>
    %675 = tpu.matmul %672, %673, %cst_349 {dimension_numbers = #tpu.dot_dimension_numbers<[1], [1], [0], [0], [0, 0, 1, 0], [], []>} : vector<16x16xf32>, vector<16x16xf32>, vector<16x16xf32> -> vector<16x16xf32>
    %cst_350 = arith.constant 2.500000e-01 : f32
    %676 = vector.broadcast %cst_350 : f32 to vector<16x16xf32>
    %677 = arith.mulf %675, %676 : vector<16x16xf32>
    %678 = vector.broadcast %2 : vector<1x16xf32> to vector<16x16xf32>
    %679 = arith.addf %677, %678 : vector<16x16xf32>
    %cst_351 = arith.constant dense<0xFF800000> : vector<16xf32>
    %680 = vector.multi_reduction <maximumf>, %679, %cst_351 [1] : vector<16x16xf32> to vector<16xf32>
    %681 = vector.shape_cast %680 : vector<16xf32> to vector<16x1xf32>
    %682 = vector.broadcast %681 : vector<16x1xf32> to vector<16x16xf32>
    %683 = arith.subf %679, %682 : vector<16x16xf32>
    %684 = math.exp %683 : vector<16x16xf32>
    %cst_352 = arith.constant dense<0.000000e+00> : vector<16xf32>
    %685 = vector.multi_reduction <add>, %684, %cst_352 [1] : vector<16x16xf32> to vector<16xf32>
    %686 = vector.shape_cast %685 : vector<16xf32> to vector<16x1xf32>
    %687 = tpu.reciprocal %686 {approx = true} : vector<16x1xf32> -> vector<16x1xf32>
    %688 = vector.broadcast %687 : vector<16x1xf32> to vector<16x16xf32>
    %689 = arith.mulf %684, %688 : vector<16x16xf32>
    %cst_353 = arith.constant dense<0.000000e+00> : vector<16x16xf32>
    %690 = tpu.matmul %689, %674, %cst_353 {dimension_numbers = #tpu.dot_dimension_numbers<[1], [0], [0], [1], [0, 0, 1, 1], [], []>} : vector<16x16xf32>, vector<16x16xf32>, vector<16x16xf32> -> vector<16x16xf32>
    %691 = vector.extract_strided_slice %665 {offsets = [16, 0], sizes = [16, 16], strides = [1, 1]} : vector<32x16xf32> to vector<16x16xf32>
    %692 = vector.extract_strided_slice %668 {offsets = [16, 0], sizes = [16, 16], strides = [1, 1]} : vector<32x16xf32> to vector<16x16xf32>
    %693 = vector.extract_strided_slice %671 {offsets = [16, 0], sizes = [16, 16], strides = [1, 1]} : vector<32x16xf32> to vector<16x16xf32>
    %cst_354 = arith.constant dense<0.000000e+00> : vector<16x16xf32>
    %694 = tpu.matmul %691, %692, %cst_354 {dimension_numbers = #tpu.dot_dimension_numbers<[1], [1], [0], [0], [0, 0, 1, 0], [], []>} : vector<16x16xf32>, vector<16x16xf32>, vector<16x16xf32> -> vector<16x16xf32>
    %cst_355 = arith.constant 2.500000e-01 : f32
    %695 = vector.broadcast %cst_355 : f32 to vector<16x16xf32>
    %696 = arith.mulf %694, %695 : vector<16x16xf32>
    %697 = vector.broadcast %4 : vector<1x16xf32> to vector<16x16xf32>
    %698 = arith.addf %696, %697 : vector<16x16xf32>
    %cst_356 = arith.constant dense<0xFF800000> : vector<16xf32>
    %699 = vector.multi_reduction <maximumf>, %698, %cst_356 [1] : vector<16x16xf32> to vector<16xf32>
    %700 = vector.shape_cast %699 : vector<16xf32> to vector<16x1xf32>
    %701 = vector.broadcast %700 : vector<16x1xf32> to vector<16x16xf32>
    %702 = arith.subf %698, %701 : vector<16x16xf32>
    %703 = math.exp %702 : vector<16x16xf32>
    %cst_357 = arith.constant dense<0.000000e+00> : vector<16xf32>
    %704 = vector.multi_reduction <add>, %703, %cst_357 [1] : vector<16x16xf32> to vector<16xf32>
    %705 = vector.shape_cast %704 : vector<16xf32> to vector<16x1xf32>
    %706 = tpu.reciprocal %705 {approx = true} : vector<16x1xf32> -> vector<16x1xf32>
    %707 = vector.broadcast %706 : vector<16x1xf32> to vector<16x16xf32>
    %708 = arith.mulf %703, %707 : vector<16x16xf32>
    %cst_358 = arith.constant dense<0.000000e+00> : vector<16x16xf32>
    %709 = tpu.matmul %708, %693, %cst_358 {dimension_numbers = #tpu.dot_dimension_numbers<[1], [0], [0], [1], [0, 0, 1, 1], [], []>} : vector<16x16xf32>, vector<16x16xf32>, vector<16x16xf32> -> vector<16x16xf32>
    %710 = tpu.concatenate %690, %709 in 0 : vector<16x16xf32>, vector<16x16xf32> -> vector<32x16xf32>
    %c3_359 = arith.constant 3 : index
    %c192_360 = arith.constant 192 : index
    %c0_361 = arith.constant 0 : index
    %711 = vector.load %arg3[%c3_359, %c192_360, %c0_361] : memref<4x320x128xf32, #tpu.memory_space<vmem>>, vector<1x16x32xf32>
    %712 = vector.shape_cast %711 : vector<1x16x32xf32> to vector<16x32xf32>
    %cst_362 = arith.constant dense<0.000000e+00> : vector<32x32xf32>
    %713 = tpu.matmul %710, %712, %cst_362 {dimension_numbers = #tpu.dot_dimension_numbers<[1], [0], [0], [1], [0, 0, 1, 1], [], []>} : vector<32x16xf32>, vector<16x32xf32>, vector<32x32xf32> -> vector<32x32xf32>
    %c3_363 = arith.constant 3 : index
    %c96_364 = arith.constant 96 : index
    %c0_365 = arith.constant 0 : index
    %714 = vector.load %arg3[%c3_363, %c96_364, %c0_365] : memref<4x320x128xf32, #tpu.memory_space<vmem>>, vector<1x32x16xf32>
    %715 = vector.shape_cast %714 : vector<1x32x16xf32> to vector<32x16xf32>
    %c3_366 = arith.constant 3 : index
    %c128_367 = arith.constant 128 : index
    %c0_368 = arith.constant 0 : index
    %716 = vector.load %arg3[%c3_366, %c128_367, %c0_368] : memref<4x320x128xf32, #tpu.memory_space<vmem>>, vector<1x32x16xf32>
    %717 = vector.shape_cast %716 : vector<1x32x16xf32> to vector<32x16xf32>
    %c3_369 = arith.constant 3 : index
    %c160_370 = arith.constant 160 : index
    %c0_371 = arith.constant 0 : index
    %718 = vector.load %arg3[%c3_369, %c160_370, %c0_371] : memref<4x320x128xf32, #tpu.memory_space<vmem>>, vector<1x32x16xf32>
    %719 = vector.shape_cast %718 : vector<1x32x16xf32> to vector<32x16xf32>
    %c3_372 = arith.constant 3 : index
    %c3_373 = arith.constant 3 : index
    %c0_374 = arith.constant 0 : index
    %720 = vector.load %arg4[%c3_372, %c3_373, %c0_374] : memref<4x16x128xf32, #tpu.memory_space<vmem>>, vector<1x1x16xf32>
    %721 = vector.shape_cast %720 : vector<1x1x16xf32> to vector<1x16xf32>
    %c3_375 = arith.constant 3 : index
    %c4_376 = arith.constant 4 : index
    %c0_377 = arith.constant 0 : index
    %722 = vector.load %arg4[%c3_375, %c4_376, %c0_377] : memref<4x16x128xf32, #tpu.memory_space<vmem>>, vector<1x1x16xf32>
    %723 = vector.shape_cast %722 : vector<1x1x16xf32> to vector<1x16xf32>
    %c3_378 = arith.constant 3 : index
    %c5_379 = arith.constant 5 : index
    %c0_380 = arith.constant 0 : index
    %724 = vector.load %arg4[%c3_378, %c5_379, %c0_380] : memref<4x16x128xf32, #tpu.memory_space<vmem>>, vector<1x1x16xf32>
    %725 = vector.shape_cast %724 : vector<1x1x16xf32> to vector<1x16xf32>
    %cst_381 = arith.constant dense<0.000000e+00> : vector<32x16xf32>
    %726 = tpu.matmul %650, %715, %cst_381 {dimension_numbers = #tpu.dot_dimension_numbers<[1], [0], [0], [1], [0, 0, 1, 1], [], []>} : vector<32x32xf32>, vector<32x16xf32>, vector<32x16xf32> -> vector<32x16xf32>
    %727 = vector.broadcast %721 : vector<1x16xf32> to vector<32x16xf32>
    %728 = arith.addf %726, %727 : vector<32x16xf32>
    %cst_382 = arith.constant dense<0.000000e+00> : vector<32x16xf32>
    %729 = tpu.matmul %650, %717, %cst_382 {dimension_numbers = #tpu.dot_dimension_numbers<[1], [0], [0], [1], [0, 0, 1, 1], [], []>} : vector<32x32xf32>, vector<32x16xf32>, vector<32x16xf32> -> vector<32x16xf32>
    %730 = vector.broadcast %723 : vector<1x16xf32> to vector<32x16xf32>
    %731 = arith.addf %729, %730 : vector<32x16xf32>
    %cst_383 = arith.constant dense<0.000000e+00> : vector<32x16xf32>
    %732 = tpu.matmul %650, %719, %cst_383 {dimension_numbers = #tpu.dot_dimension_numbers<[1], [0], [0], [1], [0, 0, 1, 1], [], []>} : vector<32x32xf32>, vector<32x16xf32>, vector<32x16xf32> -> vector<32x16xf32>
    %733 = vector.broadcast %725 : vector<1x16xf32> to vector<32x16xf32>
    %734 = arith.addf %732, %733 : vector<32x16xf32>
    %735 = vector.extract_strided_slice %728 {offsets = [0, 0], sizes = [16, 16], strides = [1, 1]} : vector<32x16xf32> to vector<16x16xf32>
    %736 = vector.extract_strided_slice %731 {offsets = [0, 0], sizes = [16, 16], strides = [1, 1]} : vector<32x16xf32> to vector<16x16xf32>
    %737 = vector.extract_strided_slice %734 {offsets = [0, 0], sizes = [16, 16], strides = [1, 1]} : vector<32x16xf32> to vector<16x16xf32>
    %cst_384 = arith.constant dense<0.000000e+00> : vector<16x16xf32>
    %738 = tpu.matmul %735, %736, %cst_384 {dimension_numbers = #tpu.dot_dimension_numbers<[1], [1], [0], [0], [0, 0, 1, 0], [], []>} : vector<16x16xf32>, vector<16x16xf32>, vector<16x16xf32> -> vector<16x16xf32>
    %cst_385 = arith.constant 2.500000e-01 : f32
    %739 = vector.broadcast %cst_385 : f32 to vector<16x16xf32>
    %740 = arith.mulf %738, %739 : vector<16x16xf32>
    %741 = vector.broadcast %2 : vector<1x16xf32> to vector<16x16xf32>
    %742 = arith.addf %740, %741 : vector<16x16xf32>
    %cst_386 = arith.constant dense<0xFF800000> : vector<16xf32>
    %743 = vector.multi_reduction <maximumf>, %742, %cst_386 [1] : vector<16x16xf32> to vector<16xf32>
    %744 = vector.shape_cast %743 : vector<16xf32> to vector<16x1xf32>
    %745 = vector.broadcast %744 : vector<16x1xf32> to vector<16x16xf32>
    %746 = arith.subf %742, %745 : vector<16x16xf32>
    %747 = math.exp %746 : vector<16x16xf32>
    %cst_387 = arith.constant dense<0.000000e+00> : vector<16xf32>
    %748 = vector.multi_reduction <add>, %747, %cst_387 [1] : vector<16x16xf32> to vector<16xf32>
    %749 = vector.shape_cast %748 : vector<16xf32> to vector<16x1xf32>
    %750 = tpu.reciprocal %749 {approx = true} : vector<16x1xf32> -> vector<16x1xf32>
    %751 = vector.broadcast %750 : vector<16x1xf32> to vector<16x16xf32>
    %752 = arith.mulf %747, %751 : vector<16x16xf32>
    %cst_388 = arith.constant dense<0.000000e+00> : vector<16x16xf32>
    %753 = tpu.matmul %752, %737, %cst_388 {dimension_numbers = #tpu.dot_dimension_numbers<[1], [0], [0], [1], [0, 0, 1, 1], [], []>} : vector<16x16xf32>, vector<16x16xf32>, vector<16x16xf32> -> vector<16x16xf32>
    %754 = vector.extract_strided_slice %728 {offsets = [16, 0], sizes = [16, 16], strides = [1, 1]} : vector<32x16xf32> to vector<16x16xf32>
    %755 = vector.extract_strided_slice %731 {offsets = [16, 0], sizes = [16, 16], strides = [1, 1]} : vector<32x16xf32> to vector<16x16xf32>
    %756 = vector.extract_strided_slice %734 {offsets = [16, 0], sizes = [16, 16], strides = [1, 1]} : vector<32x16xf32> to vector<16x16xf32>
    %cst_389 = arith.constant dense<0.000000e+00> : vector<16x16xf32>
    %757 = tpu.matmul %754, %755, %cst_389 {dimension_numbers = #tpu.dot_dimension_numbers<[1], [1], [0], [0], [0, 0, 1, 0], [], []>} : vector<16x16xf32>, vector<16x16xf32>, vector<16x16xf32> -> vector<16x16xf32>
    %cst_390 = arith.constant 2.500000e-01 : f32
    %758 = vector.broadcast %cst_390 : f32 to vector<16x16xf32>
    %759 = arith.mulf %757, %758 : vector<16x16xf32>
    %760 = vector.broadcast %4 : vector<1x16xf32> to vector<16x16xf32>
    %761 = arith.addf %759, %760 : vector<16x16xf32>
    %cst_391 = arith.constant dense<0xFF800000> : vector<16xf32>
    %762 = vector.multi_reduction <maximumf>, %761, %cst_391 [1] : vector<16x16xf32> to vector<16xf32>
    %763 = vector.shape_cast %762 : vector<16xf32> to vector<16x1xf32>
    %764 = vector.broadcast %763 : vector<16x1xf32> to vector<16x16xf32>
    %765 = arith.subf %761, %764 : vector<16x16xf32>
    %766 = math.exp %765 : vector<16x16xf32>
    %cst_392 = arith.constant dense<0.000000e+00> : vector<16xf32>
    %767 = vector.multi_reduction <add>, %766, %cst_392 [1] : vector<16x16xf32> to vector<16xf32>
    %768 = vector.shape_cast %767 : vector<16xf32> to vector<16x1xf32>
    %769 = tpu.reciprocal %768 {approx = true} : vector<16x1xf32> -> vector<16x1xf32>
    %770 = vector.broadcast %769 : vector<16x1xf32> to vector<16x16xf32>
    %771 = arith.mulf %766, %770 : vector<16x16xf32>
    %cst_393 = arith.constant dense<0.000000e+00> : vector<16x16xf32>
    %772 = tpu.matmul %771, %756, %cst_393 {dimension_numbers = #tpu.dot_dimension_numbers<[1], [0], [0], [1], [0, 0, 1, 1], [], []>} : vector<16x16xf32>, vector<16x16xf32>, vector<16x16xf32> -> vector<16x16xf32>
    %773 = tpu.concatenate %753, %772 in 0 : vector<16x16xf32>, vector<16x16xf32> -> vector<32x16xf32>
    %c3_394 = arith.constant 3 : index
    %c208_395 = arith.constant 208 : index
    %c0_396 = arith.constant 0 : index
    %774 = vector.load %arg3[%c3_394, %c208_395, %c0_396] : memref<4x320x128xf32, #tpu.memory_space<vmem>>, vector<1x16x32xf32>
    %775 = vector.shape_cast %774 : vector<1x16x32xf32> to vector<16x32xf32>
    %cst_397 = arith.constant dense<0.000000e+00> : vector<32x32xf32>
    %776 = tpu.matmul %773, %775, %cst_397 {dimension_numbers = #tpu.dot_dimension_numbers<[1], [0], [0], [1], [0, 0, 1, 1], [], []>} : vector<32x16xf32>, vector<16x32xf32>, vector<32x32xf32> -> vector<32x32xf32>
    %777 = arith.addf %713, %776 : vector<32x32xf32>
    %c3_398 = arith.constant 3 : index
    %c6_399 = arith.constant 6 : index
    %c0_400 = arith.constant 0 : index
    %778 = vector.load %arg4[%c3_398, %c6_399, %c0_400] : memref<4x16x128xf32, #tpu.memory_space<vmem>>, vector<1x1x32xf32>
    %779 = vector.shape_cast %778 : vector<1x1x32xf32> to vector<1x32xf32>
    %c3_401 = arith.constant 3 : index
    %c9_402 = arith.constant 9 : index
    %c0_403 = arith.constant 0 : index
    %780 = vector.load %arg4[%c3_401, %c9_402, %c0_403] : memref<4x16x128xf32, #tpu.memory_space<vmem>>, vector<1x1x32xf32>
    %781 = vector.shape_cast %780 : vector<1x1x32xf32> to vector<1x32xf32>
    %c3_404 = arith.constant 3 : index
    %c10_405 = arith.constant 10 : index
    %c0_406 = arith.constant 0 : index
    %782 = vector.load %arg4[%c3_404, %c10_405, %c0_406] : memref<4x16x128xf32, #tpu.memory_space<vmem>>, vector<1x1x32xf32>
    %783 = vector.shape_cast %782 : vector<1x1x32xf32> to vector<1x32xf32>
    %784 = vector.broadcast %779 : vector<1x32xf32> to vector<32x32xf32>
    %785 = arith.addf %777, %784 : vector<32x32xf32>
    %786 = arith.addf %785, %650 : vector<32x32xf32>
    %cst_407 = arith.constant dense<0.000000e+00> : vector<32xf32>
    %787 = vector.multi_reduction <add>, %786, %cst_407 [1] : vector<32x32xf32> to vector<32xf32>
    %788 = vector.shape_cast %787 : vector<32xf32> to vector<32x1xf32>
    %cst_408 = arith.constant 3.200000e+01 : f32
    %789 = vector.broadcast %cst_408 : f32 to vector<32x1xf32>
    %790 = arith.divf %788, %789 : vector<32x1xf32>
    %791 = arith.mulf %786, %786 : vector<32x32xf32>
    %cst_409 = arith.constant dense<0.000000e+00> : vector<32xf32>
    %792 = vector.multi_reduction <add>, %791, %cst_409 [1] : vector<32x32xf32> to vector<32xf32>
    %793 = vector.shape_cast %792 : vector<32xf32> to vector<32x1xf32>
    %cst_410 = arith.constant 3.200000e+01 : f32
    %794 = vector.broadcast %cst_410 : f32 to vector<32x1xf32>
    %795 = arith.divf %793, %794 : vector<32x1xf32>
    %796 = arith.mulf %790, %790 : vector<32x1xf32>
    %797 = arith.subf %795, %796 : vector<32x1xf32>
    %798 = vector.broadcast %790 : vector<32x1xf32> to vector<32x32xf32>
    %799 = arith.subf %786, %798 : vector<32x32xf32>
    %cst_411 = arith.constant 9.99999996E-13 : f32
    %800 = vector.broadcast %cst_411 : f32 to vector<32x1xf32>
    %801 = arith.addf %797, %800 : vector<32x1xf32>
    %802 = math.rsqrt %801 : vector<32x1xf32>
    %803 = vector.broadcast %802 : vector<32x1xf32> to vector<32x32xf32>
    %804 = arith.mulf %799, %803 : vector<32x32xf32>
    %805 = vector.broadcast %781 : vector<1x32xf32> to vector<32x32xf32>
    %806 = arith.mulf %804, %805 : vector<32x32xf32>
    %807 = vector.broadcast %783 : vector<1x32xf32> to vector<32x32xf32>
    %808 = arith.addf %806, %807 : vector<32x32xf32>
    %c3_412 = arith.constant 3 : index
    %c224_413 = arith.constant 224 : index
    %c0_414 = arith.constant 0 : index
    %809 = vector.load %arg3[%c3_412, %c224_413, %c0_414] : memref<4x320x128xf32, #tpu.memory_space<vmem>>, vector<1x32x64xf32>
    %810 = vector.shape_cast %809 : vector<1x32x64xf32> to vector<32x64xf32>
    %c3_415 = arith.constant 3 : index
    %c7_416 = arith.constant 7 : index
    %c0_417 = arith.constant 0 : index
    %811 = vector.load %arg4[%c3_415, %c7_416, %c0_417] : memref<4x16x128xf32, #tpu.memory_space<vmem>>, vector<1x1x64xf32>
    %812 = vector.shape_cast %811 : vector<1x1x64xf32> to vector<1x64xf32>
    %c3_418 = arith.constant 3 : index
    %c256_419 = arith.constant 256 : index
    %c0_420 = arith.constant 0 : index
    %813 = vector.load %arg3[%c3_418, %c256_419, %c0_420] : memref<4x320x128xf32, #tpu.memory_space<vmem>>, vector<1x64x32xf32>
    %814 = vector.shape_cast %813 : vector<1x64x32xf32> to vector<64x32xf32>
    %c3_421 = arith.constant 3 : index
    %c8_422 = arith.constant 8 : index
    %c0_423 = arith.constant 0 : index
    %815 = vector.load %arg4[%c3_421, %c8_422, %c0_423] : memref<4x16x128xf32, #tpu.memory_space<vmem>>, vector<1x1x32xf32>
    %816 = vector.shape_cast %815 : vector<1x1x32xf32> to vector<1x32xf32>
    %c3_424 = arith.constant 3 : index
    %c11_425 = arith.constant 11 : index
    %c0_426 = arith.constant 0 : index
    %817 = vector.load %arg4[%c3_424, %c11_425, %c0_426] : memref<4x16x128xf32, #tpu.memory_space<vmem>>, vector<1x1x32xf32>
    %818 = vector.shape_cast %817 : vector<1x1x32xf32> to vector<1x32xf32>
    %c3_427 = arith.constant 3 : index
    %c12_428 = arith.constant 12 : index
    %c0_429 = arith.constant 0 : index
    %819 = vector.load %arg4[%c3_427, %c12_428, %c0_429] : memref<4x16x128xf32, #tpu.memory_space<vmem>>, vector<1x1x32xf32>
    %820 = vector.shape_cast %819 : vector<1x1x32xf32> to vector<1x32xf32>
    %cst_430 = arith.constant dense<0.000000e+00> : vector<32x64xf32>
    %821 = tpu.matmul %808, %810, %cst_430 {dimension_numbers = #tpu.dot_dimension_numbers<[1], [0], [0], [1], [0, 0, 1, 1], [], []>} : vector<32x32xf32>, vector<32x64xf32>, vector<32x64xf32> -> vector<32x64xf32>
    %822 = vector.broadcast %812 : vector<1x64xf32> to vector<32x64xf32>
    %823 = arith.addf %821, %822 : vector<32x64xf32>
    %cst_431 = arith.constant 5.000000e-01 : f32
    %824 = vector.broadcast %cst_431 : f32 to vector<32x64xf32>
    %825 = arith.mulf %824, %823 : vector<32x64xf32>
    %cst_432 = arith.constant 4.471500e-02 : f32
    %826 = vector.broadcast %cst_432 : f32 to vector<32x64xf32>
    %827 = arith.mulf %826, %823 : vector<32x64xf32>
    %828 = arith.mulf %827, %823 : vector<32x64xf32>
    %829 = arith.mulf %828, %823 : vector<32x64xf32>
    %830 = arith.addf %823, %829 : vector<32x64xf32>
    %cst_433 = arith.constant 0.797884583 : f32
    %831 = vector.broadcast %cst_433 : f32 to vector<32x64xf32>
    %832 = arith.mulf %831, %830 : vector<32x64xf32>
    %833 = math.tanh %832 : vector<32x64xf32>
    %cst_434 = arith.constant 1.000000e+00 : f32
    %834 = vector.broadcast %cst_434 : f32 to vector<32x64xf32>
    %835 = arith.addf %834, %833 : vector<32x64xf32>
    %836 = arith.mulf %825, %835 : vector<32x64xf32>
    %cst_435 = arith.constant dense<0.000000e+00> : vector<32x32xf32>
    %837 = tpu.matmul %836, %814, %cst_435 {dimension_numbers = #tpu.dot_dimension_numbers<[1], [0], [0], [1], [0, 0, 1, 1], [], []>} : vector<32x64xf32>, vector<64x32xf32>, vector<32x32xf32> -> vector<32x32xf32>
    %838 = vector.broadcast %816 : vector<1x32xf32> to vector<32x32xf32>
    %839 = arith.addf %837, %838 : vector<32x32xf32>
    %840 = arith.addf %839, %808 : vector<32x32xf32>
    %cst_436 = arith.constant dense<0.000000e+00> : vector<32xf32>
    %841 = vector.multi_reduction <add>, %840, %cst_436 [1] : vector<32x32xf32> to vector<32xf32>
    %842 = vector.shape_cast %841 : vector<32xf32> to vector<32x1xf32>
    %cst_437 = arith.constant 3.200000e+01 : f32
    %843 = vector.broadcast %cst_437 : f32 to vector<32x1xf32>
    %844 = arith.divf %842, %843 : vector<32x1xf32>
    %845 = arith.mulf %840, %840 : vector<32x32xf32>
    %cst_438 = arith.constant dense<0.000000e+00> : vector<32xf32>
    %846 = vector.multi_reduction <add>, %845, %cst_438 [1] : vector<32x32xf32> to vector<32xf32>
    %847 = vector.shape_cast %846 : vector<32xf32> to vector<32x1xf32>
    %cst_439 = arith.constant 3.200000e+01 : f32
    %848 = vector.broadcast %cst_439 : f32 to vector<32x1xf32>
    %849 = arith.divf %847, %848 : vector<32x1xf32>
    %850 = arith.mulf %844, %844 : vector<32x1xf32>
    %851 = arith.subf %849, %850 : vector<32x1xf32>
    %852 = vector.broadcast %844 : vector<32x1xf32> to vector<32x32xf32>
    %853 = arith.subf %840, %852 : vector<32x32xf32>
    %cst_440 = arith.constant 9.99999996E-13 : f32
    %854 = vector.broadcast %cst_440 : f32 to vector<32x1xf32>
    %855 = arith.addf %851, %854 : vector<32x1xf32>
    %856 = math.rsqrt %855 : vector<32x1xf32>
    %857 = vector.broadcast %856 : vector<32x1xf32> to vector<32x32xf32>
    %858 = arith.mulf %853, %857 : vector<32x32xf32>
    %859 = vector.broadcast %818 : vector<1x32xf32> to vector<32x32xf32>
    %860 = arith.mulf %858, %859 : vector<32x32xf32>
    %861 = vector.broadcast %820 : vector<1x32xf32> to vector<32x32xf32>
    %862 = arith.addf %860, %861 : vector<32x32xf32>
    %c0_441 = arith.constant 0 : index
    %c0_442 = arith.constant 0 : index
    %863 = vector.load %arg5[%c0_441, %c0_442] : memref<32x32xf32, #tpu.memory_space<vmem>>, vector<32x32xf32>
    tpu.vector_store %arg5[%c0_441, %c0_442], %862 {strides = array<i32>} : memref<32x32xf32, #tpu.memory_space<vmem>>, vector<32x32xf32>,
    return
  }
  func.func @transform_0(%arg0: i32) -> (i32, i32) {
    %c0_i32 = arith.constant 0 : i32
    %c0_i32_0 = arith.constant 0 : i32
    %c0_i32_1 = arith.constant 0 : i32
    return %c0_i32, %c0_i32_0 : i32, i32
  }
  func.func @transform_1(%arg0: i32) -> (i32, i32, i32) {
    %c0_i32 = arith.constant 0 : i32
    %c0_i32_0 = arith.constant 0 : i32
    %c0_i32_1 = arith.constant 0 : i32
    %c0_i32_2 = arith.constant 0 : i32
    return %c0_i32, %c0_i32_0, %c0_i32_1 : i32, i32, i32
  }
  func.func @transform_2(%arg0: i32) -> (i32, i32, i32) {
    %c0_i32 = arith.constant 0 : i32
    %c0_i32_0 = arith.constant 0 : i32
    %c0_i32_1 = arith.constant 0 : i32
    %c0_i32_2 = arith.constant 0 : i32
    return %c0_i32, %c0_i32_0, %c0_i32_1 : i32, i32, i32
  }
  func.func @transform_3(%arg0: i32) -> (i32, i32, i32) {
    %c0_i32 = arith.constant 0 : i32
    %c0_i32_0 = arith.constant 0 : i32
    %c0_i32_1 = arith.constant 0 : i32
    %c0_i32_2 = arith.constant 0 : i32
    return %c0_i32, %c0_i32_0, %c0_i32_1 : i32, i32, i32
  }
  func.func @transform_4(%arg0: i32) -> (i32, i32) {
    %c0_i32 = arith.constant 0 : i32
    %c0_i32_0 = arith.constant 0 : i32
    %c0_i32_1 = arith.constant 0 : i32
    return %c0_i32, %c0_i32_0 : i32, i32
  }
}

</mosaic_0001>

<bundles_post_ra>
// kernel: dist_forward.1
= control target key start
LH: loop header
LB: loop body
LE: loop exit
PB: predicated region body
PF: predicated region fallthrough
CT: control target
= control target key end

     0   :  { %9 = vsyncpa [#allocation3], 0  ;;  %s11618_s0 = inlined_call_operand.vmem [shape: f32[32,32], index: 0, kind: input, shape index: {}]   ;;  %s11619_s1 = inlined_call_operand.vmem [shape: f32[2,1,16], index: 1, kind: input, shape index: {}]   ;;  %s11620_s2 = inlined_call_operand.hbm [shape: f32[4,320,128], index: 2, kind: input, shape index: {}]   ;;  %s11621_s3 = inlined_call_operand.vmem [shape: f32[4,16,128], index: 3, kind: input, shape index: {}]   ;;  %s11622_s4 = inlined_call_operand.hbm [shape: f32[32,32], index: 4, kind: output, shape index: {}]  }
   0x1   :  { %10 = vsyncpa [#allocation4], 0  ;;  %s10374_s15 = smov [#allocation2]   ;;  %s10326_s19 = scalar_lea.hbm %s11620_s2, 20480 }
   0x2   :  { %s20_s16 = sshll.u32 %s10374_s15, 4  ;;  %p10327_p0 = scmp.ne.s32.totalorder %s11620_s2, %s10326_s19  ;;  %s21_s16 = int_to_ptr.vmem [resolvable:$true] %s20_s16 }
   0x3   :  { %p10330_p1 = scmp.lt.u32.totalorder %s10326_s19, %s11620_s2 }
   0x5   :  { %p10332_p2 = pnand %p10330_p1, %p10327_p0 }
   0x7   :  { %10335 = shalt.err (!%p10332_p2)
}
   0x8   :  { %s10336_s24 = scalar_lea.vmem %s21_s16, 20480  ;;  %p10341_p4 = scmp.lt.s32.totalorder %s21_s16, %s21_s16 }
   0x9   :  { %p10337_p3 = scmp.ne.s32.totalorder %s21_s16, %s10336_s24  ;;  %p10342_p5 = scmp.lt.s32.totalorder %s10336_s24, %s10336_s24 }
   0xb   :  { %p10343_p6 = por %p10342_p5, %p10341_p4 }
   0xd   :  { %p10344_p7 = pnand %p10343_p6, %p10337_p3 }
   0xf   :  { %10347 = shalt.err (!%p10344_p7)
}
  0x10   :  { %s10375_s25 = smov 128   ;;  %s10376_s26 = smov 8  }
  0x11   :  { %26 = dma.hbm_to_vmem [thread:$0]  %s11620_s2, 20480, %s21_s16, [#allocation3], %s10375_s25, %s10375_s25, %s10376_s26  }
  0x12   :  { %10370 = dma.done.wait [#allocation3], 20480  }
  0x13   :  { %10371 = vsyncadd [#allocation3], 4294946816  ;;  %vm58_vm0 = vcmask 261120   ;;  %v39_v0 = vld [vmem:[#allocation2] sm:$0xff]  ;;  %v40_v1 = vld [vmem:[#allocation2 + $0x8] sm:$0xff]  ;;  %vm334_vm1 = vcmask 130048  }
  0x14   :  { %v41_v2 = vld [vmem:[#allocation2 + $0x10] sm:$0xff]  ;;  %v9588_v3 = vpack.c.bf16 %v40_v1, %v39_v0  ;;  %v42_v4 = vld [vmem:[#allocation2 + $0x18] sm:$0xff]  ;;  %v10421_v5 = vld [vmem:[%s11618_s0] sm:$0xff]  ;;  %vm1852_vm3 = vcmask 523264   ;;  %s10377_s24 = smov [#allocation5]  }
  0x15   :  { %v9592_v6 = vpack.c.bf16 %v42_v4, %v41_v2  ;;  %8812 = vmatprep.mubr.msk.f32.mxu1 %vm58_vm0, %v10421_v5  ;;  %v43_v7 = vld [vmem:[#allocation2 + $0x20] sm:$0xff]  ;;  %v44_v8 = vld [vmem:[#allocation2 + $0x28] sm:$0xff]  ;;  %8840 = vmatprep.mubr.msk.f32.mxu0 %vm58_vm0, %v10421_v5  ;;  %v49_v11 = vld [vmem:[#allocation2 + $0x50] sm:$0xff]  ;;  %s7994_s27 = sshll.u32 %s10377_s24, 4  ;;  %s7995_s27 = int_to_ptr.vmem [resolvable:$true] %s7994_s27 }
  0x16   :  { %9589 = vmatprep.subr.bf16.mxu1 %v9588_v3  ;;  %v47_v9 = vld [vmem:[#allocation2 + $0x40] sm:$0xff]  ;;  %v48_v10 = vld [vmem:[#allocation2 + $0x48] sm:$0xff]  ;;  %v9596_v12 = vpack.c.bf16 %v44_v8, %v43_v7  ;;  %v50_v14 = vld [vmem:[#allocation2 + $0x58] sm:$0xff]  ;;  %p10353_p9 = scmp.lt.s32.totalorder %s7995_s27, %s7995_s27 }
  0x17   :  { %9591 = vmatpush3.bf16.msra.mxu1 %v9588_v3  ;;  %v9604_v13 = vpack.c.bf16 %v48_v10, %v47_v9  ;;  %v45_v15 = vld [vmem:[#allocation2 + $0x30] sm:$0xff]  ;;  %v46_v16 = vld [vmem:[#allocation2 + $0x38] sm:$0xff]  ;;  %v9608_v17 = vpack.c.bf16 %v50_v14, %v49_v11  ;;  %v10430_v18 = vld [vmem:[%s11618_s0 + $0x8] sm:$0xff] }
  0x18   :  { %9593 = vmatprep.subr.bf16.mxu1 %v9592_v6  ;;  %v10435_v19 = vld [vmem:[%s11618_s0 + $0x10] sm:$0xff]  ;;  %v9600_v20 = vpack.c.bf16 %v46_v16, %v45_v15  ;;  %v10444_v21 = vld [vmem:[%s11618_s0 + $0x18] sm:$0xff]  ;;  %v8007_v22 = vld [vmem:[%s11621_s3] ss:$0 sm:$0xff] }
  0x19   :  { %9605 = vmatprep.subr.bf16.mxu0 %v9604_v13  ;;  %v8017_v27 = vld [vmem:[%s11621_s3 + $0x2] ss:$0 sm:$0xff]  ;;  %v8012_v30 = vld [vmem:[%s11621_s3 + $0x1] ss:$0 sm:$0xff]  ;;  %vm10475_vm2 = vmpackc.low %vm334_vm1, %vm334_vm1 }
  0x1a   :  { %9607 = vmatpush3.bf16.msra.mxu0 %v9604_v13  ;;  %v10497_v56 = vld [vmem:[%s11619_s1] ss:$0 sm:$0xff]  ;;  %v10503_v62 = vld [vmem:[%s11619_s1 + $0x1] ss:$0 sm:$0xff] }
  0x1b   :  { %9595 = vmatpush3.bf16.msra.mxu1 %v9592_v6  ;;  %9609 = vmatprep.subr.bf16.mxu0 %v9608_v17 }
  0x1c   :  { %9597 = vmatprep.subr.bf16.mxu1 %v9596_v12 }
  0x1e   :  { %8813 = vmatmul.mubr.msk.f32.vlgmr.msra.gmra.mrb[0].mxu1 %vm58_vm0, %v10430_v18  ;;  %9611 = vmatpush3.bf16.msra.mxu0 %v9608_v17 }
  0x1f   :  { %9599 = vmatpush3.bf16.msra.mxu1 %v9596_v12  ;;  %8815 = vmatprep.mubr.msk.f32.mxu1 %vm58_vm0, %v10435_v19 }
  0x20   :  { %9601 = vmatprep.subr.bf16.mxu1 %v9600_v20 }
  0x21   :  { %8841 = vmatmul.mubr.msk.f32.vlgmr.msra.gmra.mrb[0].mxu0 %vm58_vm0, %v10430_v18 }
  0x22   :  { %8816 = vmatmul.mubr.msk.f32.gmra.mrb[2].mxu1 %vm58_vm0, %v10444_v21  ;;  %8843 = vmatprep.mubr.msk.f32.mxu0 %vm58_vm0, %v10435_v19 }
  0x23   :  { %9603 = vmatpush3.bf16.msra.mxu1 %v9600_v20  ;;  %8826 = vmatprep.mubr.msk.f32.mxu1 %vm58_vm0, %v10421_v5 }
  0x25   :  { %8844 = vmatmul.mubr.msk.f32.gmra.mrb[2].mxu0 %vm58_vm0, %v10444_v21 }
  0x26   :  { %8827 = vmatmul.mubr.msk.f32.vlgmr.msra.gmra.mrb[4].mxu1 %vm58_vm0, %v10430_v18 }
  0x27   :  { %8829 = vmatprep.mubr.msk.f32.mxu1 %vm58_vm0, %v10435_v19 }
  0x2a   :  { %8830 = vmatmul.mubr.msk.f32.gmra.mrb[6].mxu1 %vm58_vm0, %v10444_v21 }
  0xf1   :  { %v8814_v23 = vpop.f32.mrb[0].mxu1 }
  0xf2   :  { %v137_v24 = vpop.f32.mrb[1].mxu1  ;;  %v143_v52 = vadd.f32 %v8814_v23, %v8007_v22 }
  0xf3   :  { %v138_v25 = vadd.f32 %v8007_v22, %v137_v24 }
  0xf4   :  { %v8842_v31 = vpop.f32.mrb[0].mxu0 }
  0xf5   :  { %v8817_v26 = vpop.f32.mrb[2].mxu1  ;;  %8850 = vmatprep.mubr.msk.f32.mxu1 %vm334_vm1, %v138_v25  ;;  %v321_v32 = vadd.f32 %v8842_v31, %v8017_v27  ;;  %v315_v33 = vpop.f32.mrb[1].mxu0 }
  0xf6   :  { %v147_v28 = vpop.f32.mrb[3].mxu1  ;;  %v316_v35 = vadd.f32 %v8017_v27, %v315_v33  ;;  %v153_v53 = vadd.f32 %v8817_v26, %v8007_v22  ;;  %v738_v33 = vld [vmem:[#allocation2 + $0x68] sm:$0xff] }
  0xf7   :  { %v148_v29 = vadd.f32 %v8007_v22, %v147_v28 }
  0xf8   :  { %v9618_v39 = vpack.c.bf16 %v321_v32, %v316_v35  ;;  %v8845_v40 = vpop.f32.mrb[2].mxu0  ;;  %v737_v32 = vld [vmem:[#allocation2 + $0x60] sm:$0xff]  ;;  %v739_v35 = vld [vmem:[#allocation2 + $0x70] sm:$0xff] }
  0xf9   :  { %v8828_v34 = vpop.f32.mrb[4].mxu1  ;;  %8864 = vmatprep.mubr.msk.f32.mxu0 %vm334_vm1, %v148_v29  ;;  %v331_v42 = vadd.f32 %v8845_v40, %v8017_v27  ;;  %v325_v43 = vpop.f32.mrb[3].mxu0 }
  0xfa   :  { %v232_v36 = vadd.f32 %v8828_v34, %v8012_v30  ;;  %v226_v37 = vpop.f32.mrb[5].mxu1  ;;  %v326_v46 = vadd.f32 %v8017_v27, %v325_v43  ;;  %v9632_v34 = vpack.c.bf16 %v738_v33, %v737_v32 }
  0xfb   :  { %v227_v38 = vadd.f32 %v8012_v30, %v226_v37 }
  0xfc   :  { %v10481_v50 = vpack.c.bf16 %v331_v42, %v326_v46  ;;  %v742_v46 = vld [vmem:[#allocation2 + $0x88] sm:$0xff] }
  0xfd   :  { %v9612_v44 = vpack.c.bf16 %v232_v36, %v227_v38  ;;  %v8831_v45 = vpop.f32.mrb[6].mxu1  ;;  %v740_v36 = vld [vmem:[#allocation2 + $0x78] sm:$0xff] }
  0xfe   :  { %v242_v47 = vadd.f32 %v8831_v45, %v8012_v30  ;;  %v236_v48 = vpop.f32.mrb[7].mxu1  ;;  %v9636_v37 = vpack.c.bf16 %v740_v36, %v739_v35  ;;  %v741_v45 = vld [vmem:[#allocation2 + $0x80] sm:$0xff] }
  0xff   :  { %v237_v49 = vadd.f32 %v8012_v30, %v236_v48  ;;  %9614 = vmatprep.subr.msk.bf16.mxu1 %vm10475_vm2, %v9612_v44 }
 0x100   :  { %9617 = vmatpush3.bf16.xpose.msk.msra.mxu1 %vm10475_vm2, %v9612_v44 }
 0x101   :  { %v9622_v51 = vpack.c.bf16 %v242_v47, %v237_v49  ;;  %9619 = vmatprep.subr.bf16.mxu1 %v9618_v39 }
 0x103   :  { %9624 = vmatprep.subr.msk.bf16.mxu0 %vm10475_vm2, %v9622_v51 }
 0x104   :  { %9627 = vmatpush3.bf16.xpose.msk.msra.mxu0 %vm10475_vm2, %v9622_v51 }
 0x105   :  { %9633 = vmatprep.subr.bf16.mxu0 %v9632_v34 }
 0x107   :  { %8851 = vmatmul.mubr.msk.f32.vlgmr.msra.gmra.mrb[8].mxu1 %vm334_vm1, %v143_v52  ;;  %v9640_v52 = vpack.c.bf16 %v742_v46, %v741_v45 }
 0x108   :  { %9621 = vmatpush3.bf16.msra.mxu1 %v9618_v39 }
 0x109   :  { %9629 = vmatprep.subr.bf16.mxu1 %v10481_v50 }
 0x10b   :  { %8865 = vmatmul.mubr.msk.f32.vlgmr.msra.gmra.mrb[4].mxu0 %vm334_vm1, %v153_v53  ;;  %v743_v53 = vld [vmem:[#allocation2 + $0x90] sm:$0xff] }
 0x10c   :  { %8882 = vmatprep.mubr.msk.f32.mxu0 %vm58_vm0, %v10421_v5  ;;  %9635 = vmatpush3.bf16.msra.mxu0 %v9632_v34 }
 0x10d   :  { %9637 = vmatprep.subr.bf16.mxu0 %v9636_v37 }
 0x110   :  { %9639 = vmatpush3.bf16.msra.mxu0 %v9636_v37 }
 0x113   :  { %8883 = vmatmul.mubr.msk.f32.vlgmr.msra.gmra.mrb[6].mxu0 %vm58_vm0, %v10430_v18 }
 0x114   :  { %8885 = vmatprep.mubr.msk.f32.mxu0 %vm58_vm0, %v10435_v19 }
 0x117   :  { %8886 = vmatmul.mubr.msk.f32.gmra.mrb[8].mxu0 %vm58_vm0, %v10444_v21 }
 0x118   :  { %8910 = vmatprep.mubr.msk.f32.mxu0 %vm58_vm0, %v10421_v5 }
 0x1da   :  { %v8852_v54 = vpop.f32.mrb[8].mxu1 }
 0x1db   :  { %v413_v55 = vpop.f32.mrb[9].mxu1  ;;  %v423_v57 = vmul.f32 0.25, %v8852_v54  ;;  %v744_v54 = vld [vmem:[#allocation2 + $0x98] sm:$0xff] }
 0x1dc   :  { %v422_v58 = vmul.f32 0.25, %v413_v55 }
 0x1dd   :  { %v431_v2 = vadd.f32 %v10497_v56, %v423_v57 }
 0x1de   :  { %v8866_v59 = vpop.f32.mrb[4].mxu0  ;;  %v430_v60 = vadd.f32 %v10497_v56, %v422_v58  ;;  %v9644_v58 = vpack.c.bf16 %v744_v54, %v743_v53 }
 0x1df   :  { %v613_v61 = vpop.f32.mrb[5].mxu0  ;;  %v623_v63 = vmul.f32 0.25, %v8866_v59  ;;  %v435_v6 = vsel %vm334_vm1, %v431_v2, -inf  ;;  %v746_v59 = vld [vmem:[#allocation2 + $0xa8] sm:$0xff] }
 0x1e0   :  { %v622_v0 = vmul.f32 0.25, %v613_v61  ;;  %v432_v1 = vsel %vm334_vm1, %v430_v60, -inf  ;;  %v747_v61 = vld [vmem:[#allocation2 + $0xb0] sm:$0xff] }
 0x1e1   :  { %433 = vmax.xlane.f32.xlu0 %v432_v1  ;;  %v631_v7 = vadd.f32 %v10503_v62, %v623_v63  ;;  %v748_v63 = vld [vmem:[#allocation2 + $0xb8] sm:$0xff] }
 0x1e2   :  { %v630_v3 = vadd.f32 %v10503_v62, %v622_v0  ;;  %v9652_v0 = vpack.c.bf16 %v748_v63, %v747_v61 }
 0x1e3   :  { %v635_v8 = vsel %vm334_vm1, %v631_v7, -inf }
 0x1e4   :  { %v632_v4 = vsel %vm334_vm1, %v630_v3, -inf }
 0x1e5   :  { %633 = vmax.xlane.f32.xlu1 %v632_v4  ;;  %436 = vmax.xlane.f32.xlu0 %v435_v6 }
 0x1e6   :  { %v8884_v1 = vpop.f32.mrb[6].mxu0 }
 0x1e7   :  { %v822_v4 = vpop.f32.mrb[7].mxu0 }
 0x1e9   :  { %636 = vmax.xlane.f32.xlu1 %v635_v8 }
 0x26e   :  { %v434_v9 = vpop.xlane.xlu0 %433 }
 0x26f   :  { %v438_v10 = vsub.f32 %v430_v60, %v434_v9 }
 0x271   :  { %v440_v11 = vmul.f32 1.442695, %v438_v10 }
 0x272   :  { %v634_v12 = vpop.xlane.xlu1 %633  ;;  %v437_v13 = vpop.xlane.xlu0 %436 }
 0x273   :  { %10096 = vpow2.f32 %v440_v11  ;;  %v638_v14 = vsub.f32 %v630_v3, %v634_v12  ;;  %v439_v15 = vsub.f32 %v431_v2, %v437_v13  ;;  %v8036_v2 = vld [vmem:[%s11621_s3 + $0x3] ss:$0 sm:$0xff] }
 0x274   :  { %v828_v3 = vadd.f32 %v8884_v1, %v8036_v2  ;;  %v823_v6 = vadd.f32 %v8036_v2, %v822_v4 }
 0x275   :  { %v640_v16 = vmul.f32 1.442695, %v638_v14  ;;  %v442_v17 = vmul.f32 1.442695, %v439_v15  ;;  %v8041_v15 = vld [vmem:[%s11621_s3 + $0x4] ss:$0 sm:$0xff] }
 0x276   :  { %v637_v20 = vpop.xlane.xlu1 %636 }
 0x277   :  { %10098 = vpow2.f32 %v640_v16  ;;  %v639_v22 = vsub.f32 %v631_v7, %v637_v20  ;;  %v8887_v7 = vpop.f32.mrb[8].mxu0 }
 0x278   :  { %10100 = vpow2.f32 %v442_v17  ;;  %v838_v8 = vadd.f32 %v8887_v7, %v8036_v2  ;;  %v832_v9 = vpop.f32.mrb[9].mxu0 }
 0x279   :  { %v642_v23 = vmul.f32 1.442695, %v639_v22  ;;  %v833_v10 = vadd.f32 %v8036_v2, %v832_v9 }
 0x27b   :  { %10102 = vpow2.f32 %v642_v23 }
 0x27d   :  { %v10097_v24 = vpop.eup %10096 }
 0x27e   :  { %v444_v25 = vsel %vm334_vm1, %v10097_v24, 0.0 }
 0x27f   :  { %445 = vadd.xlane.f32.xlu0 %v444_v25 }
 0x281   :  { %v10099_v26 = vpop.eup %10098 }
 0x282   :  { %v10101_v27 = vpop.eup %10100  ;;  %v644_v28 = vsel %vm334_vm1, %v10099_v26, 0.0 }
 0x283   :  { %645 = vadd.xlane.f32.xlu0 %v644_v28  ;;  %v447_v29 = vsel %vm334_vm1, %v10101_v27, 0.0 }
 0x284   :  { %448 = vadd.xlane.f32.xlu1 %v447_v29  ;;  %v8046_v29 = vld [vmem:[%s11621_s3 + $0x5] ss:$0 sm:$0xff] }
 0x285   :  { %v10103_v30 = vpop.eup %10102 }
 0x286   :  { %v647_v31 = vsel %vm334_vm1, %v10103_v30, 0.0 }
 0x288   :  { %648 = vadd.xlane.f32.xlu1 %v647_v31 }
 0x30c   :  { %v446_v38 = vpop.xlane.xlu0 %445 }
 0x30d   :  { %10104 = vrcp.f32 %v446_v38 }
 0x310   :  { %v646_v39 = vpop.xlane.xlu0 %645 }
 0x311   :  { %v449_v40 = vpop.xlane.xlu1 %448  ;;  %10106 = vrcp.f32 %v646_v39 }
 0x312   :  { %10108 = vrcp.f32 %v449_v40 }
 0x315   :  { %v649_v42 = vpop.xlane.xlu1 %648 }
 0x316   :  { %10110 = vrcp.f32 %v649_v42 }
 0x317   :  { %v10105_v43 = vpop.eup %10104 }
 0x318   :  { %v452_v44 = vmul.f32 %v10105_v43, %v10097_v24 }
 0x31a   :  { %8857 = vmatprep.mubr.msk.f32.mxu1 %vm334_vm1, %v452_v44 }
 0x31b   :  { %v10107_v47 = vpop.eup %10106 }
 0x31c   :  { %v10109_v48 = vpop.eup %10108  ;;  %v652_v49 = vmul.f32 %v10107_v47, %v10099_v26 }
 0x31d   :  { %v453_v51 = vmul.f32 %v10109_v48, %v10101_v27 }
 0x31f   :  { %8858 = vmatmul.mubr.msk.f32.vlgmr.msra.gmra.mrb[10].mxu1 %vm334_vm1, %v453_v51 }
 0x320   :  { %v10111_v55 = vpop.eup %10110  ;;  %9631 = vmatpush3.bf16.msra.mxu1 %v10481_v50  ;;  %8871 = vmatprep.mubr.msk.f32.mxu1 %vm334_vm1, %v652_v49  ;;  %v745_v50 = vld [vmem:[#allocation2 + $0xa0] sm:$0xff] }
 0x321   :  { %9641 = vmatprep.subr.bf16.mxu1 %v9640_v52  ;;  %v653_v57 = vmul.f32 %v10111_v55, %v10103_v30  ;;  %v9648_v60 = vpack.c.bf16 %v746_v59, %v745_v50 }
 0x323   :  { %8872 = vmatmul.mubr.msk.f32.vlgmr.msra.gmra.mrb[12].mxu1 %vm334_vm1, %v653_v57  ;;  %9649 = vmatprep.subr.bf16.mxu0 %v9648_v60 }
 0x324   :  { %9643 = vmatpush3.bf16.msra.mxu1 %v9640_v52  ;;  %8896 = vmatprep.mubr.msk.f32.mxu1 %vm58_vm0, %v10421_v5 }
 0x325   :  { %9645 = vmatprep.subr.bf16.mxu1 %v9644_v58  ;;  %9651 = vmatpush3.bf16.msra.mxu0 %v9648_v60 }
 0x326   :  { %9653 = vmatprep.subr.bf16.mxu0 %v9652_v0 }
 0x328   :  { %9647 = vmatpush3.bf16.msra.mxu1 %v9644_v58 }
 0x329   :  { %9655 = vmatpush3.bf16.msra.mxu0 %v9652_v0 }
 0x32b   :  { %8897 = vmatmul.mubr.msk.f32.vlgmr.msra.gmra.mrb[14].mxu1 %vm58_vm0, %v10430_v18 }
 0x32c   :  { %8899 = vmatprep.mubr.msk.f32.mxu1 %vm58_vm0, %v10435_v19  ;;  %8911 = vmatmul.mubr.msk.f32.vlgmr.msra.gmra.mrb[10].mxu0 %vm58_vm0, %v10430_v18 }
 0x32d   :  { %8913 = vmatprep.mubr.msk.f32.mxu0 %vm58_vm0, %v10435_v19 }
 0x32f   :  { %8900 = vmatmul.mubr.msk.f32.gmra.mrb[16].mxu1 %vm58_vm0, %v10444_v21 }
 0x330   :  { %8914 = vmatmul.mubr.msk.f32.gmra.mrb[12].mxu0 %vm58_vm0, %v10444_v21  ;;  %8920 = vmatprep.mubr.msk.f32.mxu1 %vm334_vm1, %v823_v6 }
 0x331   :  { %8934 = vmatprep.mubr.msk.f32.mxu0 %vm334_vm1, %v833_v10 }
 0x3f2   :  { %v10548_v11 = vpop.f32.mrb[10].mxu1 }
 0x3f3   :  { %v10550_v12 = vpop.f32.mrb[11].mxu1 }
 0x3f6   :  { %v10552_v13 = vpop.f32.mrb[12].mxu1 }
 0x3f7   :  { %v10554_v14 = vpop.f32.mrb[13].mxu1 }
 0x3fe   :  { %v8898_v16 = vpop.f32.mrb[14].mxu1 }
 0x3ff   :  { %v917_v17 = vadd.f32 %v8898_v16, %v8041_v15  ;;  %v911_v20 = vpop.f32.mrb[15].mxu1  ;;  %v8912_v30 = vpop.f32.mrb[10].mxu0 }
 0x400   :  { %v912_v22 = vadd.f32 %v8041_v15, %v911_v20  ;;  %v1006_v31 = vadd.f32 %v8912_v30, %v8046_v29  ;;  %v1000_v32 = vpop.f32.mrb[11].mxu0  ;;  %v1407_v20 = vld [vmem:[#allocation2 + $0xd0] sm:$0xff] }
 0x401   :  { %v1001_v33 = vadd.f32 %v8046_v29, %v1000_v32 }
 0x402   :  { %v9656_v23 = vpack.c.bf16 %v917_v17, %v912_v22  ;;  %v8901_v24 = vpop.f32.mrb[16].mxu1  ;;  %v1408_v22 = vld [vmem:[#allocation2 + $0xd8] sm:$0xff] }
 0x403   :  { %v927_v25 = vadd.f32 %v8901_v24, %v8041_v15  ;;  %v921_v26 = vpop.f32.mrb[17].mxu1  ;;  %v9662_v34 = vpack.c.bf16 %v1006_v31, %v1001_v33  ;;  %v8915_v35 = vpop.f32.mrb[12].mxu0 }
 0x404   :  { %v922_v27 = vadd.f32 %v8041_v15, %v921_v26  ;;  %9658 = vmatprep.subr.msk.bf16.mxu1 %vm10475_vm2, %v9656_v23  ;;  %v1016_v36 = vadd.f32 %v8915_v35, %v8046_v29  ;;  %v1010_v37 = vpop.f32.mrb[13].mxu0 }
 0x405   :  { %9661 = vmatpush3.bf16.xpose.msk.msra.mxu1 %vm10475_vm2, %v9656_v23  ;;  %v1011_v38 = vadd.f32 %v8046_v29, %v1010_v37  ;;  %v9676_v23 = vpack.c.bf16 %v1408_v22, %v1407_v20  ;;  %v736_v37 = vld [vmem:[#allocation2 + $0xc8] sm:$0xff] }
 0x406   :  { %v9666_v28 = vpack.c.bf16 %v927_v25, %v922_v27  ;;  %9663 = vmatprep.subr.bf16.mxu1 %v9662_v34 }
 0x407   :  { %v10572_v39 = vpack.c.bf16 %v1016_v36, %v1011_v38  ;;  %v735_v36 = vld [vmem:[#allocation2 + $0xc0] sm:$0xff] }
 0x408   :  { %9668 = vmatprep.subr.msk.bf16.mxu0 %vm10475_vm2, %v9666_v28  ;;  %v9680_v38 = vpack.c.bf16 %v736_v37, %v735_v36 }
 0x409   :  { %9671 = vmatpush3.bf16.xpose.msk.msra.mxu0 %vm10475_vm2, %v9666_v28 }
 0x40a   :  { %9677 = vmatprep.subr.bf16.mxu0 %v9676_v23 }
 0x40c   :  { %8921 = vmatmul.mubr.msk.f32.vlgmr.msra.gmra.mrb[18].mxu1 %vm334_vm1, %v828_v3 }
 0x40d   :  { %9665 = vmatpush3.bf16.msra.mxu1 %v9662_v34 }
 0x40e   :  { %9673 = vmatprep.subr.bf16.mxu1 %v10572_v39 }
 0x410   :  { %8935 = vmatmul.mubr.msk.f32.vlgmr.msra.gmra.mrb[14].mxu0 %vm334_vm1, %v838_v8 }
 0x411   :  { %9679 = vmatpush3.bf16.msra.mxu0 %v9676_v23 }
 0x412   :  { %9681 = vmatprep.subr.bf16.mxu0 %v9680_v38 }
 0x4df   :  { %v8922_v40 = vpop.f32.mrb[18].mxu1 }
 0x4e0   :  { %v1107_v42 = vmul.f32 0.25, %v8922_v40  ;;  %v1097_v43 = vpop.f32.mrb[19].mxu1 }
 0x4e1   :  { %v1106_v44 = vmul.f32 0.25, %v1097_v43 }
 0x4e2   :  { %v1109_v45 = vadd.f32 %v10497_v56, %v1107_v42 }
 0x4e3   :  { %v8936_v46 = vpop.f32.mrb[14].mxu0  ;;  %v1108_v47 = vadd.f32 %v10497_v56, %v1106_v44 }
 0x4e4   :  { %v1301_v48 = vmul.f32 0.25, %v8936_v46  ;;  %v1291_v49 = vpop.f32.mrb[15].mxu0  ;;  %v1113_v51 = vsel %vm334_vm1, %v1109_v45, -inf }
 0x4e5   :  { %v1300_v52 = vmul.f32 0.25, %v1291_v49  ;;  %1114 = vmax.xlane.f32.xlu1 %v1113_v51  ;;  %v1110_v53 = vsel %vm334_vm1, %v1108_v47, -inf }
 0x4e6   :  { %1111 = vmax.xlane.f32.xlu0 %v1110_v53  ;;  %v1303_v54 = vadd.f32 %v10503_v62, %v1301_v48 }
 0x4e7   :  { %v1302_v55 = vadd.f32 %v10503_v62, %v1300_v52 }
 0x4e8   :  { %v1307_v57 = vsel %vm334_vm1, %v1303_v54, -inf }
 0x4e9   :  { %1308 = vmax.xlane.f32.xlu1 %v1307_v57  ;;  %v1304_v58 = vsel %vm334_vm1, %v1302_v55, -inf }
 0x4ea   :  { %1305 = vmax.xlane.f32.xlu0 %v1304_v58 }
 0x572   :  { %v1115_v56 = vpop.xlane.xlu1 %1114 }
 0x573   :  { %v1117_v50 = vsub.f32 %v1109_v45, %v1115_v56  ;;  %v1112_v59 = vpop.xlane.xlu0 %1111 }
 0x574   :  { %v1116_v60 = vsub.f32 %v1108_v47, %v1112_v59 }
 0x575   :  { %v1120_v61 = vmul.f32 1.442695, %v1117_v50 }
 0x576   :  { %v1118_v63 = vmul.f32 1.442695, %v1116_v60  ;;  %v1309_v0 = vpop.xlane.xlu1 %1308 }
 0x577   :  { %10112 = vpow2.f32 %v1120_v61  ;;  %v1311_v1 = vsub.f32 %v1303_v54, %v1309_v0  ;;  %v1306_v2 = vpop.xlane.xlu0 %1305  ;;  %v1695_v61 = vld [vmem:[#allocation2 + $0xe0] sm:$0xff] }
 0x578   :  { %10114 = vpow2.f32 %v1118_v63  ;;  %v1310_v3 = vsub.f32 %v1302_v55, %v1306_v2  ;;  %v1696_v63 = vld [vmem:[#allocation2 + $0xe8] sm:$0xff]  ;;  %v1698_v2 = vld [vmem:[#allocation2 + $0xf8] sm:$0xff] }
 0x579   :  { %v1314_v4 = vmul.f32 1.442695, %v1311_v1  ;;  %v9684_v0 = vpack.c.bf16 %v1696_v63, %v1695_v61  ;;  %v1697_v1 = vld [vmem:[#allocation2 + $0xf0] sm:$0xff]  ;;  %v1705_v61 = vld [vmem:[#allocation2 + $0x128] sm:$0xff] }
 0x57a   :  { %v1312_v62 = vmul.f32 1.442695, %v1310_v3  ;;  %v9688_v3 = vpack.c.bf16 %v1698_v2, %v1697_v1  ;;  %v1707_v1 = vld [vmem:[#allocation2 + $0x138] sm:$0xff] }
 0x57b   :  { %10116 = vpow2.f32 %v1314_v4 }
 0x57c   :  { %10118 = vpow2.f32 %v1312_v62 }
 0x581   :  { %v10113_v6 = vpop.eup %10112 }
 0x582   :  { %v10115_v7 = vpop.eup %10114  ;;  %v1125_v8 = vsel %vm334_vm1, %v10113_v6, 0.0 }
 0x583   :  { %1126 = vadd.xlane.f32.xlu1 %v1125_v8  ;;  %v1122_v9 = vsel %vm334_vm1, %v10115_v7, 0.0 }
 0x584   :  { %1123 = vadd.xlane.f32.xlu0 %v1122_v9 }
 0x585   :  { %v10117_v10 = vpop.eup %10116 }
 0x586   :  { %v10119_v15 = vpop.eup %10118  ;;  %v1319_v16 = vsel %vm334_vm1, %v10117_v10, 0.0 }
 0x587   :  { %1320 = vadd.xlane.f32.xlu1 %v1319_v16  ;;  %v1316_v17 = vsel %vm334_vm1, %v10119_v15, 0.0 }
 0x588   :  { %1317 = vadd.xlane.f32.xlu0 %v1316_v17 }
 0x610   :  { %v1127_v24 = vpop.xlane.xlu1 %1126 }
 0x611   :  { %10120 = vrcp.f32 %v1127_v24  ;;  %v1124_v25 = vpop.xlane.xlu0 %1123 }
 0x612   :  { %10122 = vrcp.f32 %v1124_v25 }
 0x614   :  { %v1321_v26 = vpop.xlane.xlu1 %1320 }
 0x615   :  { %10124 = vrcp.f32 %v1321_v26  ;;  %v1318_v27 = vpop.xlane.xlu0 %1317 }
 0x616   :  { %10126 = vrcp.f32 %v1318_v27 }
 0x61b   :  { %v10121_v28 = vpop.eup %10120 }
 0x61c   :  { %v10123_v29 = vpop.eup %10122  ;;  %v1131_v31 = vmul.f32 %v10121_v28, %v10113_v6 }
 0x61d   :  { %v1130_v30 = vmul.f32 %v10123_v29, %v10115_v7 }
 0x61f   :  { %v10125_v32 = vpop.eup %10124  ;;  %8927 = vmatprep.mubr.msk.f32.mxu1 %vm334_vm1, %v1130_v30 }
 0x620   :  { %v10127_v33 = vpop.eup %10126  ;;  %8928 = vmatmul.mubr.msk.f32.vlgmr.msra.gmra.mrb[20].mxu1 %vm334_vm1, %v1131_v31  ;;  %v1325_v35 = vmul.f32 %v10125_v32, %v10117_v10 }
 0x621   :  { %9675 = vmatpush3.bf16.msra.mxu1 %v10572_v39  ;;  %v1324_v34 = vmul.f32 %v10127_v33, %v10119_v15  ;;  %v8071_v39 = vld [vmem:[%s11621_s3 + $0x6] ss:$0 sm:$0xff] }
 0x622   :  { %9685 = vmatprep.subr.bf16.mxu1 %v9684_v0 }
 0x623   :  { %8941 = vmatprep.mubr.msk.f32.mxu1 %vm334_vm1, %v1324_v34 }
 0x624   :  { %8942 = vmatmul.mubr.msk.f32.vlgmr.msra.gmra.mrb[22].mxu1 %vm334_vm1, %v1325_v35 }
 0x625   :  { %9687 = vmatpush3.bf16.msra.mxu1 %v9684_v0  ;;  %v1706_v0 = vld [vmem:[#allocation2 + $0x130] sm:$0xff] }
 0x626   :  { %9689 = vmatprep.subr.bf16.mxu1 %v9688_v3  ;;  %v9704_v2 = vpack.c.bf16 %v1707_v1, %v1706_v0 }
 0x629   :  { %9691 = vmatpush3.bf16.msra.mxu1 %v9688_v3  ;;  %v8074_v3 = vld [vmem:[%s11621_s3 + $0x7] ss:$0 sm:$0xff] }
 0x6f3   :  { %v8929_v40 = vpop.f32.mrb[20].mxu1 }
 0x6f4   :  { %v1204_v42 = vpop.f32.mrb[21].mxu1 }
 0x6f5   :  { %8948 = vmatprep.mubr.msk.f32.mxu0 %vm334_vm1, %v1204_v42 }
 0x6f6   :  { %8949 = vmatmul.mubr.msk.f32.vlgmr.msra.gmra.mrb[16].mxu0 %vm334_vm1, %v8929_v40 }
 0x6f7   :  { %v8943_v43 = vpop.f32.mrb[22].mxu1  ;;  %9683 = vmatpush3.bf16.msra.mxu0 %v9680_v38 }
 0x6f8   :  { %v1398_v44 = vpop.f32.mrb[23].mxu1 }
 0x6f9   :  { %8951 = vmatprep.mubr.msk.f32.mxu0 %vm334_vm1, %v1398_v44  ;;  %v8072_v44 = vld [vmem:[%s11621_s3 + $0x9] ss:$0 sm:$0xff] }
 0x6fa   :  { %8952 = vmatmul.mubr.msk.f32.gmra.mrb[18].mxu0 %vm334_vm1, %v8943_v43 }
 0x6fb   :  { %8958 = vmatprep.mubr.msk.f32.mxu0 %vm334_vm1, %v10550_v12 }
 0x6fe   :  { %8959 = vmatmul.mubr.msk.f32.vlgmr.msra.gmra.mrb[16].mxu0 %vm334_vm1, %v10548_v11 }
 0x6ff   :  { %8961 = vmatprep.mubr.msk.f32.mxu0 %vm334_vm1, %v10554_v14 }
 0x702   :  { %8962 = vmatmul.mubr.msk.f32.gmra.mrb[18].mxu0 %vm334_vm1, %v10552_v13 }
 0x7d1   :  { %v8960_v45 = vpop.f32.mrb[16].mxu0 }
 0x7d2   :  { %v1611_v46 = vadd.f32 %v8960_v45, %v8071_v39  ;;  %v1584_v47 = vpop.f32.mrb[17].mxu0 }
 0x7d3   :  { %v1610_v48 = vadd.f32 %v8071_v39, %v1584_v47  ;;  %v8073_v47 = vld [vmem:[%s11621_s3 + $0xa] ss:$0 sm:$0xff] }
 0x7d4   :  { %v10608_v49 = vadd.f32 %v1611_v46, %v10430_v18 }
 0x7d5   :  { %v10611_v12 = vadd.f32 %v1610_v48, %v10421_v5  ;;  %v8963_v11 = vpop.f32.mrb[18].mxu0 }
 0x7d6   :  { %v1613_v51 = vadd.f32 %v8963_v11, %v8071_v39  ;;  %v1594_v14 = vpop.f32.mrb[19].mxu0  ;;  %v1621_v13 = vsel %vm58_vm0, %v10608_v49, 0.0  ;;  %v1636_v52 = vmul.f32 %v10608_v49, %v10608_v49 }
 0x7d7   :  { %v1612_v53 = vadd.f32 %v8071_v39, %v1594_v14  ;;  %1622 = vadd.xlane.f32.xlu1 %v1621_v13  ;;  %v1618_v54 = vsel %vm58_vm0, %v10611_v12, 0.0  ;;  %v1635_v18 = vmul.f32 %v10611_v12, %v10611_v12 }
 0x7d8   :  { %1619 = vadd.xlane.f32.xlu0 %v1618_v54  ;;  %v10622_v5 = vadd.f32 %v1613_v51, %v10444_v21  ;;  %v1642_v55 = vsel %vm58_vm0, %v1636_v52, 0.0 }
 0x7d9   :  { %v10626_v57 = vadd.f32 %v1612_v53, %v10435_v19  ;;  %v1639_v58 = vsel %vm58_vm0, %v1635_v18, 0.0 }
 0x7da   :  { %v1627_v56 = vsel %vm58_vm0, %v10622_v5, 0.0  ;;  %v1638_v50 = vmul.f32 %v10622_v5, %v10622_v5 }
 0x7db   :  { %1643 = vadd.xlane.f32.xlu1 %v1642_v55  ;;  %v1624_v21 = vsel %vm58_vm0, %v10626_v57, 0.0  ;;  %v1637_v59 = vmul.f32 %v10626_v57, %v10626_v57 }
 0x7dc   :  { %1640 = vadd.xlane.f32.xlu0 %v1639_v58  ;;  %v1648_v19 = vsel %vm58_vm0, %v1638_v50, 0.0 }
 0x7dd   :  { %v1645_v60 = vsel %vm58_vm0, %v1637_v59, 0.0  ;;  %v1703_v59 = vld [vmem:[#allocation2 + $0x118] sm:$0xff] }
 0x7df   :  { %1628 = vadd.xlane.f32.xlu1 %v1627_v56 }
 0x7e0   :  { %1625 = vadd.xlane.f32.xlu0 %v1624_v21  ;;  %v1702_v21 = vld [vmem:[#allocation2 + $0x110] sm:$0xff] }
 0x7e3   :  { %1649 = vadd.xlane.f32.xlu1 %v1648_v19  ;;  %v9696_v19 = vpack.c.bf16 %v1703_v59, %v1702_v21 }
 0x7e4   :  { %1646 = vadd.xlane.f32.xlu0 %v1645_v60  ;;  %v1704_v60 = vld [vmem:[#allocation2 + $0x120] sm:$0xff] }
 0x7e5   :  { %v9700_v63 = vpack.c.bf16 %v1705_v61, %v1704_v60 }
 0x864   :  { %v1623_v4 = vpop.xlane.xlu1 %1622 }
 0x865   :  { %v1632_v62 = vmul.f32 0.03125, %v1623_v4  ;;  %v1620_v6 = vpop.xlane.xlu0 %1619 }
 0x866   :  { %v1631_v7 = vmul.f32 0.03125, %v1620_v6 }
 0x867   :  { %v1656_v9 = vmul.f32 %v1632_v62, %v1632_v62  ;;  %v1664_v40 = vsub.f32 %v10608_v49, %v1632_v62 }
 0x868   :  { %v1644_v8 = vpop.xlane.xlu1 %1643  ;;  %v1655_v16 = vmul.f32 %v1631_v7, %v1631_v7  ;;  %v1663_v43 = vsub.f32 %v10611_v12, %v1631_v7 }
 0x869   :  { %v1652_v10 = vmul.f32 0.03125, %v1644_v8  ;;  %v1641_v15 = vpop.xlane.xlu0 %1640 }
 0x86a   :  { %v1651_v17 = vmul.f32 0.03125, %v1641_v15 }
 0x86b   :  { %v1660_v20 = vsub.f32 %v1652_v10, %v1656_v9 }
 0x86c   :  { %v1659_v22 = vsub.f32 %v1651_v17, %v1655_v16  ;;  %v1629_v23 = vpop.xlane.xlu1 %1628 }
 0x86d   :  { %v1668_v24 = vadd.f32 1e-12, %v1660_v20  ;;  %v1634_v25 = vmul.f32 0.03125, %v1629_v23  ;;  %v1626_v26 = vpop.xlane.xlu0 %1625 }
 0x86e   :  { %v1667_v27 = vadd.f32 1e-12, %v1659_v22  ;;  %v1633_v28 = vmul.f32 0.03125, %v1626_v26 }
 0x86f   :  { %10128 = vrsqrt.f32 %v1668_v24  ;;  %v1658_v30 = vmul.f32 %v1634_v25, %v1634_v25  ;;  %v1666_v49 = vsub.f32 %v10622_v5, %v1634_v25  ;;  %v1700_v5 = vld [vmem:[#allocation2 + $0x100] sm:$0xff] }
 0x870   :  { %10130 = vrsqrt.f32 %v1667_v27  ;;  %v1650_v29 = vpop.xlane.xlu1 %1649  ;;  %v1657_v33 = vmul.f32 %v1633_v28, %v1633_v28  ;;  %v1665_v13 = vsub.f32 %v10626_v57, %v1633_v28  ;;  %v1701_v57 = vld [vmem:[#allocation2 + $0x108] sm:$0xff] }
 0x871   :  { %v1654_v31 = vmul.f32 0.03125, %v1650_v29  ;;  %v1647_v32 = vpop.xlane.xlu0 %1646  ;;  %v9692_v50 = vpack.c.bf16 %v1701_v57, %v1700_v5 }
 0x872   :  { %v1653_v34 = vmul.f32 0.03125, %v1647_v32 }
 0x873   :  { %v1662_v35 = vsub.f32 %v1654_v31, %v1658_v30  ;;  %9693 = vmatprep.subr.bf16.mxu1 %v9692_v50 }
 0x874   :  { %v1661_v36 = vsub.f32 %v1653_v34, %v1657_v33 }
 0x875   :  { %v1670_v37 = vadd.f32 1e-12, %v1662_v35 }
 0x876   :  { %v1669_v38 = vadd.f32 1e-12, %v1661_v36 }
 0x877   :  { %10132 = vrsqrt.f32 %v1670_v37 }
 0x878   :  { %10134 = vrsqrt.f32 %v1669_v38 }
 0x879   :  { %v10129_v42 = vpop.eup %10128 }
 0x87a   :  { %v10131_v39 = vpop.eup %10130  ;;  %v1676_v45 = vmul.f32 %v10129_v42, %v1664_v40 }
 0x87b   :  { %v1675_v46 = vmul.f32 %v10131_v39, %v1663_v43 }
 0x87c   :  { %v1684_v48 = vmul.f32 %v8072_v44, %v1676_v45 }
 0x87d   :  { %v1683_v11 = vmul.f32 %v8072_v44, %v1675_v46 }
 0x87e   :  { %v10650_v14 = vadd.f32 %v8073_v47, %v1684_v48 }
 0x87f   :  { %v10647_v51 = vadd.f32 %v8073_v47, %v1683_v11 }
 0x881   :  { %v10133_v12 = vpop.eup %10132  ;;  %8972 = vmatprep.mubr.msk.f32.mxu1 %vm58_vm0, %v10647_v51 }
 0x882   :  { %v10135_v52 = vpop.eup %10134  ;;  %8973 = vmatmul.mubr.msk.f32.vlgmr.msra.gmra.mrb[24].mxu1 %vm58_vm0, %v10650_v14  ;;  %v1678_v53 = vmul.f32 %v10133_v12, %v1666_v49 }
 0x883   :  { %v1677_v54 = vmul.f32 %v10135_v52, %v1665_v13  ;;  %9695 = vmatpush3.bf16.msra.mxu1 %v9692_v50 }
 0x884   :  { %v1686_v18 = vmul.f32 %v8072_v44, %v1678_v53  ;;  %9697 = vmatprep.subr.bf16.mxu1 %v9696_v19 }
 0x885   :  { %v1685_v55 = vmul.f32 %v8072_v44, %v1677_v54 }
 0x886   :  { %v10659_v56 = vadd.f32 %v8073_v47, %v1686_v18  ;;  %v8079_v18 = vld [vmem:[%s11621_s3 + $0x8] ss:$0 sm:$0xff] }
 0x887   :  { %v10657_v58 = vadd.f32 %v8073_v47, %v1685_v55  ;;  %9699 = vmatpush3.bf16.msra.mxu1 %v9696_v19 }
 0x888   :  { %9701 = vmatprep.subr.bf16.mxu1 %v9700_v63 }
 0x889   :  { %8975 = vmatprep.mubr.msk.f32.mxu1 %vm58_vm0, %v10657_v58 }
 0x88a   :  { %8976 = vmatmul.mubr.msk.f32.gmra.mrb[26].mxu1 %vm58_vm0, %v10659_v56 }
 0x88b   :  { %9703 = vmatpush3.bf16.msra.mxu1 %v9700_v63 }
 0x88c   :  { %9705 = vmatprep.subr.bf16.mxu1 %v9704_v2 }
 0x88f   :  { %9707 = vmatpush3.bf16.msra.mxu1 %v9704_v2 }
 0x955   :  { %v8974_v4 = vpop.f32.mrb[24].mxu1 }
 0x956   :  { %v1799_v62 = vadd.f32 %v8974_v4, %v8074_v3  ;;  %v1793_v6 = vpop.f32.mrb[25].mxu1 }
 0x957   :  { %v1794_v7 = vadd.f32 %v8074_v3, %v1793_v6 }
 0x958   :  { %v1817_v8 = vmul.f32 0.044715, %v1799_v62  ;;  %v1813_v45 = vmul.f32 0.5, %v1799_v62 }
 0x959   :  { %v1816_v9 = vmul.f32 0.044715, %v1794_v7  ;;  %v1812_v44 = vmul.f32 0.5, %v1794_v7 }
 0x95a   :  { %v1821_v10 = vmul.f32 %v1817_v8, %v1799_v62 }
 0x95b   :  { %v1820_v15 = vmul.f32 %v1816_v9, %v1794_v7 }
 0x95c   :  { %v1825_v16 = vmul.f32 %v1821_v10, %v1799_v62  ;;  %v2031_v10 = vld [vmem:[#allocation2 + $0x140] sm:$0xff] }
 0x95d   :  { %v1824_v17 = vmul.f32 %v1820_v15, %v1794_v7  ;;  %v8977_v20 = vpop.f32.mrb[26].mxu1  ;;  %v2032_v15 = vld [vmem:[#allocation2 + $0x148] sm:$0xff] }
 0x95e   :  { %v1829_v22 = vadd.f32 %v1825_v16, %v1799_v62  ;;  %v1809_v23 = vadd.f32 %v8977_v20, %v8074_v3  ;;  %v1803_v24 = vpop.f32.mrb[27].mxu1  ;;  %v2039_v16 = vld [vmem:[#allocation2 + $0x180] sm:$0xff]  ;;  %v2040_v20 = vld [vmem:[#allocation2 + $0x188] sm:$0xff] }
 0x95f   :  { %v1828_v25 = vadd.f32 %v1824_v17, %v1794_v7  ;;  %v1804_v26 = vadd.f32 %v8074_v3, %v1803_v24  ;;  %v9708_v17 = vpack.c.bf16 %v2032_v15, %v2031_v10  ;;  %v2034_v24 = vld [vmem:[#allocation2 + $0x158] sm:$0xff] }
 0x960   :  { %v1833_v27 = vmul.f32 0.7978846, %v1829_v22  ;;  %v1819_v28 = vmul.f32 0.044715, %v1809_v23  ;;  %v1815_v52 = vmul.f32 0.5, %v1809_v23  ;;  %v9724_v22 = vpack.c.bf16 %v2040_v20, %v2039_v16 }
 0x961   :  { %v1818_v29 = vmul.f32 0.044715, %v1804_v26  ;;  %v1832_v30 = vmul.f32 0.7978846, %v1828_v25  ;;  %v1814_v12 = vmul.f32 0.5, %v1804_v26  ;;  %9709 = vmatprep.subr.bf16.mxu0 %v9708_v17  ;;  %v2041_v25 = vld [vmem:[#allocation2 + $0x190] sm:$0xff] }
 0x962   :  { %10136 = vtanh.f32 %v1833_v27  ;;  %v1823_v31 = vmul.f32 %v1819_v28, %v1809_v23  ;;  %9725 = vmatprep.subr.bf16.mxu1 %v9724_v22  ;;  %9711 = vmatpush3.bf16.msra.mxu0 %v9708_v17  ;;  %v2042_v27 = vld [vmem:[#allocation2 + $0x198] sm:$0xff] }
 0x963   :  { %v1822_v32 = vmul.f32 %v1818_v29, %v1804_v26  ;;  %10138 = vtanh.f32 %v1832_v30  ;;  %v9728_v28 = vpack.c.bf16 %v2042_v27, %v2041_v25  ;;  %v2035_v29 = vld [vmem:[#allocation2 + $0x160] sm:$0xff]  ;;  %v2036_v30 = vld [vmem:[#allocation2 + $0x168] sm:$0xff] }
 0x964   :  { %v1827_v33 = vmul.f32 %v1823_v31, %v1809_v23  ;;  %v9716_v31 = vpack.c.bf16 %v2036_v30, %v2035_v29 }
 0x965   :  { %v1826_v34 = vmul.f32 %v1822_v32, %v1804_v26 }
 0x966   :  { %v1831_v35 = vadd.f32 %v1827_v33, %v1809_v23  ;;  %v2033_v23 = vld [vmem:[#allocation2 + $0x150] sm:$0xff] }
 0x967   :  { %v1830_v36 = vadd.f32 %v1826_v34, %v1804_v26  ;;  %v9712_v26 = vpack.c.bf16 %v2034_v24, %v2033_v23  ;;  %v8089_v23 = vld [vmem:[%s11621_s3 + $0x10] ss:$0 sm:$0xff] }
 0x968   :  { %v1835_v37 = vmul.f32 0.7978846, %v1831_v35 }
 0x969   :  { %v1834_v38 = vmul.f32 0.7978846, %v1830_v36  ;;  %9713 = vmatprep.subr.bf16.mxu0 %v9712_v26 }
 0x96a   :  { %10140 = vtanh.f32 %v1835_v37  ;;  %9715 = vmatpush3.bf16.msra.mxu0 %v9712_v26 }
 0x96b   :  { %10142 = vtanh.f32 %v1834_v38  ;;  %9717 = vmatprep.subr.bf16.mxu0 %v9716_v31 }
 0x96c   :  { %v10137_v40 = vpop.eup %10136 }
 0x96d   :  { %v10139_v42 = vpop.eup %10138  ;;  %v1841_v43 = vadd.f32 1.0, %v10137_v40 }
 0x96e   :  { %v1840_v39 = vadd.f32 1.0, %v10139_v42 }
 0x96f   :  { %v1845_v47 = vmul.f32 %v1841_v43, %v1813_v45 }
 0x970   :  { %v1844_v46 = vmul.f32 %v1840_v39, %v1812_v44 }
 0x972   :  { %8994 = vmatprep.mubr.msk.f32.mxu1 %vm1852_vm3, %v1844_v46 }
 0x973   :  { %8995 = vmatmul.mubr.msk.f32.vlgmr.msra.gmra.mrb[28].mxu1 %vm1852_vm3, %v1845_v47 }
 0x974   :  { %v10141_v48 = vpop.eup %10140  ;;  %9727 = vmatpush3.bf16.msra.mxu1 %v9724_v22  ;;  %v8099_v22 = vld [vmem:[%s11621_s3 + $0x12] ss:$0 sm:$0xff] }
 0x975   :  { %v10143_v11 = vpop.eup %10142  ;;  %v1843_v49 = vadd.f32 1.0, %v10141_v48  ;;  %9729 = vmatprep.subr.bf16.mxu1 %v9728_v28 }
 0x976   :  { %v1842_v13 = vadd.f32 1.0, %v10143_v11 }
 0x977   :  { %v1847_v54 = vmul.f32 %v1843_v49, %v1815_v52 }
 0x978   :  { %v1846_v53 = vmul.f32 %v1842_v13, %v1814_v12  ;;  %9731 = vmatpush3.bf16.msra.mxu1 %v9728_v28 }
 0x97a   :  { %8997 = vmatprep.mubr.msk.f32.mxu1 %vm1852_vm3, %v1846_v53 }
 0x97b   :  { %8998 = vmatmul.mubr.msk.f32.gmra.mrb[30].mxu1 %vm1852_vm3, %v1847_v54 }
 0xa46   :  { %v8996_v55 = vpop.f32.mrb[28].mxu1 }
 0xa47   :  { %v1937_v5 = vadd.f32 %v8996_v55, %v8079_v18  ;;  %v1931_v57 = vpop.f32.mrb[29].mxu1 }
 0xa48   :  { %v1932_v50 = vadd.f32 %v8079_v18, %v1931_v57 }
 0xa49   :  { %v10676_v21 = vadd.f32 %v1937_v5, %v10650_v14 }
 0xa4a   :  { %v10679_v59 = vadd.f32 %v1932_v50, %v10647_v51 }
 0xa4b   :  { %v1957_v19 = vsel %vm58_vm0, %v10676_v21, 0.0  ;;  %v1971_v60 = vmul.f32 %v10676_v21, %v10676_v21 }
 0xa4c   :  { %1958 = vadd.xlane.f32.xlu1 %v1957_v19  ;;  %v1954_v61 = vsel %vm58_vm0, %v10679_v59, 0.0  ;;  %v1970_v63 = vmul.f32 %v10679_v59, %v10679_v59 }
 0xa4d   :  { %1955 = vadd.xlane.f32.xlu0 %v1954_v61  ;;  %v1977_v51 = vsel %vm58_vm0, %v1971_v60, 0.0 }
 0xa4e   :  { %v8999_v0 = vpop.f32.mrb[30].mxu1  ;;  %v1974_v3 = vsel %vm58_vm0, %v1970_v63, 0.0  ;;  %v8084_v63 = vld [vmem:[%s11621_s3 + $0xb] ss:$0 sm:$0xff] }
 0xa4f   :  { %v1947_v14 = vadd.f32 %v8999_v0, %v8079_v18  ;;  %v1941_v1 = vpop.f32.mrb[31].mxu1 }
 0xa50   :  { %v1942_v2 = vadd.f32 %v8079_v18, %v1941_v1  ;;  %1978 = vadd.xlane.f32.xlu1 %v1977_v51  ;;  %v8085_v51 = vld [vmem:[%s11621_s3 + $0xc] ss:$0 sm:$0xff] }
 0xa51   :  { %v10692_v4 = vadd.f32 %v1947_v14, %v10659_v56  ;;  %1975 = vadd.xlane.f32.xlu0 %v1974_v3 }
 0xa52   :  { %v10695_v62 = vadd.f32 %v1942_v2, %v10657_v58 }
 0xa53   :  { %v1963_v6 = vsel %vm58_vm0, %v10692_v4, 0.0  ;;  %v1973_v7 = vmul.f32 %v10692_v4, %v10692_v4 }
 0xa54   :  { %1964 = vadd.xlane.f32.xlu1 %v1963_v6  ;;  %v1960_v8 = vsel %vm58_vm0, %v10695_v62, 0.0  ;;  %v1972_v9 = vmul.f32 %v10695_v62, %v10695_v62  ;;  %v2037_v6 = vld [vmem:[#allocation2 + $0x170] sm:$0xff] }
 0xa55   :  { %1961 = vadd.xlane.f32.xlu0 %v1960_v8  ;;  %v1983_v56 = vsel %vm58_vm0, %v1973_v7, 0.0  ;;  %v2038_v7 = vld [vmem:[#allocation2 + $0x178] sm:$0xff] }
 0xa56   :  { %v1980_v58 = vsel %vm58_vm0, %v1972_v9, 0.0  ;;  %v9720_v9 = vpack.c.bf16 %v2038_v7, %v2037_v6 }
 0xa58   :  { %1984 = vadd.xlane.f32.xlu1 %v1983_v56 }
 0xa59   :  { %1981 = vadd.xlane.f32.xlu0 %v1980_v58 }
 0xad9   :  { %v1959_v32 = vpop.xlane.xlu1 %1958 }
 0xada   :  { %v1967_v33 = vmul.f32 0.03125, %v1959_v32  ;;  %v1956_v34 = vpop.xlane.xlu0 %1955 }
 0xadb   :  { %v1966_v35 = vmul.f32 0.03125, %v1956_v34 }
 0xadc   :  { %v1991_v37 = vmul.f32 %v1967_v33, %v1967_v33  ;;  %v1999_v19 = vsub.f32 %v10676_v21, %v1967_v33 }
 0xadd   :  { %v1979_v36 = vpop.xlane.xlu1 %1978  ;;  %v1990_v42 = vmul.f32 %v1966_v35, %v1966_v35  ;;  %v1998_v61 = vsub.f32 %v10679_v59, %v1966_v35 }
 0xade   :  { %v1987_v38 = vmul.f32 0.03125, %v1979_v36  ;;  %v1976_v40 = vpop.xlane.xlu0 %1975 }
 0xadf   :  { %v1986_v43 = vmul.f32 0.03125, %v1976_v40  ;;  %v8094_v40 = vld [vmem:[%s11621_s3 + $0x11] ss:$0 sm:$0xff] }
 0xae0   :  { %v1995_v44 = vsub.f32 %v1987_v38, %v1991_v37 }
 0xae1   :  { %v1994_v39 = vsub.f32 %v1986_v43, %v1990_v42  ;;  %v1965_v45 = vpop.xlane.xlu1 %1964 }
 0xae2   :  { %v2003_v46 = vadd.f32 1e-12, %v1995_v44  ;;  %v1969_v47 = vmul.f32 0.03125, %v1965_v45  ;;  %v1962_v48 = vpop.xlane.xlu0 %1961 }
 0xae3   :  { %v2002_v11 = vadd.f32 1e-12, %v1994_v39  ;;  %v1968_v49 = vmul.f32 0.03125, %v1962_v48 }
 0xae4   :  { %10144 = vrsqrt.f32 %v2003_v46  ;;  %v1993_v13 = vmul.f32 %v1969_v47, %v1969_v47  ;;  %v2001_v59 = vsub.f32 %v10692_v4, %v1969_v47 }
 0xae5   :  { %10146 = vrsqrt.f32 %v2002_v11  ;;  %v1985_v12 = vpop.xlane.xlu1 %1984  ;;  %v1992_v54 = vmul.f32 %v1968_v49, %v1968_v49  ;;  %v2000_v58 = vsub.f32 %v10695_v62, %v1968_v49  ;;  %v2716_v49 = vld [vmem:[#allocation2 + $0x1a0] sm:$0xff] }
 0xae6   :  { %v1989_v52 = vmul.f32 0.03125, %v1985_v12  ;;  %v1982_v53 = vpop.xlane.xlu0 %1981  ;;  %v2717_v12 = vld [vmem:[#allocation2 + $0x1a8] sm:$0xff] }
 0xae7   :  { %v1988_v18 = vmul.f32 0.03125, %v1982_v53  ;;  %v9752_v53 = vpack.c.bf16 %v2717_v12, %v2716_v49 }
 0xae8   :  { %v1997_v55 = vsub.f32 %v1989_v52, %v1993_v13 }
 0xae9   :  { %v1996_v5 = vsub.f32 %v1988_v18, %v1992_v54  ;;  %v2718_v18 = vld [vmem:[#allocation2 + $0x1b0] sm:$0xff] }
 0xaea   :  { %v2005_v57 = vadd.f32 1e-12, %v1997_v55  ;;  %v2719_v55 = vld [vmem:[#allocation2 + $0x1b8] sm:$0xff] }
 0xaeb   :  { %v2004_v50 = vadd.f32 1e-12, %v1996_v5 }
 0xaec   :  { %10148 = vrsqrt.f32 %v2005_v57  ;;  %v9756_v57 = vpack.c.bf16 %v2719_v55, %v2718_v18 }
 0xaed   :  { %10150 = vrsqrt.f32 %v2004_v50  ;;  %v2724_v50 = vld [vmem:[#allocation2 + $0x1e0] sm:$0xff] }
 0xaee   :  { %v10145_v60 = vpop.eup %10144 }
 0xaef   :  { %v10147_v0 = vpop.eup %10146  ;;  %v2011_v14 = vmul.f32 %v10145_v60, %v1999_v19  ;;  %v2725_v19 = vld [vmem:[#allocation2 + $0x1e8] sm:$0xff] }
 0xaf0   :  { %v2010_v1 = vmul.f32 %v10147_v0, %v1998_v61  ;;  %v9768_v60 = vpack.c.bf16 %v2725_v19, %v2724_v50  ;;  %v2726_v61 = vld [vmem:[#allocation2 + $0x1f0] sm:$0xff] }
 0xaf1   :  { %v2019_v2 = vmul.f32 %v8084_v63, %v2011_v14 }
 0xaf2   :  { %v2018_v3 = vmul.f32 %v8084_v63, %v2010_v1 }
 0xaf3   :  { %v10717_v8 = vadd.f32 %v8085_v51, %v2019_v2 }
 0xaf4   :  { %v10715_v21 = vadd.f32 %v8085_v51, %v2018_v3  ;;  %v10792_v3 = vld [vmem:[%s11619_s1] ss:$0 sm:$0xff] }
 0xaf6   :  { %v10149_v56 = vpop.eup %10148  ;;  %9008 = vmatprep.mubr.msk.f32.mxu0 %vm58_vm0, %v10715_v21  ;;  %9036 = vmatprep.mubr.msk.f32.mxu1 %vm58_vm0, %v10715_v21 }
 0xaf7   :  { %v10151_v10 = vpop.eup %10150  ;;  %v2013_v15 = vmul.f32 %v10149_v56, %v2001_v59  ;;  %9009 = vmatmul.mubr.msk.f32.vlgmr.msra.gmra.mrb[20].mxu0 %vm58_vm0, %v10717_v8  ;;  %9037 = vmatmul.mubr.msk.f32.vlgmr.msra.gmra.mrb[32].mxu1 %vm58_vm0, %v10717_v8 }
 0xaf8   :  { %v2012_v16 = vmul.f32 %v10151_v10, %v2000_v58  ;;  %9719 = vmatpush3.bf16.msra.mxu0 %v9716_v31 }
 0xaf9   :  { %v2021_v4 = vmul.f32 %v8084_v63, %v2013_v15  ;;  %9721 = vmatprep.subr.bf16.mxu0 %v9720_v9 }
 0xafa   :  { %v2020_v17 = vmul.f32 %v8084_v63, %v2012_v16  ;;  %v2727_v63 = vld [vmem:[#allocation2 + $0x1f8] sm:$0xff]  ;;  %v10801_v16 = vld [vmem:[%s11619_s1 + $0x1] ss:$0 sm:$0xff] }
 0xafb   :  { %v10731_v20 = vadd.f32 %v8085_v51, %v2021_v4  ;;  %v9772_v0 = vpack.c.bf16 %v2727_v63, %v2726_v61 }
 0xafc   :  { %v10729_v62 = vadd.f32 %v8085_v51, %v2020_v17  ;;  %9723 = vmatpush3.bf16.msra.mxu0 %v9720_v9 }
 0xafe   :  { %9011 = vmatprep.mubr.msk.f32.mxu0 %vm58_vm0, %v10729_v62  ;;  %9039 = vmatprep.mubr.msk.f32.mxu1 %vm58_vm0, %v10729_v62 }
 0xaff   :  { %9012 = vmatmul.mubr.msk.f32.gmra.mrb[22].mxu0 %vm58_vm0, %v10731_v20  ;;  %9040 = vmatmul.mubr.msk.f32.gmra.mrb[34].mxu1 %vm58_vm0, %v10731_v20 }
 0xb00   :  { %9022 = vmatprep.mubr.msk.f32.mxu0 %vm58_vm0, %v10715_v21 }
 0xb03   :  { %9023 = vmatmul.mubr.msk.f32.vlgmr.msra.gmra.mrb[24].mxu0 %vm58_vm0, %v10717_v8 }
 0xb04   :  { %9025 = vmatprep.mubr.msk.f32.mxu0 %vm58_vm0, %v10729_v62 }
 0xb07   :  { %9026 = vmatmul.mubr.msk.f32.gmra.mrb[26].mxu0 %vm58_vm0, %v10731_v20 }
 0xbca   :  { %v9010_v24 = vpop.f32.mrb[20].mxu0  ;;  %v9038_v25 = vpop.f32.mrb[32].mxu1 }
 0xbcb   :  { %v2313_v26 = vadd.f32 %v9038_v25, %v8099_v22  ;;  %v2129_v27 = vpop.f32.mrb[21].mxu0  ;;  %v2307_v28 = vpop.f32.mrb[33].mxu1  ;;  %v2135_v54 = vadd.f32 %v9010_v24, %v8089_v23  ;;  %v8119_v24 = vld [vmem:[%s11621_s3 + $0x13] ss:$0 sm:$0xff] }
 0xbcc   :  { %v2130_v29 = vadd.f32 %v8089_v23, %v2129_v27  ;;  %v2308_v30 = vadd.f32 %v8099_v22, %v2307_v28 }
 0xbce   :  { %v9738_v31 = vpack.c.bf16 %v2313_v26, %v2308_v30  ;;  %9046 = vmatprep.mubr.msk.f32.mxu0 %vm334_vm1, %v2130_v29 }
 0xbd2   :  { %v9013_v32 = vpop.f32.mrb[22].mxu0  ;;  %v9041_v33 = vpop.f32.mrb[34].mxu1 }
 0xbd3   :  { %v2323_v34 = vadd.f32 %v9041_v33, %v8099_v22  ;;  %v2139_v35 = vpop.f32.mrb[23].mxu0  ;;  %v2317_v36 = vpop.f32.mrb[35].mxu1  ;;  %v2145_v5 = vadd.f32 %v9013_v32, %v8089_v23  ;;  %v8129_v33 = vld [vmem:[%s11621_s3 + $0x15] ss:$0 sm:$0xff] }
 0xbd4   :  { %v2140_v37 = vadd.f32 %v8089_v23, %v2139_v35  ;;  %v2318_v38 = vadd.f32 %v8099_v22, %v2317_v36 }
 0xbd6   :  { %v10759_v42 = vpack.c.bf16 %v2323_v34, %v2318_v38  ;;  %v9024_v43 = vpop.f32.mrb[24].mxu0  ;;  %9060 = vmatprep.mubr.msk.f32.mxu1 %vm334_vm1, %v2140_v37 }
 0xbd7   :  { %v2224_v44 = vadd.f32 %v9024_v43, %v8094_v40  ;;  %v2218_v39 = vpop.f32.mrb[25].mxu0 }
 0xbd8   :  { %v2219_v45 = vadd.f32 %v8094_v40, %v2218_v39 }
 0xbda   :  { %v9732_v46 = vpack.c.bf16 %v2224_v44, %v2219_v45  ;;  %v9027_v47 = vpop.f32.mrb[26].mxu0 }
 0xbdb   :  { %v2234_v48 = vadd.f32 %v9027_v47, %v8094_v40  ;;  %v2228_v11 = vpop.f32.mrb[27].mxu0 }
 0xbdc   :  { %v2229_v13 = vadd.f32 %v8094_v40, %v2228_v11  ;;  %9734 = vmatprep.subr.msk.bf16.mxu0 %vm10475_vm2, %v9732_v46 }
 0xbdd   :  { %9737 = vmatpush3.bf16.xpose.msk.msra.mxu0 %vm10475_vm2, %v9732_v46 }
 0xbde   :  { %v9742_v52 = vpack.c.bf16 %v2234_v48, %v2229_v13  ;;  %9739 = vmatprep.subr.bf16.mxu0 %v9738_v31 }
 0xbe0   :  { %9744 = vmatprep.subr.msk.bf16.mxu1 %vm10475_vm2, %v9742_v52 }
 0xbe1   :  { %9747 = vmatpush3.bf16.xpose.msk.msra.mxu1 %vm10475_vm2, %v9742_v52 }
 0xbe2   :  { %9753 = vmatprep.subr.bf16.mxu1 %v9752_v53 }
 0xbe4   :  { %9047 = vmatmul.mubr.msk.f32.vlgmr.msra.gmra.mrb[28].mxu0 %vm334_vm1, %v2135_v54 }
 0xbe5   :  { %9741 = vmatpush3.bf16.msra.mxu0 %v9738_v31 }
 0xbe6   :  { %9749 = vmatprep.subr.bf16.mxu0 %v10759_v42 }
 0xbe8   :  { %9061 = vmatmul.mubr.msk.f32.vlgmr.msra.gmra.mrb[36].mxu1 %vm334_vm1, %v2145_v5 }
 0xbe9   :  { %9755 = vmatpush3.bf16.msra.mxu1 %v9752_v53  ;;  %9078 = vmatprep.mubr.msk.f32.mxu1 %vm58_vm0, %v10715_v21 }
 0xbea   :  { %9757 = vmatprep.subr.bf16.mxu1 %v9756_v57 }
 0xbed   :  { %9759 = vmatpush3.bf16.msra.mxu1 %v9756_v57 }
 0xbee   :  { %9769 = vmatprep.subr.bf16.mxu1 %v9768_v60 }
 0xbf0   :  { %9079 = vmatmul.mubr.msk.f32.vlgmr.msra.gmra.mrb[38].mxu1 %vm58_vm0, %v10717_v8 }
 0xbf1   :  { %9081 = vmatprep.mubr.msk.f32.mxu1 %vm58_vm0, %v10729_v62  ;;  %9771 = vmatpush3.bf16.msra.mxu1 %v9768_v60 }
 0xbf2   :  { %9773 = vmatprep.subr.bf16.mxu1 %v9772_v0 }
 0xbf4   :  { %9082 = vmatmul.mubr.msk.f32.gmra.mrb[40].mxu1 %vm58_vm0, %v10731_v20 }
 0xbf5   :  { %9775 = vmatpush3.bf16.msra.mxu1 %v9772_v0  ;;  %9106 = vmatprep.mubr.msk.f32.mxu1 %vm58_vm0, %v10715_v21 }
 0xbf8   :  { %9107 = vmatmul.mubr.msk.f32.vlgmr.msra.gmra.mrb[42].mxu1 %vm58_vm0, %v10717_v8 }
 0xbf9   :  { %9109 = vmatprep.mubr.msk.f32.mxu1 %vm58_vm0, %v10729_v62 }
 0xbfc   :  { %9110 = vmatmul.mubr.msk.f32.gmra.mrb[44].mxu1 %vm58_vm0, %v10731_v20 }
 0xcb7   :  { %v9048_v14 = vpop.f32.mrb[28].mxu0 }
 0xcb8   :  { %v2414_v1 = vmul.f32 0.25, %v9048_v14  ;;  %v2404_v51 = vpop.f32.mrb[29].mxu0 }
 0xcb9   :  { %v2413_v2 = vmul.f32 0.25, %v2404_v51 }
 0xcba   :  { %v2416_v6 = vadd.f32 %v10792_v3, %v2414_v1 }
 0xcbb   :  { %v9062_v7 = vpop.f32.mrb[36].mxu1  ;;  %v2415_v59 = vadd.f32 %v10792_v3, %v2413_v2 }
 0xcbc   :  { %v2608_v9 = vmul.f32 0.25, %v9062_v7  ;;  %v2598_v56 = vpop.f32.mrb[37].mxu1  ;;  %v2420_v58 = vsel %vm334_vm1, %v2416_v6, -inf  ;;  %v2720_v7 = vld [vmem:[#allocation2 + $0x1c0] sm:$0xff] }
 0xcbd   :  { %v2607_v10 = vmul.f32 0.25, %v2598_v56  ;;  %2421 = vmax.xlane.f32.xlu1 %v2420_v58  ;;  %v2417_v15 = vsel %vm334_vm1, %v2415_v59, -inf }
 0xcbe   :  { %2418 = vmax.xlane.f32.xlu0 %v2417_v15  ;;  %v2610_v4 = vadd.f32 %v10801_v16, %v2608_v9 }
 0xcbf   :  { %v2609_v17 = vadd.f32 %v10801_v16, %v2607_v10 }
 0xcc0   :  { %v2614_v22 = vsel %vm334_vm1, %v2610_v4, -inf }
 0xcc1   :  { %2615 = vmax.xlane.f32.xlu1 %v2614_v22  ;;  %v2611_v23 = vsel %vm334_vm1, %v2609_v17, -inf }
 0xcc2   :  { %2612 = vmax.xlane.f32.xlu0 %v2611_v23 }
 0xcc3   :  { %v9080_v25 = vpop.f32.mrb[38].mxu1 }
 0xcc4   :  { %v10810_v26 = vadd.f32 %v9080_v25, %v8119_v24  ;;  %v2801_v27 = vpop.f32.mrb[39].mxu1 }
 0xcc5   :  { %v10812_v28 = vadd.f32 %v8119_v24, %v2801_v27 }
 0xcc7   :  { %v9083_v29 = vpop.f32.mrb[40].mxu1 }
 0xcc8   :  { %v10814_v30 = vadd.f32 %v9083_v29, %v8119_v24  ;;  %v2811_v31 = vpop.f32.mrb[41].mxu1 }
 0xcc9   :  { %v2812_v32 = vadd.f32 %v8119_v24, %v2811_v31 }
 0xccb   :  { %v9108_v34 = vpop.f32.mrb[42].mxu1  ;;  %9130 = vmatprep.mubr.msk.f32.mxu1 %vm334_vm1, %v2812_v32  ;;  %v8124_v32 = vld [vmem:[%s11621_s3 + $0x14] ss:$0 sm:$0xff] }
 0xccc   :  { %v2985_v35 = vadd.f32 %v9108_v34, %v8129_v33  ;;  %v2979_v36 = vpop.f32.mrb[43].mxu1 }
 0xccd   :  { %v2980_v37 = vadd.f32 %v8129_v33, %v2979_v36 }
 0xccf   :  { %v10820_v38 = vpack.c.bf16 %v2985_v35, %v2980_v37  ;;  %v9111_v40 = vpop.f32.mrb[44].mxu1 }
 0xcd0   :  { %v2995_v43 = vadd.f32 %v9111_v40, %v8129_v33  ;;  %v2989_v44 = vpop.f32.mrb[45].mxu1 }
 0xcd1   :  { %v2990_v39 = vadd.f32 %v8129_v33, %v2989_v44 }
 0xcd3   :  { %v10822_v45 = vpack.c.bf16 %v2995_v43, %v2990_v39 }
 0xd4a   :  { %v2422_v46 = vpop.xlane.xlu1 %2421 }
 0xd4b   :  { %v2424_v47 = vsub.f32 %v2416_v6, %v2422_v46  ;;  %v2419_v48 = vpop.xlane.xlu0 %2418 }
 0xd4c   :  { %v2423_v11 = vsub.f32 %v2415_v59, %v2419_v48  ;;  %v2721_v59 = vld [vmem:[#allocation2 + $0x1c8] sm:$0xff] }
 0xd4d   :  { %v2427_v49 = vmul.f32 1.442695, %v2424_v47  ;;  %v9760_v10 = vpack.c.bf16 %v2721_v59, %v2720_v7 }
 0xd4e   :  { %v2425_v12 = vmul.f32 1.442695, %v2423_v11  ;;  %v2616_v13 = vpop.xlane.xlu1 %2615 }
 0xd4f   :  { %10152 = vpow2.f32 %v2427_v49  ;;  %v2618_v52 = vsub.f32 %v2610_v4, %v2616_v13  ;;  %v2613_v53 = vpop.xlane.xlu0 %2612  ;;  %v2722_v4 = vld [vmem:[#allocation2 + $0x1d0] sm:$0xff] }
 0xd50   :  { %10154 = vpow2.f32 %v2425_v12  ;;  %v2617_v54 = vsub.f32 %v2609_v17, %v2613_v53  ;;  %v2723_v17 = vld [vmem:[#allocation2 + $0x1d8] sm:$0xff] }
 0xd51   :  { %v2621_v18 = vmul.f32 1.442695, %v2618_v52  ;;  %v9764_v25 = vpack.c.bf16 %v2723_v17, %v2722_v4  ;;  %v3387_v4 = vld [vmem:[#allocation2 + $0x218] sm:$0xff] }
 0xd52   :  { %v2619_v55 = vmul.f32 1.442695, %v2617_v54 }
 0xd53   :  { %10156 = vpow2.f32 %v2621_v18 }
 0xd54   :  { %10158 = vpow2.f32 %v2619_v55 }
 0xd59   :  { %v10153_v5 = vpop.eup %10152 }
 0xd5a   :  { %v10155_v57 = vpop.eup %10154  ;;  %v2432_v50 = vsel %vm334_vm1, %v10153_v5, 0.0 }
 0xd5b   :  { %2433 = vadd.xlane.f32.xlu1 %v2432_v50  ;;  %v2429_v19 = vsel %vm334_vm1, %v10155_v57, 0.0 }
 0xd5c   :  { %2430 = vadd.xlane.f32.xlu0 %v2429_v19 }
 0xd5d   :  { %v10157_v60 = vpop.eup %10156 }
 0xd5e   :  { %v10159_v61 = vpop.eup %10158  ;;  %v2626_v63 = vsel %vm334_vm1, %v10157_v60, 0.0 }
 0xd5f   :  { %2627 = vadd.xlane.f32.xlu1 %v2626_v63  ;;  %v2623_v0 = vsel %vm334_vm1, %v10159_v61, 0.0 }
 0xd60   :  { %2624 = vadd.xlane.f32.xlu0 %v2623_v0 }
 0xde8   :  { %v2434_v14 = vpop.xlane.xlu1 %2433 }
 0xde9   :  { %10160 = vrcp.f32 %v2434_v14  ;;  %v2431_v1 = vpop.xlane.xlu0 %2430 }
 0xdea   :  { %10162 = vrcp.f32 %v2431_v1 }
 0xdec   :  { %v2628_v51 = vpop.xlane.xlu1 %2627 }
 0xded   :  { %10164 = vrcp.f32 %v2628_v51  ;;  %v2625_v2 = vpop.xlane.xlu0 %2624 }
 0xdee   :  { %10166 = vrcp.f32 %v2625_v2 }
 0xdf3   :  { %v10161_v6 = vpop.eup %10160 }
 0xdf4   :  { %v10163_v9 = vpop.eup %10162  ;;  %v2438_v58 = vmul.f32 %v10161_v6, %v10153_v5 }
 0xdf5   :  { %v2437_v56 = vmul.f32 %v10163_v9, %v10155_v57 }
 0xdf7   :  { %v10165_v15 = vpop.eup %10164  ;;  %9053 = vmatprep.mubr.msk.f32.mxu0 %vm334_vm1, %v2437_v56 }
 0xdf8   :  { %v10167_v22 = vpop.eup %10166  ;;  %9054 = vmatmul.mubr.msk.f32.vlgmr.msra.gmra.mrb[30].mxu0 %vm334_vm1, %v2438_v58  ;;  %v2632_v24 = vmul.f32 %v10165_v15, %v10157_v60  ;;  %v3386_v15 = vld [vmem:[#allocation2 + $0x210] sm:$0xff] }
 0xdf9   :  { %9751 = vmatpush3.bf16.msra.mxu0 %v10759_v42  ;;  %v2631_v23 = vmul.f32 %v10167_v22, %v10159_v61  ;;  %v9796_v17 = vpack.c.bf16 %v3387_v4, %v3386_v15 }
 0xdfa   :  { %9761 = vmatprep.subr.bf16.mxu0 %v9760_v10 }
 0xdfb   :  { %9067 = vmatprep.mubr.msk.f32.mxu0 %vm334_vm1, %v2631_v23 }
 0xdfc   :  { %9068 = vmatmul.mubr.msk.f32.vlgmr.msra.gmra.mrb[32].mxu0 %vm334_vm1, %v2632_v24 }
 0xdfd   :  { %9763 = vmatpush3.bf16.msra.mxu0 %v9760_v10  ;;  %9092 = vmatprep.mubr.msk.f32.mxu0 %vm58_vm0, %v10715_v21 }
 0xdfe   :  { %9765 = vmatprep.subr.bf16.mxu0 %v9764_v25 }
 0xe01   :  { %9767 = vmatpush3.bf16.msra.mxu0 %v9764_v25 }
 0xe04   :  { %9093 = vmatmul.mubr.msk.f32.vlgmr.msra.gmra.mrb[34].mxu0 %vm58_vm0, %v10717_v8 }
 0xe05   :  { %9095 = vmatprep.mubr.msk.f32.mxu0 %vm58_vm0, %v10729_v62 }
 0xe08   :  { %9096 = vmatmul.mubr.msk.f32.gmra.mrb[36].mxu0 %vm58_vm0, %v10731_v20 }
 0xe09   :  { %9116 = vmatprep.mubr.msk.f32.mxu0 %vm334_vm1, %v10812_v28 }
 0xecb   :  { %v10843_v42 = vpop.f32.mrb[30].mxu0 }
 0xecc   :  { %v10845_v27 = vpop.f32.mrb[31].mxu0 }
 0xecf   :  { %v10847_v29 = vpop.f32.mrb[32].mxu0 }
 0xed0   :  { %v10849_v31 = vpop.f32.mrb[33].mxu0 }
 0xed7   :  { %v9094_v33 = vpop.f32.mrb[34].mxu0 }
 0xed8   :  { %v2896_v34 = vadd.f32 %v9094_v33, %v8124_v32  ;;  %v2890_v35 = vpop.f32.mrb[35].mxu0 }
 0xed9   :  { %v2891_v36 = vadd.f32 %v8124_v32, %v2890_v35 }
 0xedb   :  { %v9776_v37 = vpack.c.bf16 %v2896_v34, %v2891_v36  ;;  %v9097_v40 = vpop.f32.mrb[36].mxu0 }
 0xedc   :  { %v2906_v43 = vadd.f32 %v9097_v40, %v8124_v32  ;;  %v2900_v28 = vpop.f32.mrb[37].mxu0 }
 0xedd   :  { %v2901_v44 = vadd.f32 %v8124_v32, %v2900_v28  ;;  %9778 = vmatprep.subr.msk.bf16.mxu0 %vm10475_vm2, %v9776_v37  ;;  %v2714_v28 = vld [vmem:[#allocation2 + $0x200] sm:$0xff] }
 0xede   :  { %9781 = vmatpush3.bf16.xpose.msk.msra.mxu0 %vm10475_vm2, %v9776_v37 }
 0xedf   :  { %v9786_v39 = vpack.c.bf16 %v2906_v43, %v2901_v44  ;;  %9783 = vmatprep.subr.bf16.mxu0 %v10820_v38  ;;  %v2715_v44 = vld [vmem:[#allocation2 + $0x208] sm:$0xff] }
 0xee1   :  { %9788 = vmatprep.subr.msk.bf16.mxu1 %vm10475_vm2, %v9786_v39 }
 0xee2   :  { %9791 = vmatpush3.bf16.xpose.msk.msra.mxu1 %vm10475_vm2, %v9786_v39  ;;  %v9800_v39 = vpack.c.bf16 %v2715_v44, %v2714_v28 }
 0xee3   :  { %9797 = vmatprep.subr.bf16.mxu1 %v9796_v17 }
 0xee5   :  { %9117 = vmatmul.mubr.msk.f32.vlgmr.msra.gmra.mrb[38].mxu0 %vm334_vm1, %v10810_v26 }
 0xee6   :  { %9785 = vmatpush3.bf16.msra.mxu0 %v10820_v38 }
 0xee7   :  { %9793 = vmatprep.subr.bf16.mxu0 %v10822_v45 }
 0xee9   :  { %9131 = vmatmul.mubr.msk.f32.vlgmr.msra.gmra.mrb[46].mxu1 %vm334_vm1, %v10814_v30 }
 0xeea   :  { %9799 = vmatpush3.bf16.msra.mxu1 %v9796_v17 }
 0xeeb   :  { %9801 = vmatprep.subr.bf16.mxu1 %v9800_v39 }
 0xfb8   :  { %v9118_v46 = vpop.f32.mrb[38].mxu0 }
 0xfb9   :  { %v3086_v47 = vmul.f32 0.25, %v9118_v46  ;;  %v3076_v48 = vpop.f32.mrb[39].mxu0 }
 0xfba   :  { %v3085_v11 = vmul.f32 0.25, %v3076_v48 }
 0xfbb   :  { %v3088_v49 = vadd.f32 %v10792_v3, %v3086_v47 }
 0xfbc   :  { %v9132_v12 = vpop.f32.mrb[46].mxu1  ;;  %v3087_v13 = vadd.f32 %v10792_v3, %v3085_v11 }
 0xfbd   :  { %v3280_v52 = vmul.f32 0.25, %v9132_v12  ;;  %v3270_v53 = vpop.f32.mrb[47].mxu1  ;;  %v3092_v26 = vsel %vm334_vm1, %v3088_v49, -inf }
 0xfbe   :  { %v3279_v54 = vmul.f32 0.25, %v3270_v53  ;;  %3093 = vmax.xlane.f32.xlu1 %v3092_v26  ;;  %v3089_v38 = vsel %vm334_vm1, %v3087_v13, -inf }
 0xfbf   :  { %3090 = vmax.xlane.f32.xlu0 %v3089_v38  ;;  %v3282_v30 = vadd.f32 %v10801_v16, %v3280_v52 }
 0xfc0   :  { %v3281_v18 = vadd.f32 %v10801_v16, %v3279_v54 }
 0xfc1   :  { %v3286_v55 = vsel %vm334_vm1, %v3282_v30, -inf }
 0xfc2   :  { %3287 = vmax.xlane.f32.xlu1 %v3286_v55  ;;  %v3283_v5 = vsel %vm334_vm1, %v3281_v18, -inf }
 0xfc3   :  { %3284 = vmax.xlane.f32.xlu0 %v3283_v5 }
0x104b   :  { %v3094_v3 = vpop.xlane.xlu1 %3093 }
0x104c   :  { %v3096_v57 = vsub.f32 %v3088_v49, %v3094_v3  ;;  %v3091_v50 = vpop.xlane.xlu0 %3090 }
0x104d   :  { %v3095_v19 = vsub.f32 %v3087_v13, %v3091_v50 }
0x104e   :  { %v3099_v60 = vmul.f32 1.442695, %v3096_v57 }
0x104f   :  { %v3097_v61 = vmul.f32 1.442695, %v3095_v19  ;;  %v3288_v63 = vpop.xlane.xlu1 %3287 }
0x1050   :  { %10168 = vpow2.f32 %v3099_v60  ;;  %v3290_v0 = vsub.f32 %v3282_v30, %v3288_v63  ;;  %v3285_v14 = vpop.xlane.xlu0 %3284  ;;  %v3673_v60 = vld [vmem:[#allocation2 + $0x220] sm:$0xff] }
0x1051   :  { %10170 = vpow2.f32 %v3097_v61  ;;  %v3289_v1 = vsub.f32 %v3281_v18, %v3285_v14  ;;  %v3674_v61 = vld [vmem:[#allocation2 + $0x228] sm:$0xff]  ;;  %v3676_v14 = vld [vmem:[#allocation2 + $0x238] sm:$0xff] }
0x1052   :  { %v3293_v51 = vmul.f32 1.442695, %v3290_v0  ;;  %v9804_v63 = vpack.c.bf16 %v3674_v61, %v3673_v60  ;;  %v3675_v0 = vld [vmem:[#allocation2 + $0x230] sm:$0xff]  ;;  %v3683_v60 = vld [vmem:[#allocation2 + $0x268] sm:$0xff] }
0x1053   :  { %v3291_v16 = vmul.f32 1.442695, %v3289_v1  ;;  %v9808_v1 = vpack.c.bf16 %v3676_v14, %v3675_v0  ;;  %v3685_v0 = vld [vmem:[#allocation2 + $0x278] sm:$0xff] }
0x1054   :  { %10172 = vpow2.f32 %v3293_v51 }
0x1055   :  { %10174 = vpow2.f32 %v3291_v16 }
0x105a   :  { %v10169_v2 = vpop.eup %10168 }
0x105b   :  { %v10171_v6 = vpop.eup %10170  ;;  %v3104_v7 = vsel %vm334_vm1, %v10169_v2, 0.0 }
0x105c   :  { %3105 = vadd.xlane.f32.xlu1 %v3104_v7  ;;  %v3101_v59 = vsel %vm334_vm1, %v10171_v6, 0.0 }
0x105d   :  { %3102 = vadd.xlane.f32.xlu0 %v3101_v59 }
0x105e   :  { %v10173_v9 = vpop.eup %10172 }
0x105f   :  { %v10175_v56 = vpop.eup %10174  ;;  %v3298_v58 = vsel %vm334_vm1, %v10173_v9, 0.0 }
0x1060   :  { %3299 = vadd.xlane.f32.xlu1 %v3298_v58  ;;  %v3295_v10 = vsel %vm334_vm1, %v10175_v56, 0.0 }
0x1061   :  { %3296 = vadd.xlane.f32.xlu0 %v3295_v10 }
0x10e9   :  { %v3106_v22 = vpop.xlane.xlu1 %3105 }
0x10ea   :  { %10176 = vrcp.f32 %v3106_v22  ;;  %v3103_v23 = vpop.xlane.xlu0 %3102 }
0x10eb   :  { %10178 = vrcp.f32 %v3103_v23 }
0x10ed   :  { %v3300_v24 = vpop.xlane.xlu1 %3299 }
0x10ee   :  { %10180 = vrcp.f32 %v3300_v24  ;;  %v3297_v25 = vpop.xlane.xlu0 %3296 }
0x10ef   :  { %10182 = vrcp.f32 %v3297_v25 }
0x10f4   :  { %v10177_v32 = vpop.eup %10176 }
0x10f5   :  { %v10179_v33 = vpop.eup %10178  ;;  %v3110_v35 = vmul.f32 %v10177_v32, %v10169_v2 }
0x10f6   :  { %v3109_v34 = vmul.f32 %v10179_v33, %v10171_v6 }
0x10f8   :  { %v10181_v36 = vpop.eup %10180  ;;  %9123 = vmatprep.mubr.msk.f32.mxu0 %vm334_vm1, %v3109_v34 }
0x10f9   :  { %v10183_v37 = vpop.eup %10182  ;;  %9124 = vmatmul.mubr.msk.f32.vlgmr.msra.gmra.mrb[40].mxu0 %vm334_vm1, %v3110_v35  ;;  %v3304_v43 = vmul.f32 %v10181_v36, %v10173_v9 }
0x10fa   :  { %9795 = vmatpush3.bf16.msra.mxu0 %v10822_v45  ;;  %v3303_v40 = vmul.f32 %v10183_v37, %v10175_v56  ;;  %v8157_v45 = vld [vmem:[%s11621_s3 + $0x16] ss:$0 sm:$0xff] }
0x10fb   :  { %9805 = vmatprep.subr.bf16.mxu0 %v9804_v63 }
0x10fc   :  { %9137 = vmatprep.mubr.msk.f32.mxu0 %vm334_vm1, %v3303_v40 }
0x10fd   :  { %9138 = vmatmul.mubr.msk.f32.vlgmr.msra.gmra.mrb[42].mxu0 %vm334_vm1, %v3304_v43 }
0x10fe   :  { %9807 = vmatpush3.bf16.msra.mxu0 %v9804_v63  ;;  %v3684_v63 = vld [vmem:[#allocation2 + $0x270] sm:$0xff] }
0x10ff   :  { %9809 = vmatprep.subr.bf16.mxu0 %v9808_v1  ;;  %v9824_v14 = vpack.c.bf16 %v3685_v0, %v3684_v63 }
0x1102   :  { %9811 = vmatpush3.bf16.msra.mxu0 %v9808_v1  ;;  %v8164_v1 = vld [vmem:[%s11621_s3 + $0x17] ss:$0 sm:$0xff] }
0x11cc   :  { %v9125_v46 = vpop.f32.mrb[40].mxu0 }
0x11cd   :  { %v3183_v47 = vpop.f32.mrb[41].mxu0 }
0x11ce   :  { %9144 = vmatprep.mubr.msk.f32.mxu1 %vm334_vm1, %v3183_v47 }
0x11cf   :  { %9145 = vmatmul.mubr.msk.f32.vlgmr.msra.gmra.mrb[48].mxu1 %vm334_vm1, %v9125_v46 }
0x11d0   :  { %v9139_v48 = vpop.f32.mrb[42].mxu0  ;;  %9803 = vmatpush3.bf16.msra.mxu1 %v9800_v39 }
0x11d1   :  { %v3377_v11 = vpop.f32.mrb[43].mxu0 }
0x11d2   :  { %9147 = vmatprep.mubr.msk.f32.mxu1 %vm334_vm1, %v3377_v11  ;;  %v8158_v11 = vld [vmem:[%s11621_s3 + $0x19] ss:$0 sm:$0xff] }
0x11d3   :  { %9148 = vmatmul.mubr.msk.f32.gmra.mrb[50].mxu1 %vm334_vm1, %v9139_v48 }
0x11d4   :  { %9154 = vmatprep.mubr.msk.f32.mxu1 %vm334_vm1, %v10845_v27 }
0x11d7   :  { %9155 = vmatmul.mubr.msk.f32.vlgmr.msra.gmra.mrb[48].mxu1 %vm334_vm1, %v10843_v42 }
0x11d8   :  { %9157 = vmatprep.mubr.msk.f32.mxu1 %vm334_vm1, %v10849_v31 }
0x11db   :  { %9158 = vmatmul.mubr.msk.f32.gmra.mrb[50].mxu1 %vm334_vm1, %v10847_v29 }
0x12aa   :  { %v9156_v49 = vpop.f32.mrb[48].mxu1 }
0x12ab   :  { %v3590_v12 = vadd.f32 %v9156_v49, %v8157_v45  ;;  %v3563_v13 = vpop.f32.mrb[49].mxu1 }
0x12ac   :  { %v3589_v52 = vadd.f32 %v8157_v45, %v3563_v13  ;;  %v8159_v13 = vld [vmem:[%s11621_s3 + $0x1a] ss:$0 sm:$0xff] }
0x12ad   :  { %v10902_v53 = vadd.f32 %v3590_v12, %v10717_v8 }
0x12ae   :  { %v10905_v27 = vadd.f32 %v3589_v52, %v10715_v21  ;;  %v9159_v42 = vpop.f32.mrb[50].mxu1 }
0x12af   :  { %v3592_v26 = vadd.f32 %v9159_v42, %v8157_v45  ;;  %v3573_v31 = vpop.f32.mrb[51].mxu1  ;;  %v3600_v29 = vsel %vm58_vm0, %v10902_v53, 0.0  ;;  %v3614_v54 = vmul.f32 %v10902_v53, %v10902_v53 }
0x12b0   :  { %v3591_v38 = vadd.f32 %v8157_v45, %v3573_v31  ;;  %3601 = vadd.xlane.f32.xlu1 %v3600_v29  ;;  %v3597_v30 = vsel %vm58_vm0, %v10905_v27, 0.0  ;;  %v3613_v8 = vmul.f32 %v10905_v27, %v10905_v27 }
0x12b1   :  { %3598 = vadd.xlane.f32.xlu0 %v3597_v30  ;;  %v10916_v21 = vadd.f32 %v3592_v26, %v10731_v20  ;;  %v3620_v18 = vsel %vm58_vm0, %v3614_v54, 0.0 }
0x12b2   :  { %v10920_v55 = vadd.f32 %v3591_v38, %v10729_v62  ;;  %v3617_v5 = vsel %vm58_vm0, %v3613_v8, 0.0 }
0x12b3   :  { %v3606_v3 = vsel %vm58_vm0, %v10916_v21, 0.0  ;;  %v3616_v57 = vmul.f32 %v10916_v21, %v10916_v21 }
0x12b4   :  { %3621 = vadd.xlane.f32.xlu1 %v3620_v18  ;;  %v3603_v20 = vsel %vm58_vm0, %v10920_v55, 0.0  ;;  %v3615_v50 = vmul.f32 %v10920_v55, %v10920_v55 }
0x12b5   :  { %3618 = vadd.xlane.f32.xlu0 %v3617_v5  ;;  %v3626_v62 = vsel %vm58_vm0, %v3616_v57, 0.0 }
0x12b6   :  { %v3623_v19 = vsel %vm58_vm0, %v3615_v50, 0.0  ;;  %v3681_v50 = vld [vmem:[#allocation2 + $0x258] sm:$0xff] }
0x12b8   :  { %3607 = vadd.xlane.f32.xlu1 %v3606_v3 }
0x12b9   :  { %3604 = vadd.xlane.f32.xlu0 %v3603_v20  ;;  %v3680_v20 = vld [vmem:[#allocation2 + $0x250] sm:$0xff] }
0x12bc   :  { %3627 = vadd.xlane.f32.xlu1 %v3626_v62  ;;  %v9816_v62 = vpack.c.bf16 %v3681_v50, %v3680_v20 }
0x12bd   :  { %3624 = vadd.xlane.f32.xlu0 %v3623_v19  ;;  %v3682_v19 = vld [vmem:[#allocation2 + $0x260] sm:$0xff] }
0x12be   :  { %v9820_v61 = vpack.c.bf16 %v3683_v60, %v3682_v19 }
0x133d   :  { %v3602_v51 = vpop.xlane.xlu1 %3601 }
0x133e   :  { %v3610_v16 = vmul.f32 0.03125, %v3602_v51  ;;  %v3599_v2 = vpop.xlane.xlu0 %3598 }
0x133f   :  { %v3609_v6 = vmul.f32 0.03125, %v3599_v2 }
0x1340   :  { %v3634_v59 = vmul.f32 %v3610_v16, %v3610_v16  ;;  %v3642_v46 = vsub.f32 %v10902_v53, %v3610_v16 }
0x1341   :  { %v3622_v7 = vpop.xlane.xlu1 %3621  ;;  %v3633_v58 = vmul.f32 %v3609_v6, %v3609_v6  ;;  %v3641_v48 = vsub.f32 %v10905_v27, %v3609_v6 }
0x1342   :  { %v3630_v9 = vmul.f32 0.03125, %v3622_v7  ;;  %v3619_v56 = vpop.xlane.xlu0 %3618 }
0x1343   :  { %v3629_v10 = vmul.f32 0.03125, %v3619_v56 }
0x1344   :  { %v3638_v15 = vsub.f32 %v3630_v9, %v3634_v59 }
0x1345   :  { %v3637_v4 = vsub.f32 %v3629_v10, %v3633_v58  ;;  %v3608_v17 = vpop.xlane.xlu1 %3607 }
0x1346   :  { %v3646_v22 = vadd.f32 1e-12, %v3638_v15  ;;  %v3612_v23 = vmul.f32 0.03125, %v3608_v17  ;;  %v3605_v24 = vpop.xlane.xlu0 %3604 }
0x1347   :  { %v3645_v25 = vadd.f32 1e-12, %v3637_v4  ;;  %v3611_v32 = vmul.f32 0.03125, %v3605_v24 }
0x1348   :  { %10184 = vrsqrt.f32 %v3646_v22  ;;  %v3636_v34 = vmul.f32 %v3612_v23, %v3612_v23  ;;  %v3644_v53 = vsub.f32 %v10916_v21, %v3612_v23  ;;  %v3678_v21 = vld [vmem:[#allocation2 + $0x240] sm:$0xff] }
0x1349   :  { %10186 = vrsqrt.f32 %v3645_v25  ;;  %v3628_v33 = vpop.xlane.xlu1 %3627  ;;  %v3635_v37 = vmul.f32 %v3611_v32, %v3611_v32  ;;  %v3643_v29 = vsub.f32 %v10920_v55, %v3611_v32  ;;  %v3679_v55 = vld [vmem:[#allocation2 + $0x248] sm:$0xff] }
0x134a   :  { %v3632_v35 = vmul.f32 0.03125, %v3628_v33  ;;  %v3625_v36 = vpop.xlane.xlu0 %3624  ;;  %v9812_v57 = vpack.c.bf16 %v3679_v55, %v3678_v21 }
0x134b   :  { %v3631_v40 = vmul.f32 0.03125, %v3625_v36 }
0x134c   :  { %v3640_v43 = vsub.f32 %v3632_v35, %v3636_v34  ;;  %9813 = vmatprep.subr.bf16.mxu0 %v9812_v57 }
0x134d   :  { %v3639_v28 = vsub.f32 %v3631_v40, %v3635_v37 }
0x134e   :  { %v3648_v44 = vadd.f32 1e-12, %v3640_v43 }
0x134f   :  { %v3647_v39 = vadd.f32 1e-12, %v3639_v28 }
0x1350   :  { %10188 = vrsqrt.f32 %v3648_v44 }
0x1351   :  { %10190 = vrsqrt.f32 %v3647_v39 }
0x1352   :  { %v10185_v47 = vpop.eup %10184 }
0x1353   :  { %v10187_v45 = vpop.eup %10186  ;;  %v3654_v49 = vmul.f32 %v10185_v47, %v3642_v46 }
0x1354   :  { %v3653_v12 = vmul.f32 %v10187_v45, %v3641_v48 }
0x1355   :  { %v3662_v52 = vmul.f32 %v8158_v11, %v3654_v49 }
0x1356   :  { %v3661_v42 = vmul.f32 %v8158_v11, %v3653_v12 }
0x1357   :  { %v10944_v31 = vadd.f32 %v8159_v13, %v3662_v52 }
0x1358   :  { %v10941_v26 = vadd.f32 %v8159_v13, %v3661_v42 }
0x135a   :  { %v10189_v27 = vpop.eup %10188  ;;  %9168 = vmatprep.mubr.msk.f32.mxu0 %vm58_vm0, %v10941_v26 }
0x135b   :  { %v10191_v54 = vpop.eup %10190  ;;  %9169 = vmatmul.mubr.msk.f32.vlgmr.msra.gmra.mrb[44].mxu0 %vm58_vm0, %v10944_v31  ;;  %v3656_v38 = vmul.f32 %v10189_v27, %v3644_v53 }
0x135c   :  { %v3655_v30 = vmul.f32 %v10191_v54, %v3643_v29  ;;  %9815 = vmatpush3.bf16.msra.mxu0 %v9812_v57 }
0x135d   :  { %v3664_v8 = vmul.f32 %v8158_v11, %v3656_v38  ;;  %9817 = vmatprep.subr.bf16.mxu0 %v9816_v62 }
0x135e   :  { %v3663_v18 = vmul.f32 %v8158_v11, %v3655_v30 }
0x135f   :  { %v10953_v3 = vadd.f32 %v8159_v13, %v3664_v8  ;;  %v8169_v8 = vld [vmem:[%s11621_s3 + $0x18] ss:$0 sm:$0xff] }
0x1360   :  { %v10951_v5 = vadd.f32 %v8159_v13, %v3663_v18  ;;  %9819 = vmatpush3.bf16.msra.mxu0 %v9816_v62 }
0x1361   :  { %9821 = vmatprep.subr.bf16.mxu0 %v9820_v61 }
0x1362   :  { %9171 = vmatprep.mubr.msk.f32.mxu0 %vm58_vm0, %v10951_v5 }
0x1363   :  { %9172 = vmatmul.mubr.msk.f32.gmra.mrb[46].mxu0 %vm58_vm0, %v10953_v3 }
0x1364   :  { %9823 = vmatpush3.bf16.msra.mxu0 %v9820_v61 }
0x1365   :  { %9825 = vmatprep.subr.bf16.mxu0 %v9824_v14 }
0x1368   :  { %9827 = vmatpush3.bf16.msra.mxu0 %v9824_v14 }
0x142e   :  { %v9170_v51 = vpop.f32.mrb[44].mxu0 }
0x142f   :  { %v3777_v16 = vadd.f32 %v9170_v51, %v8164_v1  ;;  %v3771_v2 = vpop.f32.mrb[45].mxu0 }
0x1430   :  { %v3772_v6 = vadd.f32 %v8164_v1, %v3771_v2 }
0x1431   :  { %v3795_v7 = vmul.f32 0.044715, %v3777_v16  ;;  %v3791_v49 = vmul.f32 0.5, %v3777_v16 }
0x1432   :  { %v3794_v59 = vmul.f32 0.044715, %v3772_v6  ;;  %v3790_v11 = vmul.f32 0.5, %v3772_v6 }
0x1433   :  { %v3799_v9 = vmul.f32 %v3795_v7, %v3777_v16 }
0x1434   :  { %v3798_v56 = vmul.f32 %v3794_v59, %v3772_v6 }
0x1435   :  { %v3803_v58 = vmul.f32 %v3799_v9, %v3777_v16  ;;  %v4008_v9 = vld [vmem:[#allocation2 + $0x280] sm:$0xff] }
0x1436   :  { %v3802_v10 = vmul.f32 %v3798_v56, %v3772_v6  ;;  %v9173_v15 = vpop.f32.mrb[46].mxu0  ;;  %v4009_v56 = vld [vmem:[#allocation2 + $0x288] sm:$0xff] }
0x1437   :  { %v3807_v4 = vadd.f32 %v3803_v58, %v3777_v16  ;;  %v3787_v17 = vadd.f32 %v9173_v15, %v8164_v1  ;;  %v3781_v22 = vpop.f32.mrb[47].mxu0  ;;  %v4016_v58 = vld [vmem:[#allocation2 + $0x2c0] sm:$0xff]  ;;  %v4017_v15 = vld [vmem:[#allocation2 + $0x2c8] sm:$0xff] }
0x1438   :  { %v3806_v23 = vadd.f32 %v3802_v10, %v3772_v6  ;;  %v3782_v24 = vadd.f32 %v8164_v1, %v3781_v22  ;;  %v9828_v10 = vpack.c.bf16 %v4009_v56, %v4008_v9  ;;  %v4011_v22 = vld [vmem:[#allocation2 + $0x298] sm:$0xff] }
0x1439   :  { %v3811_v25 = vmul.f32 0.7978846, %v3807_v4  ;;  %v3797_v32 = vmul.f32 0.044715, %v3787_v17  ;;  %v3793_v54 = vmul.f32 0.5, %v3787_v17  ;;  %v9844_v4 = vpack.c.bf16 %v4017_v15, %v4016_v58 }
0x143a   :  { %v3796_v33 = vmul.f32 0.044715, %v3782_v24  ;;  %v3810_v34 = vmul.f32 0.7978846, %v3806_v23  ;;  %v3792_v27 = vmul.f32 0.5, %v3782_v24  ;;  %9829 = vmatprep.subr.bf16.mxu1 %v9828_v10  ;;  %v4018_v23 = vld [vmem:[#allocation2 + $0x2d0] sm:$0xff] }
0x143b   :  { %10192 = vtanh.f32 %v3811_v25  ;;  %v3801_v35 = vmul.f32 %v3797_v32, %v3787_v17  ;;  %9845 = vmatprep.subr.bf16.mxu0 %v9844_v4  ;;  %9831 = vmatpush3.bf16.msra.mxu1 %v9828_v10  ;;  %v4019_v25 = vld [vmem:[#allocation2 + $0x2d8] sm:$0xff] }
0x143c   :  { %v3800_v36 = vmul.f32 %v3796_v33, %v3782_v24  ;;  %10194 = vtanh.f32 %v3810_v34  ;;  %v9848_v32 = vpack.c.bf16 %v4019_v25, %v4018_v23  ;;  %v4012_v33 = vld [vmem:[#allocation2 + $0x2a0] sm:$0xff]  ;;  %v4013_v34 = vld [vmem:[#allocation2 + $0x2a8] sm:$0xff] }
0x143d   :  { %v3805_v37 = vmul.f32 %v3801_v35, %v3787_v17  ;;  %v9836_v35 = vpack.c.bf16 %v4013_v34, %v4012_v33 }
0x143e   :  { %v3804_v40 = vmul.f32 %v3800_v36, %v3782_v24 }
0x143f   :  { %v3809_v43 = vadd.f32 %v3805_v37, %v3787_v17  ;;  %v4010_v17 = vld [vmem:[#allocation2 + $0x290] sm:$0xff] }
0x1440   :  { %v3808_v28 = vadd.f32 %v3804_v40, %v3782_v24  ;;  %v9832_v24 = vpack.c.bf16 %v4011_v22, %v4010_v17  ;;  %v8179_v17 = vld [vmem:[%s11621_s3 + $0x20] ss:$0 sm:$0xff] }
0x1441   :  { %v3813_v44 = vmul.f32 0.7978846, %v3809_v43 }
0x1442   :  { %v3812_v39 = vmul.f32 0.7978846, %v3808_v28  ;;  %9833 = vmatprep.subr.bf16.mxu1 %v9832_v24 }
0x1443   :  { %10196 = vtanh.f32 %v3813_v44  ;;  %9835 = vmatpush3.bf16.msra.mxu1 %v9832_v24 }
0x1444   :  { %10198 = vtanh.f32 %v3812_v39  ;;  %9837 = vmatprep.subr.bf16.mxu1 %v9836_v35 }
0x1445   :  { %v10193_v46 = vpop.eup %10192 }
0x1446   :  { %v10195_v47 = vpop.eup %10194  ;;  %v3819_v48 = vadd.f32 1.0, %v10193_v46 }
0x1447   :  { %v3818_v45 = vadd.f32 1.0, %v10195_v47 }
0x1448   :  { %v3823_v13 = vmul.f32 %v3819_v48, %v3791_v49 }
0x1449   :  { %v3822_v12 = vmul.f32 %v3818_v45, %v3790_v11 }
0x144b   :  { %9190 = vmatprep.mubr.msk.f32.mxu0 %vm1852_vm3, %v3822_v12 }
0x144c   :  { %9191 = vmatmul.mubr.msk.f32.vlgmr.msra.gmra.mrb[48].mxu0 %vm1852_vm3, %v3823_v13 }
0x144d   :  { %v10197_v52 = vpop.eup %10196  ;;  %9847 = vmatpush3.bf16.msra.mxu0 %v9844_v4  ;;  %v8189_v4 = vld [vmem:[%s11621_s3 + $0x22] ss:$0 sm:$0xff] }
0x144e   :  { %v10199_v42 = vpop.eup %10198  ;;  %v3821_v53 = vadd.f32 1.0, %v10197_v52  ;;  %9849 = vmatprep.subr.bf16.mxu0 %v9848_v32 }
0x144f   :  { %v3820_v29 = vadd.f32 1.0, %v10199_v42 }
0x1450   :  { %v3825_v30 = vmul.f32 %v3821_v53, %v3793_v54 }
0x1451   :  { %v3824_v38 = vmul.f32 %v3820_v29, %v3792_v27  ;;  %9851 = vmatpush3.bf16.msra.mxu0 %v9848_v32 }
0x1453   :  { %9193 = vmatprep.mubr.msk.f32.mxu0 %vm1852_vm3, %v3824_v38 }
0x1454   :  { %9194 = vmatmul.mubr.msk.f32.gmra.mrb[50].mxu0 %vm1852_vm3, %v3825_v30 }
0x151f   :  { %v9192_v18 = vpop.f32.mrb[48].mxu0 }
0x1520   :  { %v3914_v21 = vadd.f32 %v9192_v18, %v8169_v8  ;;  %v3908_v55 = vpop.f32.mrb[49].mxu0 }
0x1521   :  { %v3909_v57 = vadd.f32 %v8169_v8, %v3908_v55 }
0x1522   :  { %v10970_v20 = vadd.f32 %v3914_v21, %v10944_v31 }
0x1523   :  { %v10973_v50 = vadd.f32 %v3909_v57, %v10941_v26 }
0x1524   :  { %v3934_v62 = vsel %vm58_vm0, %v10970_v20, 0.0  ;;  %v3948_v19 = vmul.f32 %v10970_v20, %v10970_v20 }
0x1525   :  { %3935 = vadd.xlane.f32.xlu1 %v3934_v62  ;;  %v3931_v60 = vsel %vm58_vm0, %v10973_v50, 0.0  ;;  %v3947_v61 = vmul.f32 %v10973_v50, %v10973_v50 }
0x1526   :  { %3932 = vadd.xlane.f32.xlu0 %v3931_v60  ;;  %v3954_v26 = vsel %vm58_vm0, %v3948_v19, 0.0 }
0x1527   :  { %v9195_v63 = vpop.f32.mrb[50].mxu0  ;;  %v3951_v1 = vsel %vm58_vm0, %v3947_v61, 0.0  ;;  %v8174_v61 = vld [vmem:[%s11621_s3 + $0x1b] ss:$0 sm:$0xff] }
0x1528   :  { %v3924_v31 = vadd.f32 %v9195_v63, %v8169_v8  ;;  %v3918_v0 = vpop.f32.mrb[51].mxu0 }
0x1529   :  { %v3919_v14 = vadd.f32 %v8169_v8, %v3918_v0  ;;  %3955 = vadd.xlane.f32.xlu1 %v3954_v26  ;;  %v8175_v26 = vld [vmem:[%s11621_s3 + $0x1c] ss:$0 sm:$0xff] }
0x152a   :  { %v10986_v51 = vadd.f32 %v3924_v31, %v10953_v3  ;;  %3952 = vadd.xlane.f32.xlu0 %v3951_v1 }
0x152b   :  { %v10989_v16 = vadd.f32 %v3919_v14, %v10951_v5 }
0x152c   :  { %v3940_v2 = vsel %vm58_vm0, %v10986_v51, 0.0  ;;  %v3950_v6 = vmul.f32 %v10986_v51, %v10986_v51 }
0x152d   :  { %3941 = vadd.xlane.f32.xlu1 %v3940_v2  ;;  %v3937_v7 = vsel %vm58_vm0, %v10989_v16, 0.0  ;;  %v3949_v59 = vmul.f32 %v10989_v16, %v10989_v16  ;;  %v4014_v2 = vld [vmem:[#allocation2 + $0x2b0] sm:$0xff] }
0x152e   :  { %3938 = vadd.xlane.f32.xlu0 %v3937_v7  ;;  %v3960_v3 = vsel %vm58_vm0, %v3950_v6, 0.0  ;;  %v4015_v6 = vld [vmem:[#allocation2 + $0x2b8] sm:$0xff] }
0x152f   :  { %v3957_v5 = vsel %vm58_vm0, %v3949_v59, 0.0  ;;  %v9840_v59 = vpack.c.bf16 %v4015_v6, %v4014_v2 }
0x1531   :  { %3961 = vadd.xlane.f32.xlu1 %v3960_v3 }
0x1532   :  { %3958 = vadd.xlane.f32.xlu0 %v3957_v5 }
0x15b2   :  { %v3936_v36 = vpop.xlane.xlu1 %3935 }
0x15b3   :  { %v3944_v37 = vmul.f32 0.03125, %v3936_v36  ;;  %v3933_v40 = vpop.xlane.xlu0 %3932 }
0x15b4   :  { %v3943_v43 = vmul.f32 0.03125, %v3933_v40 }
0x15b5   :  { %v3968_v44 = vmul.f32 %v3944_v37, %v3944_v37  ;;  %v3976_v62 = vsub.f32 %v10970_v20, %v3944_v37 }
0x15b6   :  { %v3956_v28 = vpop.xlane.xlu1 %3955  ;;  %v3967_v47 = vmul.f32 %v3943_v43, %v3943_v43  ;;  %v3975_v60 = vsub.f32 %v10973_v50, %v3943_v43 }
0x15b7   :  { %v3964_v39 = vmul.f32 0.03125, %v3956_v28  ;;  %v3953_v46 = vpop.xlane.xlu0 %3952 }
0x15b8   :  { %v3963_v48 = vmul.f32 0.03125, %v3953_v46  ;;  %v8184_v46 = vld [vmem:[%s11621_s3 + $0x21] ss:$0 sm:$0xff] }
0x15b9   :  { %v3972_v11 = vsub.f32 %v3964_v39, %v3968_v44 }
0x15ba   :  { %v3971_v45 = vsub.f32 %v3963_v48, %v3967_v47  ;;  %v3942_v49 = vpop.xlane.xlu1 %3941 }
0x15bb   :  { %v3980_v12 = vadd.f32 1e-12, %v3972_v11  ;;  %v3946_v13 = vmul.f32 0.03125, %v3942_v49  ;;  %v3939_v52 = vpop.xlane.xlu0 %3938 }
0x15bc   :  { %v3979_v42 = vadd.f32 1e-12, %v3971_v45  ;;  %v3945_v53 = vmul.f32 0.03125, %v3939_v52 }
0x15bd   :  { %10200 = vrsqrt.f32 %v3980_v12  ;;  %v3970_v29 = vmul.f32 %v3946_v13, %v3946_v13  ;;  %v3978_v50 = vsub.f32 %v10986_v51, %v3946_v13 }
0x15be   :  { %10202 = vrsqrt.f32 %v3979_v42  ;;  %v3962_v27 = vpop.xlane.xlu1 %3961  ;;  %v3969_v30 = vmul.f32 %v3945_v53, %v3945_v53  ;;  %v3977_v5 = vsub.f32 %v10989_v16, %v3945_v53  ;;  %v4693_v53 = vld [vmem:[#allocation2 + $0x2e0] sm:$0xff] }
0x15bf   :  { %v3966_v54 = vmul.f32 0.03125, %v3962_v27  ;;  %v3959_v38 = vpop.xlane.xlu0 %3958  ;;  %v4694_v27 = vld [vmem:[#allocation2 + $0x2e8] sm:$0xff] }
0x15c0   :  { %v3965_v8 = vmul.f32 0.03125, %v3959_v38  ;;  %v9872_v38 = vpack.c.bf16 %v4694_v27, %v4693_v53 }
0x15c1   :  { %v3974_v18 = vsub.f32 %v3966_v54, %v3970_v29 }
0x15c2   :  { %v3973_v21 = vsub.f32 %v3965_v8, %v3969_v30  ;;  %v4695_v8 = vld [vmem:[#allocation2 + $0x2f0] sm:$0xff] }
0x15c3   :  { %v3982_v55 = vadd.f32 1e-12, %v3974_v18  ;;  %v4696_v18 = vld [vmem:[#allocation2 + $0x2f8] sm:$0xff] }
0x15c4   :  { %v3981_v57 = vadd.f32 1e-12, %v3973_v21 }
0x15c5   :  { %10204 = vrsqrt.f32 %v3982_v55  ;;  %v9876_v55 = vpack.c.bf16 %v4696_v18, %v4695_v8 }
0x15c6   :  { %10206 = vrsqrt.f32 %v3981_v57  ;;  %v4701_v57 = vld [vmem:[#allocation2 + $0x320] sm:$0xff] }
0x15c7   :  { %v10201_v19 = vpop.eup %10200 }
0x15c8   :  { %v10203_v63 = vpop.eup %10202  ;;  %v3988_v31 = vmul.f32 %v10201_v19, %v3976_v62  ;;  %v4702_v62 = vld [vmem:[#allocation2 + $0x328] sm:$0xff] }
0x15c9   :  { %v3987_v0 = vmul.f32 %v10203_v63, %v3975_v60  ;;  %v9888_v19 = vpack.c.bf16 %v4702_v62, %v4701_v57  ;;  %v4703_v60 = vld [vmem:[#allocation2 + $0x330] sm:$0xff] }
0x15ca   :  { %v3996_v14 = vmul.f32 %v8174_v61, %v3988_v31 }
0x15cb   :  { %v3995_v1 = vmul.f32 %v8174_v61, %v3987_v0 }
0x15cc   :  { %v11011_v7 = vadd.f32 %v8175_v26, %v3996_v14 }
0x15cd   :  { %v11009_v20 = vadd.f32 %v8175_v26, %v3995_v1  ;;  %v11086_v1 = vld [vmem:[%s11619_s1] ss:$0 sm:$0xff] }
0x15cf   :  { %v10205_v3 = vpop.eup %10204  ;;  %9204 = vmatprep.mubr.msk.f32.mxu1 %vm58_vm0, %v11009_v20  ;;  %9232 = vmatprep.mubr.msk.f32.mxu0 %vm58_vm0, %v11009_v20 }
0x15d0   :  { %v10207_v9 = vpop.eup %10206  ;;  %v3990_v56 = vmul.f32 %v10205_v3, %v3978_v50  ;;  %9205 = vmatmul.mubr.msk.f32.vlgmr.msra.gmra.mrb[52].mxu1 %vm58_vm0, %v11011_v7  ;;  %9233 = vmatmul.mubr.msk.f32.vlgmr.msra.gmra.mrb[52].mxu0 %vm58_vm0, %v11011_v7 }
0x15d1   :  { %v3989_v58 = vmul.f32 %v10207_v9, %v3977_v5  ;;  %9839 = vmatpush3.bf16.msra.mxu1 %v9836_v35 }
0x15d2   :  { %v3998_v51 = vmul.f32 %v8174_v61, %v3990_v56  ;;  %9841 = vmatprep.subr.bf16.mxu1 %v9840_v59 }
0x15d3   :  { %v3997_v10 = vmul.f32 %v8174_v61, %v3989_v58  ;;  %v4704_v61 = vld [vmem:[#allocation2 + $0x338] sm:$0xff]  ;;  %v11095_v58 = vld [vmem:[%s11619_s1 + $0x1] ss:$0 sm:$0xff] }
0x15d4   :  { %v11025_v15 = vadd.f32 %v8175_v26, %v3998_v51  ;;  %v9892_v63 = vpack.c.bf16 %v4704_v61, %v4703_v60 }
0x15d5   :  { %v11023_v16 = vadd.f32 %v8175_v26, %v3997_v10  ;;  %9843 = vmatpush3.bf16.msra.mxu1 %v9840_v59 }
0x15d7   :  { %9207 = vmatprep.mubr.msk.f32.mxu1 %vm58_vm0, %v11023_v16  ;;  %9235 = vmatprep.mubr.msk.f32.mxu0 %vm58_vm0, %v11023_v16 }
0x15d8   :  { %9208 = vmatmul.mubr.msk.f32.gmra.mrb[54].mxu1 %vm58_vm0, %v11025_v15  ;;  %9236 = vmatmul.mubr.msk.f32.gmra.mrb[54].mxu0 %vm58_vm0, %v11025_v15 }
0x15d9   :  { %9218 = vmatprep.mubr.msk.f32.mxu1 %vm58_vm0, %v11009_v20 }
0x15dc   :  { %9219 = vmatmul.mubr.msk.f32.vlgmr.msra.gmra.mrb[56].mxu1 %vm58_vm0, %v11011_v7 }
0x15dd   :  { %9221 = vmatprep.mubr.msk.f32.mxu1 %vm58_vm0, %v11023_v16 }
0x15e0   :  { %9222 = vmatmul.mubr.msk.f32.gmra.mrb[58].mxu1 %vm58_vm0, %v11025_v15 }
0x16a3   :  { %v9206_v22 = vpop.f32.mrb[52].mxu1  ;;  %v9234_v23 = vpop.f32.mrb[52].mxu0 }
0x16a4   :  { %v4290_v24 = vadd.f32 %v9234_v23, %v8189_v4  ;;  %v4106_v25 = vpop.f32.mrb[53].mxu1  ;;  %v4284_v32 = vpop.f32.mrb[53].mxu0  ;;  %v4112_v30 = vadd.f32 %v9206_v22, %v8179_v17  ;;  %v8209_v22 = vld [vmem:[%s11621_s3 + $0x23] ss:$0 sm:$0xff] }
0x16a5   :  { %v4107_v33 = vadd.f32 %v8179_v17, %v4106_v25  ;;  %v4285_v34 = vadd.f32 %v8189_v4, %v4284_v32 }
0x16a7   :  { %v9858_v35 = vpack.c.bf16 %v4290_v24, %v4285_v34  ;;  %9242 = vmatprep.mubr.msk.f32.mxu1 %vm334_vm1, %v4107_v33 }
0x16ab   :  { %v9209_v36 = vpop.f32.mrb[54].mxu1  ;;  %v9237_v37 = vpop.f32.mrb[54].mxu0 }
0x16ac   :  { %v4300_v40 = vadd.f32 %v9237_v37, %v8189_v4  ;;  %v4116_v43 = vpop.f32.mrb[55].mxu1  ;;  %v4294_v28 = vpop.f32.mrb[55].mxu0  ;;  %v4122_v21 = vadd.f32 %v9209_v36, %v8179_v17  ;;  %v8219_v37 = vld [vmem:[%s11621_s3 + $0x25] ss:$0 sm:$0xff] }
0x16ad   :  { %v4117_v44 = vadd.f32 %v8179_v17, %v4116_v43  ;;  %v4295_v39 = vadd.f32 %v8189_v4, %v4294_v28 }
0x16af   :  { %v11053_v47 = vpack.c.bf16 %v4300_v40, %v4295_v39  ;;  %v9220_v48 = vpop.f32.mrb[56].mxu1  ;;  %9256 = vmatprep.mubr.msk.f32.mxu0 %vm334_vm1, %v4117_v44 }
0x16b0   :  { %v4201_v11 = vadd.f32 %v9220_v48, %v8184_v46  ;;  %v4195_v45 = vpop.f32.mrb[57].mxu1 }
0x16b1   :  { %v4196_v49 = vadd.f32 %v8184_v46, %v4195_v45 }
0x16b3   :  { %v9852_v12 = vpack.c.bf16 %v4201_v11, %v4196_v49  ;;  %v9223_v13 = vpop.f32.mrb[58].mxu1 }
0x16b4   :  { %v4211_v52 = vadd.f32 %v9223_v13, %v8184_v46  ;;  %v4205_v42 = vpop.f32.mrb[59].mxu1 }
0x16b5   :  { %v4206_v29 = vadd.f32 %v8184_v46, %v4205_v42  ;;  %9854 = vmatprep.subr.msk.bf16.mxu1 %vm10475_vm2, %v9852_v12 }
0x16b6   :  { %9857 = vmatpush3.bf16.xpose.msk.msra.mxu1 %vm10475_vm2, %v9852_v12 }
0x16b7   :  { %v9862_v54 = vpack.c.bf16 %v4211_v52, %v4206_v29  ;;  %9859 = vmatprep.subr.bf16.mxu1 %v9858_v35 }
0x16b9   :  { %9864 = vmatprep.subr.msk.bf16.mxu0 %vm10475_vm2, %v9862_v54 }
0x16ba   :  { %9867 = vmatpush3.bf16.xpose.msk.msra.mxu0 %vm10475_vm2, %v9862_v54 }
0x16bb   :  { %9873 = vmatprep.subr.bf16.mxu0 %v9872_v38 }
0x16bd   :  { %9243 = vmatmul.mubr.msk.f32.vlgmr.msra.gmra.mrb[60].mxu1 %vm334_vm1, %v4112_v30 }
0x16be   :  { %9861 = vmatpush3.bf16.msra.mxu1 %v9858_v35 }
0x16bf   :  { %9869 = vmatprep.subr.bf16.mxu1 %v11053_v47 }
0x16c1   :  { %9257 = vmatmul.mubr.msk.f32.vlgmr.msra.gmra.mrb[56].mxu0 %vm334_vm1, %v4122_v21 }
0x16c2   :  { %9875 = vmatpush3.bf16.msra.mxu0 %v9872_v38  ;;  %9274 = vmatprep.mubr.msk.f32.mxu0 %vm58_vm0, %v11009_v20 }
0x16c3   :  { %9877 = vmatprep.subr.bf16.mxu0 %v9876_v55 }
0x16c6   :  { %9879 = vmatpush3.bf16.msra.mxu0 %v9876_v55 }
0x16c7   :  { %9889 = vmatprep.subr.bf16.mxu0 %v9888_v19 }
0x16c9   :  { %9275 = vmatmul.mubr.msk.f32.vlgmr.msra.gmra.mrb[58].mxu0 %vm58_vm0, %v11011_v7 }
0x16ca   :  { %9277 = vmatprep.mubr.msk.f32.mxu0 %vm58_vm0, %v11023_v16  ;;  %9891 = vmatpush3.bf16.msra.mxu0 %v9888_v19 }
0x16cb   :  { %9893 = vmatprep.subr.bf16.mxu0 %v9892_v63 }
0x16cd   :  { %9278 = vmatmul.mubr.msk.f32.gmra.mrb[60].mxu0 %vm58_vm0, %v11025_v15 }
0x16ce   :  { %9895 = vmatpush3.bf16.msra.mxu0 %v9892_v63  ;;  %9302 = vmatprep.mubr.msk.f32.mxu0 %vm58_vm0, %v11009_v20 }
0x16d1   :  { %9303 = vmatmul.mubr.msk.f32.vlgmr.msra.gmra.mrb[62].mxu0 %vm58_vm0, %v11011_v7 }
0x16d2   :  { %9305 = vmatprep.mubr.msk.f32.mxu0 %vm58_vm0, %v11023_v16 }
0x16d5   :  { %9306 = vmatmul.mubr.msk.f32.gmra.mrb[64].mxu0 %vm58_vm0, %v11025_v15 }
0x1790   :  { %v9244_v31 = vpop.f32.mrb[60].mxu1 }
0x1791   :  { %v4391_v0 = vmul.f32 0.25, %v9244_v31  ;;  %v4381_v26 = vpop.f32.mrb[61].mxu1 }
0x1792   :  { %v4390_v14 = vmul.f32 0.25, %v4381_v26 }
0x1793   :  { %v4393_v2 = vadd.f32 %v11086_v1, %v4391_v0 }
0x1794   :  { %v9258_v6 = vpop.f32.mrb[56].mxu0  ;;  %v4392_v50 = vadd.f32 %v11086_v1, %v4390_v14 }
0x1795   :  { %v4585_v59 = vmul.f32 0.25, %v9258_v6  ;;  %v4575_v3 = vpop.f32.mrb[57].mxu0  ;;  %v4397_v5 = vsel %vm334_vm1, %v4393_v2, -inf  ;;  %v4697_v6 = vld [vmem:[#allocation2 + $0x300] sm:$0xff] }
0x1796   :  { %v4584_v9 = vmul.f32 0.25, %v4575_v3  ;;  %4398 = vmax.xlane.f32.xlu1 %v4397_v5  ;;  %v4394_v56 = vsel %vm334_vm1, %v4392_v50, -inf }
0x1797   :  { %4395 = vmax.xlane.f32.xlu0 %v4394_v56  ;;  %v4587_v51 = vadd.f32 %v11095_v58, %v4585_v59 }
0x1798   :  { %v4586_v10 = vadd.f32 %v11095_v58, %v4584_v9 }
0x1799   :  { %v4591_v4 = vsel %vm334_vm1, %v4587_v51, -inf }
0x179a   :  { %4592 = vmax.xlane.f32.xlu1 %v4591_v4  ;;  %v4588_v17 = vsel %vm334_vm1, %v4586_v10, -inf }
0x179b   :  { %4589 = vmax.xlane.f32.xlu0 %v4588_v17 }
0x179c   :  { %v9276_v23 = vpop.f32.mrb[58].mxu0 }
0x179d   :  { %v11104_v24 = vadd.f32 %v9276_v23, %v8209_v22  ;;  %v4778_v25 = vpop.f32.mrb[59].mxu0 }
0x179e   :  { %v11106_v32 = vadd.f32 %v8209_v22, %v4778_v25 }
0x17a0   :  { %v9279_v33 = vpop.f32.mrb[60].mxu0 }
0x17a1   :  { %v11108_v34 = vadd.f32 %v9279_v33, %v8209_v22  ;;  %v4788_v35 = vpop.f32.mrb[61].mxu0 }
0x17a2   :  { %v4789_v36 = vadd.f32 %v8209_v22, %v4788_v35 }
0x17a4   :  { %v9304_v40 = vpop.f32.mrb[62].mxu0  ;;  %9326 = vmatprep.mubr.msk.f32.mxu0 %vm334_vm1, %v4789_v36  ;;  %v8214_v36 = vld [vmem:[%s11621_s3 + $0x24] ss:$0 sm:$0xff] }
0x17a5   :  { %v4962_v43 = vadd.f32 %v9304_v40, %v8219_v37  ;;  %v4956_v28 = vpop.f32.mrb[63].mxu0 }
0x17a6   :  { %v4957_v44 = vadd.f32 %v8219_v37, %v4956_v28 }
0x17a8   :  { %v11114_v39 = vpack.c.bf16 %v4962_v43, %v4957_v44  ;;  %v9307_v46 = vpop.f32.mrb[64].mxu0 }
0x17a9   :  { %v4972_v48 = vadd.f32 %v9307_v46, %v8219_v37  ;;  %v4966_v11 = vpop.f32.mrb[65].mxu0 }
0x17aa   :  { %v4967_v45 = vadd.f32 %v8219_v37, %v4966_v11 }
0x17ac   :  { %v11116_v49 = vpack.c.bf16 %v4972_v48, %v4967_v45 }
0x1823   :  { %v4399_v12 = vpop.xlane.xlu1 %4398 }
0x1824   :  { %v4401_v13 = vsub.f32 %v4393_v2, %v4399_v12  ;;  %v4396_v52 = vpop.xlane.xlu0 %4395 }
0x1825   :  { %v4400_v42 = vsub.f32 %v4392_v50, %v4396_v52  ;;  %v4698_v50 = vld [vmem:[#allocation2 + $0x308] sm:$0xff] }
0x1826   :  { %v4404_v53 = vmul.f32 1.442695, %v4401_v13  ;;  %v9880_v9 = vpack.c.bf16 %v4698_v50, %v4697_v6 }
0x1827   :  { %v4402_v27 = vmul.f32 1.442695, %v4400_v42  ;;  %v4593_v29 = vpop.xlane.xlu1 %4592 }
0x1828   :  { %10208 = vpow2.f32 %v4404_v53  ;;  %v4595_v54 = vsub.f32 %v4587_v51, %v4593_v29  ;;  %v4590_v38 = vpop.xlane.xlu0 %4589  ;;  %v4699_v51 = vld [vmem:[#allocation2 + $0x310] sm:$0xff] }
0x1829   :  { %10210 = vpow2.f32 %v4402_v27  ;;  %v4594_v30 = vsub.f32 %v4586_v10, %v4590_v38  ;;  %v4700_v10 = vld [vmem:[#allocation2 + $0x318] sm:$0xff] }
0x182a   :  { %v4598_v8 = vmul.f32 1.442695, %v4595_v54  ;;  %v9884_v23 = vpack.c.bf16 %v4700_v10, %v4699_v51  ;;  %v5364_v51 = vld [vmem:[#allocation2 + $0x358] sm:$0xff] }
0x182b   :  { %v4596_v18 = vmul.f32 1.442695, %v4594_v30 }
0x182c   :  { %10212 = vpow2.f32 %v4598_v8 }
0x182d   :  { %10214 = vpow2.f32 %v4596_v18 }
0x1832   :  { %v10209_v21 = vpop.eup %10208 }
0x1833   :  { %v10211_v55 = vpop.eup %10210  ;;  %v4409_v57 = vsel %vm334_vm1, %v10209_v21, 0.0 }
0x1834   :  { %4410 = vadd.xlane.f32.xlu1 %v4409_v57  ;;  %v4406_v62 = vsel %vm334_vm1, %v10211_v55, 0.0 }
0x1835   :  { %4407 = vadd.xlane.f32.xlu0 %v4406_v62 }
0x1836   :  { %v10213_v19 = vpop.eup %10212 }
0x1837   :  { %v10215_v60 = vpop.eup %10214  ;;  %v4603_v61 = vsel %vm334_vm1, %v10213_v19, 0.0 }
0x1838   :  { %4604 = vadd.xlane.f32.xlu1 %v4603_v61  ;;  %v4600_v63 = vsel %vm334_vm1, %v10215_v60, 0.0 }
0x1839   :  { %4601 = vadd.xlane.f32.xlu0 %v4600_v63 }
0x18c1   :  { %v4411_v31 = vpop.xlane.xlu1 %4410 }
0x18c2   :  { %10216 = vrcp.f32 %v4411_v31  ;;  %v4408_v0 = vpop.xlane.xlu0 %4407 }
0x18c3   :  { %10218 = vrcp.f32 %v4408_v0 }
0x18c5   :  { %v4605_v26 = vpop.xlane.xlu1 %4604 }
0x18c6   :  { %10220 = vrcp.f32 %v4605_v26  ;;  %v4602_v14 = vpop.xlane.xlu0 %4601 }
0x18c7   :  { %10222 = vrcp.f32 %v4602_v14 }
0x18cc   :  { %v10217_v2 = vpop.eup %10216 }
0x18cd   :  { %v10219_v59 = vpop.eup %10218  ;;  %v4415_v5 = vmul.f32 %v10217_v2, %v10209_v21 }
0x18ce   :  { %v4414_v3 = vmul.f32 %v10219_v59, %v10211_v55 }
0x18d0   :  { %v10221_v56 = vpop.eup %10220  ;;  %9249 = vmatprep.mubr.msk.f32.mxu1 %vm334_vm1, %v4414_v3 }
0x18d1   :  { %v10223_v4 = vpop.eup %10222  ;;  %9250 = vmatmul.mubr.msk.f32.vlgmr.msra.gmra.mrb[62].mxu1 %vm334_vm1, %v4415_v5  ;;  %v4609_v22 = vmul.f32 %v10221_v56, %v10213_v19  ;;  %v5363_v56 = vld [vmem:[#allocation2 + $0x350] sm:$0xff] }
0x18d2   :  { %9871 = vmatpush3.bf16.msra.mxu1 %v11053_v47  ;;  %v4608_v17 = vmul.f32 %v10223_v4, %v10215_v60  ;;  %v9916_v10 = vpack.c.bf16 %v5364_v51, %v5363_v56 }
0x18d3   :  { %9881 = vmatprep.subr.bf16.mxu1 %v9880_v9 }
0x18d4   :  { %9263 = vmatprep.mubr.msk.f32.mxu1 %vm334_vm1, %v4608_v17 }
0x18d5   :  { %9264 = vmatmul.mubr.msk.f32.vlgmr.msra.gmra.mrb[64].mxu1 %vm334_vm1, %v4609_v22 }
0x18d6   :  { %9883 = vmatpush3.bf16.msra.mxu1 %v9880_v9  ;;  %9288 = vmatprep.mubr.msk.f32.mxu1 %vm58_vm0, %v11009_v20 }
0x18d7   :  { %9885 = vmatprep.subr.bf16.mxu1 %v9884_v23 }
0x18da   :  { %9887 = vmatpush3.bf16.msra.mxu1 %v9884_v23 }
0x18dd   :  { %9289 = vmatmul.mubr.msk.f32.vlgmr.msra.gmra.mrb[66].mxu1 %vm58_vm0, %v11011_v7 }
0x18de   :  { %9291 = vmatprep.mubr.msk.f32.mxu1 %vm58_vm0, %v11023_v16 }
0x18e1   :  { %9292 = vmatmul.mubr.msk.f32.gmra.mrb[68].mxu1 %vm58_vm0, %v11025_v15 }
0x18e2   :  { %9312 = vmatprep.mubr.msk.f32.mxu1 %vm334_vm1, %v11106_v32 }
0x19a4   :  { %v11137_v47 = vpop.f32.mrb[62].mxu1 }
0x19a5   :  { %v11139_v25 = vpop.f32.mrb[63].mxu1 }
0x19a8   :  { %v11141_v33 = vpop.f32.mrb[64].mxu1 }
0x19a9   :  { %v11143_v35 = vpop.f32.mrb[65].mxu1 }
0x19b0   :  { %v9290_v37 = vpop.f32.mrb[66].mxu1 }
0x19b1   :  { %v4873_v40 = vadd.f32 %v9290_v37, %v8214_v36  ;;  %v4867_v43 = vpop.f32.mrb[67].mxu1 }
0x19b2   :  { %v4868_v28 = vadd.f32 %v8214_v36, %v4867_v43 }
0x19b4   :  { %v9896_v44 = vpack.c.bf16 %v4873_v40, %v4868_v28  ;;  %v9293_v46 = vpop.f32.mrb[68].mxu1 }
0x19b5   :  { %v4883_v48 = vadd.f32 %v9293_v46, %v8214_v36  ;;  %v4877_v32 = vpop.f32.mrb[69].mxu1 }
0x19b6   :  { %v4878_v11 = vadd.f32 %v8214_v36, %v4877_v32  ;;  %9898 = vmatprep.subr.msk.bf16.mxu1 %vm10475_vm2, %v9896_v44  ;;  %v4691_v32 = vld [vmem:[#allocation2 + $0x340] sm:$0xff] }
0x19b7   :  { %9901 = vmatpush3.bf16.xpose.msk.msra.mxu1 %vm10475_vm2, %v9896_v44 }
0x19b8   :  { %v9906_v45 = vpack.c.bf16 %v4883_v48, %v4878_v11  ;;  %9903 = vmatprep.subr.bf16.mxu1 %v11114_v39  ;;  %v4692_v11 = vld [vmem:[#allocation2 + $0x348] sm:$0xff] }
0x19ba   :  { %9908 = vmatprep.subr.msk.bf16.mxu0 %vm10475_vm2, %v9906_v45 }
0x19bb   :  { %9911 = vmatpush3.bf16.xpose.msk.msra.mxu0 %vm10475_vm2, %v9906_v45  ;;  %v9920_v45 = vpack.c.bf16 %v4692_v11, %v4691_v32 }
0x19bc   :  { %9917 = vmatprep.subr.bf16.mxu0 %v9916_v10 }
0x19be   :  { %9313 = vmatmul.mubr.msk.f32.vlgmr.msra.gmra.mrb[70].mxu1 %vm334_vm1, %v11104_v24 }
0x19bf   :  { %9905 = vmatpush3.bf16.msra.mxu1 %v11114_v39 }
0x19c0   :  { %9913 = vmatprep.subr.bf16.mxu1 %v11116_v49 }
0x19c2   :  { %9327 = vmatmul.mubr.msk.f32.vlgmr.msra.gmra.mrb[66].mxu0 %vm334_vm1, %v11108_v34 }
0x19c3   :  { %9919 = vmatpush3.bf16.msra.mxu0 %v9916_v10 }
0x19c4   :  { %9921 = vmatprep.subr.bf16.mxu0 %v9920_v45 }
0x1a91   :  { %v9314_v12 = vpop.f32.mrb[70].mxu1 }
0x1a92   :  { %v5063_v13 = vmul.f32 0.25, %v9314_v12  ;;  %v5053_v52 = vpop.f32.mrb[71].mxu1 }
0x1a93   :  { %v5062_v42 = vmul.f32 0.25, %v5053_v52 }
0x1a94   :  { %v5065_v53 = vadd.f32 %v11086_v1, %v5063_v13 }
0x1a95   :  { %v9328_v27 = vpop.f32.mrb[66].mxu0  ;;  %v5064_v29 = vadd.f32 %v11086_v1, %v5062_v42 }
0x1a96   :  { %v5257_v54 = vmul.f32 0.25, %v9328_v27  ;;  %v5247_v38 = vpop.f32.mrb[67].mxu0  ;;  %v5069_v24 = vsel %vm334_vm1, %v5065_v53, -inf }
0x1a97   :  { %v5256_v30 = vmul.f32 0.25, %v5247_v38  ;;  %5070 = vmax.xlane.f32.xlu1 %v5069_v24  ;;  %v5066_v39 = vsel %vm334_vm1, %v5064_v29, -inf }
0x1a98   :  { %5067 = vmax.xlane.f32.xlu0 %v5066_v39  ;;  %v5259_v34 = vadd.f32 %v11095_v58, %v5257_v54 }
0x1a99   :  { %v5258_v8 = vadd.f32 %v11095_v58, %v5256_v30 }
0x1a9a   :  { %v5263_v18 = vsel %vm334_vm1, %v5259_v34, -inf }
0x1a9b   :  { %5264 = vmax.xlane.f32.xlu1 %v5263_v18  ;;  %v5260_v21 = vsel %vm334_vm1, %v5258_v8, -inf }
0x1a9c   :  { %5261 = vmax.xlane.f32.xlu0 %v5260_v21 }
0x1b24   :  { %v5071_v1 = vpop.xlane.xlu1 %5070 }
0x1b25   :  { %v5073_v55 = vsub.f32 %v5065_v53, %v5071_v1  ;;  %v5068_v57 = vpop.xlane.xlu0 %5067 }
0x1b26   :  { %v5072_v62 = vsub.f32 %v5064_v29, %v5068_v57 }
0x1b27   :  { %v5076_v19 = vmul.f32 1.442695, %v5073_v55 }
0x1b28   :  { %v5074_v60 = vmul.f32 1.442695, %v5072_v62  ;;  %v5265_v61 = vpop.xlane.xlu1 %5264 }
0x1b29   :  { %10224 = vpow2.f32 %v5076_v19  ;;  %v5267_v63 = vsub.f32 %v5259_v34, %v5265_v61  ;;  %v5262_v31 = vpop.xlane.xlu0 %5261  ;;  %v5650_v19 = vld [vmem:[#allocation2 + $0x360] sm:$0xff] }
0x1b2a   :  { %10226 = vpow2.f32 %v5074_v60  ;;  %v5266_v0 = vsub.f32 %v5258_v8, %v5262_v31  ;;  %v5651_v60 = vld [vmem:[#allocation2 + $0x368] sm:$0xff]  ;;  %v5653_v31 = vld [vmem:[#allocation2 + $0x378] sm:$0xff] }
0x1b2b   :  { %v5270_v26 = vmul.f32 1.442695, %v5267_v63  ;;  %v9924_v61 = vpack.c.bf16 %v5651_v60, %v5650_v19  ;;  %v5652_v63 = vld [vmem:[#allocation2 + $0x370] sm:$0xff]  ;;  %v5785_v19 = vld [vmem:[#allocation2 + $0x3a8] sm:$0xff] }
0x1b2c   :  { %v5268_v58 = vmul.f32 1.442695, %v5266_v0  ;;  %v9928_v0 = vpack.c.bf16 %v5653_v31, %v5652_v63  ;;  %v5787_v63 = vld [vmem:[#allocation2 + $0x3b8] sm:$0xff] }
0x1b2d   :  { %10228 = vpow2.f32 %v5270_v26 }
0x1b2e   :  { %10230 = vpow2.f32 %v5268_v58 }
0x1b33   :  { %v10225_v14 = vpop.eup %10224 }
0x1b34   :  { %v10227_v2 = vpop.eup %10226  ;;  %v5081_v6 = vsel %vm334_vm1, %v10225_v14, 0.0 }
0x1b35   :  { %5082 = vadd.xlane.f32.xlu1 %v5081_v6  ;;  %v5078_v50 = vsel %vm334_vm1, %v10227_v2, 0.0 }
0x1b36   :  { %5079 = vadd.xlane.f32.xlu0 %v5078_v50 }
0x1b37   :  { %v10229_v59 = vpop.eup %10228 }
0x1b38   :  { %v10231_v3 = vpop.eup %10230  ;;  %v5275_v5 = vsel %vm334_vm1, %v10229_v59, 0.0 }
0x1b39   :  { %5276 = vadd.xlane.f32.xlu1 %v5275_v5  ;;  %v5272_v9 = vsel %vm334_vm1, %v10231_v3, 0.0 }
0x1b3a   :  { %5273 = vadd.xlane.f32.xlu0 %v5272_v9 }
0x1bc2   :  { %v5083_v4 = vpop.xlane.xlu1 %5082 }
0x1bc3   :  { %10232 = vrcp.f32 %v5083_v4  ;;  %v5080_v17 = vpop.xlane.xlu0 %5079 }
0x1bc4   :  { %10234 = vrcp.f32 %v5080_v17 }
0x1bc6   :  { %v5277_v22 = vpop.xlane.xlu1 %5276 }
0x1bc7   :  { %10236 = vrcp.f32 %v5277_v22  ;;  %v5274_v23 = vpop.xlane.xlu0 %5273 }
0x1bc8   :  { %10238 = vrcp.f32 %v5274_v23 }
0x1bcd   :  { %v10233_v36 = vpop.eup %10232 }
0x1bce   :  { %v10235_v37 = vpop.eup %10234  ;;  %v5087_v43 = vmul.f32 %v10233_v36, %v10225_v14 }
0x1bcf   :  { %v5086_v40 = vmul.f32 %v10235_v37, %v10227_v2 }
0x1bd1   :  { %v10237_v28 = vpop.eup %10236  ;;  %9319 = vmatprep.mubr.msk.f32.mxu1 %vm334_vm1, %v5086_v40 }
0x1bd2   :  { %v10239_v44 = vpop.eup %10238  ;;  %9320 = vmatmul.mubr.msk.f32.vlgmr.msra.gmra.mrb[72].mxu1 %vm334_vm1, %v5087_v43  ;;  %v5281_v48 = vmul.f32 %v10237_v28, %v10229_v59 }
0x1bd3   :  { %9915 = vmatpush3.bf16.msra.mxu1 %v11116_v49  ;;  %v5280_v46 = vmul.f32 %v10239_v44, %v10231_v3  ;;  %v8247_v49 = vld [vmem:[%s11621_s3 + $0x26] ss:$0 sm:$0xff] }
0x1bd4   :  { %9925 = vmatprep.subr.bf16.mxu1 %v9924_v61 }
0x1bd5   :  { %9333 = vmatprep.mubr.msk.f32.mxu1 %vm334_vm1, %v5280_v46 }
0x1bd6   :  { %9334 = vmatmul.mubr.msk.f32.vlgmr.msra.gmra.mrb[74].mxu1 %vm334_vm1, %v5281_v48 }
0x1bd7   :  { %9927 = vmatpush3.bf16.msra.mxu1 %v9924_v61  ;;  %v5786_v61 = vld [vmem:[#allocation2 + $0x3b0] sm:$0xff] }
0x1bd8   :  { %9929 = vmatprep.subr.bf16.mxu1 %v9928_v0  ;;  %v9944_v31 = vpack.c.bf16 %v5787_v63, %v5786_v61 }
0x1bdb   :  { %9931 = vmatpush3.bf16.msra.mxu1 %v9928_v0  ;;  %v8251_v0 = vld [vmem:[%s11621_s3 + $0x27] ss:$0 sm:$0xff] }
0x1ca5   :  { %v9321_v12 = vpop.f32.mrb[72].mxu1 }
0x1ca6   :  { %v5160_v13 = vpop.f32.mrb[73].mxu1 }
0x1ca7   :  { %9340 = vmatprep.mubr.msk.f32.mxu0 %vm334_vm1, %v5160_v13 }
0x1ca8   :  { %9341 = vmatmul.mubr.msk.f32.vlgmr.msra.gmra.mrb[68].mxu0 %vm334_vm1, %v9321_v12 }
0x1ca9   :  { %v9335_v52 = vpop.f32.mrb[74].mxu1  ;;  %9923 = vmatpush3.bf16.msra.mxu0 %v9920_v45 }
0x1caa   :  { %v5354_v42 = vpop.f32.mrb[75].mxu1 }
0x1cab   :  { %9343 = vmatprep.mubr.msk.f32.mxu0 %vm334_vm1, %v5354_v42  ;;  %v8248_v42 = vld [vmem:[%s11621_s3 + $0x29] ss:$0 sm:$0xff] }
0x1cac   :  { %9344 = vmatmul.mubr.msk.f32.gmra.mrb[70].mxu0 %vm334_vm1, %v9335_v52 }
0x1cad   :  { %9350 = vmatprep.mubr.msk.f32.mxu0 %vm334_vm1, %v11139_v25 }
0x1cb0   :  { %9351 = vmatmul.mubr.msk.f32.vlgmr.msra.gmra.mrb[68].mxu0 %vm334_vm1, %v11137_v47 }
0x1cb1   :  { %9353 = vmatprep.mubr.msk.f32.mxu0 %vm334_vm1, %v11143_v35 }
0x1cb4   :  { %9354 = vmatmul.mubr.msk.f32.gmra.mrb[70].mxu0 %vm334_vm1, %v11141_v33 }
0x1d83   :  { %v9352_v53 = vpop.f32.mrb[68].mxu0 }
0x1d84   :  { %v5567_v27 = vadd.f32 %v9352_v53, %v8247_v49  ;;  %v5540_v29 = vpop.f32.mrb[69].mxu0 }
0x1d85   :  { %v5566_v54 = vadd.f32 %v8247_v49, %v5540_v29  ;;  %v8249_v29 = vld [vmem:[%s11621_s3 + $0x2a] ss:$0 sm:$0xff] }
0x1d86   :  { %v11196_v38 = vadd.f32 %v5567_v27, %v11011_v7 }
0x1d87   :  { %v11199_v25 = vadd.f32 %v5566_v54, %v11009_v20  ;;  %v9355_v47 = vpop.f32.mrb[70].mxu0 }
0x1d88   :  { %v5569_v24 = vadd.f32 %v9355_v47, %v8247_v49  ;;  %v5550_v35 = vpop.f32.mrb[71].mxu0  ;;  %v5577_v33 = vsel %vm58_vm0, %v11196_v38, 0.0  ;;  %v5591_v30 = vmul.f32 %v11196_v38, %v11196_v38 }
0x1d89   :  { %v5568_v39 = vadd.f32 %v8247_v49, %v5550_v35  ;;  %5578 = vadd.xlane.f32.xlu1 %v5577_v33  ;;  %v5574_v34 = vsel %vm58_vm0, %v11199_v25, 0.0  ;;  %v5590_v7 = vmul.f32 %v11199_v25, %v11199_v25 }
0x1d8a   :  { %5575 = vadd.xlane.f32.xlu0 %v5574_v34  ;;  %v11210_v20 = vadd.f32 %v5569_v24, %v11025_v15  ;;  %v5597_v8 = vsel %vm58_vm0, %v5591_v30, 0.0 }
0x1d8b   :  { %v11214_v18 = vadd.f32 %v5568_v39, %v11023_v16  ;;  %v5594_v21 = vsel %vm58_vm0, %v5590_v7, 0.0 }
0x1d8c   :  { %v5583_v1 = vsel %vm58_vm0, %v11210_v20, 0.0  ;;  %v5593_v55 = vmul.f32 %v11210_v20, %v11210_v20 }
0x1d8d   :  { %5598 = vadd.xlane.f32.xlu1 %v5597_v8  ;;  %v5580_v15 = vsel %vm58_vm0, %v11214_v18, 0.0  ;;  %v5592_v57 = vmul.f32 %v11214_v18, %v11214_v18 }
0x1d8e   :  { %5595 = vadd.xlane.f32.xlu0 %v5594_v21  ;;  %v5603_v16 = vsel %vm58_vm0, %v5593_v55, 0.0 }
0x1d8f   :  { %v5600_v62 = vsel %vm58_vm0, %v5592_v57, 0.0  ;;  %v5783_v57 = vld [vmem:[#allocation2 + $0x398] sm:$0xff] }
0x1d91   :  { %5584 = vadd.xlane.f32.xlu1 %v5583_v1 }
0x1d92   :  { %5581 = vadd.xlane.f32.xlu0 %v5580_v15  ;;  %v5782_v15 = vld [vmem:[#allocation2 + $0x390] sm:$0xff] }
0x1d95   :  { %5604 = vadd.xlane.f32.xlu1 %v5603_v16  ;;  %v9936_v16 = vpack.c.bf16 %v5783_v57, %v5782_v15 }
0x1d96   :  { %5601 = vadd.xlane.f32.xlu0 %v5600_v62  ;;  %v5784_v62 = vld [vmem:[#allocation2 + $0x3a0] sm:$0xff] }
0x1d97   :  { %v9940_v60 = vpack.c.bf16 %v5785_v19, %v5784_v62 }
0x1e16   :  { %v5579_v26 = vpop.xlane.xlu1 %5578 }
0x1e17   :  { %v5587_v58 = vmul.f32 0.03125, %v5579_v26  ;;  %v5576_v14 = vpop.xlane.xlu0 %5575 }
0x1e18   :  { %v5586_v2 = vmul.f32 0.03125, %v5576_v14 }
0x1e19   :  { %v5611_v50 = vmul.f32 %v5587_v58, %v5587_v58  ;;  %v5619_v12 = vsub.f32 %v11196_v38, %v5587_v58 }
0x1e1a   :  { %v5599_v6 = vpop.xlane.xlu1 %5598  ;;  %v5610_v5 = vmul.f32 %v5586_v2, %v5586_v2  ;;  %v5618_v52 = vsub.f32 %v11199_v25, %v5586_v2 }
0x1e1b   :  { %v5607_v59 = vmul.f32 0.03125, %v5599_v6  ;;  %v5596_v3 = vpop.xlane.xlu0 %5595 }
0x1e1c   :  { %v5606_v9 = vmul.f32 0.03125, %v5596_v3 }
0x1e1d   :  { %v5615_v56 = vsub.f32 %v5607_v59, %v5611_v50 }
0x1e1e   :  { %v5614_v51 = vsub.f32 %v5606_v9, %v5610_v5  ;;  %v5585_v10 = vpop.xlane.xlu1 %5584 }
0x1e1f   :  { %v5623_v4 = vadd.f32 1e-12, %v5615_v56  ;;  %v5589_v17 = vmul.f32 0.03125, %v5585_v10  ;;  %v5582_v22 = vpop.xlane.xlu0 %5581 }
0x1e20   :  { %v5622_v23 = vadd.f32 1e-12, %v5614_v51  ;;  %v5588_v36 = vmul.f32 0.03125, %v5582_v22 }
0x1e21   :  { %10240 = vrsqrt.f32 %v5623_v4  ;;  %v5613_v40 = vmul.f32 %v5589_v17, %v5589_v17  ;;  %v5621_v38 = vsub.f32 %v11210_v20, %v5589_v17  ;;  %v5780_v20 = vld [vmem:[#allocation2 + $0x380] sm:$0xff] }
0x1e22   :  { %10242 = vrsqrt.f32 %v5622_v23  ;;  %v5605_v37 = vpop.xlane.xlu1 %5604  ;;  %v5612_v44 = vmul.f32 %v5588_v36, %v5588_v36  ;;  %v5620_v33 = vsub.f32 %v11214_v18, %v5588_v36  ;;  %v5781_v18 = vld [vmem:[#allocation2 + $0x388] sm:$0xff] }
0x1e23   :  { %v5609_v43 = vmul.f32 0.03125, %v5605_v37  ;;  %v5602_v28 = vpop.xlane.xlu0 %5601  ;;  %v9932_v55 = vpack.c.bf16 %v5781_v18, %v5780_v20 }
0x1e24   :  { %v5608_v46 = vmul.f32 0.03125, %v5602_v28 }
0x1e25   :  { %v5617_v48 = vsub.f32 %v5609_v43, %v5613_v40  ;;  %9933 = vmatprep.subr.bf16.mxu1 %v9932_v55 }
0x1e26   :  { %v5616_v32 = vsub.f32 %v5608_v46, %v5612_v44 }
0x1e27   :  { %v5625_v11 = vadd.f32 1e-12, %v5617_v48 }
0x1e28   :  { %v5624_v45 = vadd.f32 1e-12, %v5616_v32 }
0x1e29   :  { %10244 = vrsqrt.f32 %v5625_v11 }
0x1e2a   :  { %10246 = vrsqrt.f32 %v5624_v45 }
0x1e2b   :  { %v10241_v13 = vpop.eup %10240 }
0x1e2c   :  { %v10243_v49 = vpop.eup %10242  ;;  %v5631_v53 = vmul.f32 %v10241_v13, %v5619_v12 }
0x1e2d   :  { %v5630_v27 = vmul.f32 %v10243_v49, %v5618_v52 }
0x1e2e   :  { %v5639_v54 = vmul.f32 %v8248_v42, %v5631_v53 }
0x1e2f   :  { %v5638_v47 = vmul.f32 %v8248_v42, %v5630_v27 }
0x1e30   :  { %v11238_v35 = vadd.f32 %v8249_v29, %v5639_v54 }
0x1e31   :  { %v11235_v24 = vadd.f32 %v8249_v29, %v5638_v47 }
0x1e32   :  { %v10089_v63 = vround.rtne.f32 %v11238_v35 }
0x1e33   :  { %v10245_v25 = vpop.eup %10244  ;;  %9364 = vmatprep.mubr.msk.f32.mxu1 %vm58_vm0, %v11235_v24 }
0x1e34   :  { %v10247_v30 = vpop.eup %10246  ;;  %9365 = vmatmul.mubr.msk.f32.vlgmr.msra.gmra.mrb[76].mxu1 %vm58_vm0, %v11238_v35  ;;  %v5633_v39 = vmul.f32 %v10245_v25, %v5621_v38 }
0x1e35   :  { %v5632_v34 = vmul.f32 %v10247_v30, %v5620_v33  ;;  %9935 = vmatpush3.bf16.msra.mxu1 %v9932_v55 }
0x1e36   :  { %v5641_v7 = vmul.f32 %v8248_v42, %v5633_v39  ;;  %9937 = vmatprep.subr.bf16.mxu1 %v9936_v16 }
0x1e37   :  { %v5640_v8 = vmul.f32 %v8248_v42, %v5632_v34 }
0x1e38   :  { %v11247_v1 = vadd.f32 %v8249_v29, %v5641_v7 }
0x1e39   :  { %v11245_v21 = vadd.f32 %v8249_v29, %v5640_v8  ;;  %9939 = vmatpush3.bf16.msra.mxu1 %v9936_v16 }
0x1e3a   :  { %9941 = vmatprep.subr.bf16.mxu1 %v9940_v60 }
0x1e3b   :  { %9367 = vmatprep.mubr.msk.f32.mxu1 %vm58_vm0, %v11245_v21 }
0x1e3c   :  { %9368 = vmatmul.mubr.msk.f32.gmra.mrb[78].mxu1 %vm58_vm0, %v11247_v1 }
0x1e3d   :  { %9943 = vmatpush3.bf16.msra.mxu1 %v9940_v60 }
0x1e3e   :  { %9945 = vmatprep.subr.bf16.mxu1 %v9944_v31 }
0x1e41   :  { %9947 = vmatpush3.bf16.msra.mxu1 %v9944_v31  ;;  %v10088_v31 = vround.rtne.f32 %v11235_v24 }
0x1f07   :  { %v9366_v26 = vpop.f32.mrb[76].mxu1 }
0x1f08   :  { %v5743_v58 = vadd.f32 %v9366_v26, %v8251_v0  ;;  %v5737_v14 = vpop.f32.mrb[77].mxu1  ;;  %v8259_v26 = vld [vmem:[%s11621_s3 + $0x28] ss:$0 sm:$0xff] }
0x1f09   :  { %v5738_v2 = vadd.f32 %v8251_v0, %v5737_v14 }
0x1f0a   :  { %v10085_v6 = vround.rtne.f32 %v5743_v58  ;;  %v5772_v58 = vmax.f32 %v10088_v31, -128.0 }
0x1f0b   :  { %v10084_v50 = vround.rtne.f32 %v5738_v2 }
0x1f0c   :  { %v5761_v59 = vmax.f32 %v10085_v6, -128.0 }
0x1f0d   :  { %v5760_v3 = vmax.f32 %v10084_v50, -128.0 }
0x1f0e   :  { %v5765_v5 = vmin.f32 %v5761_v59, 127.0  ;;  %v10091_v59 = vround.rtne.f32 %v11247_v1 }
0x1f0f   :  { %v5764_v9 = vmin.f32 %v5760_v3, 127.0  ;;  %v9369_v56 = vpop.f32.mrb[78].mxu1  ;;  %v5776_v3 = vmin.f32 %v5772_v58, 127.0 }
0x1f10   :  { %v5796_v51 = vmul.f32 0.044715, %v5765_v5  ;;  %v5753_v10 = vadd.f32 %v9369_v56, %v8251_v0  ;;  %v5747_v4 = vpop.f32.mrb[79].mxu1  ;;  %v5792_v8 = vmul.f32 0.5, %v5765_v5 }
0x1f11   :  { %v5795_v17 = vmul.f32 0.044715, %v5764_v9  ;;  %v5748_v22 = vadd.f32 %v8251_v0, %v5747_v4  ;;  %v5791_v34 = vmul.f32 0.5, %v5764_v9  ;;  %v5773_v0 = vmax.f32 %v10089_v63, -128.0 }
0x1f12   :  { %v5800_v23 = vmul.f32 %v5796_v51, %v5765_v5  ;;  %v10087_v36 = vround.rtne.f32 %v5753_v10  ;;  %v5775_v51 = vmax.f32 %v10091_v59, -128.0 }
0x1f13   :  { %v5799_v37 = vmul.f32 %v5795_v17, %v5764_v9  ;;  %v10086_v40 = vround.rtne.f32 %v5748_v22  ;;  %v5777_v2 = vmin.f32 %v5773_v0, 127.0 }
0x1f14   :  { %v5804_v43 = vmul.f32 %v5800_v23, %v5765_v5  ;;  %v5763_v28 = vmax.f32 %v10087_v36, -128.0  ;;  %v5779_v22 = vmin.f32 %v5775_v51, 127.0 }
0x1f15   :  { %v5803_v44 = vmul.f32 %v5799_v37, %v5764_v9  ;;  %v5762_v46 = vmax.f32 %v10086_v40, -128.0 }
0x1f16   :  { %v5808_v48 = vadd.f32 %v5804_v43, %v5765_v5  ;;  %v5767_v32 = vmin.f32 %v5763_v28, 127.0 }
0x1f17   :  { %v5766_v11 = vmin.f32 %v5762_v46, 127.0  ;;  %v5807_v45 = vadd.f32 %v5803_v44, %v5764_v9  ;;  %v10090_v9 = vround.rtne.f32 %v11245_v21 }
0x1f18   :  { %v5812_v12 = vmul.f32 0.7978846, %v5808_v48  ;;  %v5798_v13 = vmul.f32 0.044715, %v5767_v32  ;;  %v5794_v19 = vmul.f32 0.5, %v5767_v32 }
0x1f19   :  { %v5797_v52 = vmul.f32 0.044715, %v5766_v11  ;;  %v5811_v42 = vmul.f32 0.7978846, %v5807_v45  ;;  %v5793_v16 = vmul.f32 0.5, %v5766_v11  ;;  %v5774_v1 = vmax.f32 %v10090_v9, -128.0 }
0x1f1a   :  { %10248 = vtanh.f32 %v5812_v12  ;;  %v5802_v49 = vmul.f32 %v5798_v13, %v5767_v32 }
0x1f1b   :  { %v5801_v53 = vmul.f32 %v5797_v52, %v5766_v11  ;;  %10250 = vtanh.f32 %v5811_v42  ;;  %v5778_v40 = vmin.f32 %v5774_v1, 127.0  ;;  %v6009_v52 = vld [vmem:[#allocation2 + $0x3c0] sm:$0xff]  ;;  %v6010_v42 = vld [vmem:[#allocation2 + $0x3c8] sm:$0xff] }
0x1f1c   :  { %v5806_v27 = vmul.f32 %v5802_v49, %v5767_v32  ;;  %v6017_v49 = vld [vmem:[#allocation2 + $0x400] sm:$0xff] }
0x1f1d   :  { %v5805_v29 = vmul.f32 %v5801_v53, %v5766_v11  ;;  %v9948_v53 = vpack.c.bf16 %v6010_v42, %v6009_v52 }
0x1f1e   :  { %v5810_v54 = vadd.f32 %v5806_v27, %v5767_v32  ;;  %v6018_v27 = vld [vmem:[#allocation2 + $0x408] sm:$0xff] }
0x1f1f   :  { %v5809_v47 = vadd.f32 %v5805_v29, %v5766_v11  ;;  %v9964_v29 = vpack.c.bf16 %v6018_v27, %v6017_v49  ;;  %9949 = vmatprep.subr.bf16.mxu0 %v9948_v53 }
0x1f20   :  { %v5814_v38 = vmul.f32 0.7978846, %v5810_v54  ;;  %9951 = vmatpush3.bf16.msra.mxu0 %v9948_v53  ;;  %v6011_v54 = vld [vmem:[#allocation2 + $0x3d0] sm:$0xff] }
0x1f21   :  { %v5813_v25 = vmul.f32 0.7978846, %v5809_v47  ;;  %9965 = vmatprep.subr.bf16.mxu1 %v9964_v29  ;;  %v6012_v47 = vld [vmem:[#allocation2 + $0x3d8] sm:$0xff] }
0x1f22   :  { %10252 = vtanh.f32 %v5814_v38  ;;  %v6019_v38 = vld [vmem:[#allocation2 + $0x410] sm:$0xff] }
0x1f23   :  { %10254 = vtanh.f32 %v5813_v25  ;;  %v9952_v25 = vpack.c.bf16 %v6012_v47, %v6011_v54  ;;  %v8269_v54 = vld [vmem:[%s11621_s3 + $0x30] ss:$0 sm:$0xff] }
0x1f24   :  { %v10249_v33 = vpop.eup %10248 }
0x1f25   :  { %v10251_v30 = vpop.eup %10250  ;;  %v5820_v39 = vadd.f32 1.0, %v10249_v33  ;;  %v6020_v33 = vld [vmem:[#allocation2 + $0x418] sm:$0xff]  ;;  %9953 = vmatprep.subr.bf16.mxu0 %v9952_v25 }
0x1f26   :  { %v5819_v7 = vadd.f32 1.0, %v10251_v30  ;;  %v9968_v30 = vpack.c.bf16 %v6020_v33, %v6019_v38  ;;  %9955 = vmatpush3.bf16.msra.mxu0 %v9952_v25 }
0x1f27   :  { %v5824_v18 = vmul.f32 %v5820_v39, %v5792_v8  ;;  %v6013_v39 = vld [vmem:[#allocation2 + $0x3e0] sm:$0xff] }
0x1f28   :  { %v5823_v20 = vmul.f32 %v5819_v7, %v5791_v34  ;;  %v6014_v34 = vld [vmem:[#allocation2 + $0x3e8] sm:$0xff] }
0x1f29   :  { %v9956_v7 = vpack.c.bf16 %v6014_v34, %v6013_v39 }
0x1f2a   :  { %9386 = vmatprep.mubr.msk.f32.mxu1 %vm1852_vm3, %v5823_v20 }
0x1f2b   :  { %9387 = vmatmul.mubr.msk.f32.vlgmr.msra.gmra.mrb[80].mxu1 %vm1852_vm3, %v5824_v18  ;;  %9957 = vmatprep.subr.bf16.mxu0 %v9956_v7 }
0x1f2c   :  { %v10253_v55 = vpop.eup %10252  ;;  %9967 = vmatpush3.bf16.msra.mxu1 %v9964_v29  ;;  %v8279_v29 = vld [vmem:[%s11621_s3 + $0x32] ss:$0 sm:$0xff] }
0x1f2d   :  { %v10255_v15 = vpop.eup %10254  ;;  %v5822_v57 = vadd.f32 1.0, %v10253_v55  ;;  %9969 = vmatprep.subr.bf16.mxu1 %v9968_v30 }
0x1f2e   :  { %v5821_v62 = vadd.f32 1.0, %v10255_v15 }
0x1f2f   :  { %v5826_v61 = vmul.f32 %v5822_v57, %v5794_v19 }
0x1f30   :  { %v5825_v60 = vmul.f32 %v5821_v62, %v5793_v16  ;;  %9971 = vmatpush3.bf16.msra.mxu1 %v9968_v30 }
0x1f32   :  { %9389 = vmatprep.mubr.msk.f32.mxu1 %vm1852_vm3, %v5825_v60 }
0x1f33   :  { %9390 = vmatmul.mubr.msk.f32.gmra.mrb[82].mxu1 %vm1852_vm3, %v5826_v61 }
0x1ffe   :  { %v9388_v14 = vpop.f32.mrb[80].mxu1 }
0x1fff   :  { %v5915_v6 = vadd.f32 %v9388_v14, %v8259_v26  ;;  %v5909_v50 = vpop.f32.mrb[81].mxu1 }
0x2000   :  { %v5910_v5 = vadd.f32 %v8259_v26, %v5909_v50 }
0x2001   :  { %v11267_v56 = vadd.f32 %v5915_v6, %v5777_v2 }
0x2002   :  { %v11269_v35 = vadd.f32 %v5910_v5, %v5776_v3 }
0x2003   :  { %v5935_v24 = vsel %vm58_vm0, %v11267_v56, 0.0  ;;  %v5949_v10 = vmul.f32 %v11267_v56, %v11267_v56 }
0x2004   :  { %5936 = vadd.xlane.f32.xlu1 %v5935_v24  ;;  %v5932_v4 = vsel %vm58_vm0, %v11269_v35, 0.0  ;;  %v5948_v17 = vmul.f32 %v11269_v35, %v11269_v35 }
0x2005   :  { %5933 = vadd.xlane.f32.xlu0 %v5932_v4  ;;  %v5955_v37 = vsel %vm58_vm0, %v5949_v10, 0.0 }
0x2006   :  { %v9391_v21 = vpop.f32.mrb[82].mxu1  ;;  %v5952_v28 = vsel %vm58_vm0, %v5948_v17, 0.0 }
0x2007   :  { %v5925_v23 = vadd.f32 %v9391_v21, %v8259_v26  ;;  %v5919_v36 = vpop.f32.mrb[83].mxu1 }
0x2008   :  { %v5920_v43 = vadd.f32 %v8259_v26, %v5919_v36  ;;  %5956 = vadd.xlane.f32.xlu1 %v5955_v37 }
0x2009   :  { %v11281_v44 = vadd.f32 %v5925_v23, %v5779_v22  ;;  %5953 = vadd.xlane.f32.xlu0 %v5952_v28  ;;  %v8264_v22 = vld [vmem:[%s11621_s3 + $0x2b] ss:$0 sm:$0xff] }
0x200a   :  { %v11283_v46 = vadd.f32 %v5920_v43, %v5778_v40  ;;  %v8265_v40 = vld [vmem:[%s11621_s3 + $0x2c] ss:$0 sm:$0xff] }
0x200b   :  { %v5941_v48 = vsel %vm58_vm0, %v11281_v44, 0.0  ;;  %v5951_v32 = vmul.f32 %v11281_v44, %v11281_v44 }
0x200c   :  { %5942 = vadd.xlane.f32.xlu1 %v5941_v48  ;;  %v5938_v11 = vsel %vm58_vm0, %v11283_v46, 0.0  ;;  %v5950_v45 = vmul.f32 %v11283_v46, %v11283_v46  ;;  %v6015_v48 = vld [vmem:[#allocation2 + $0x3f0] sm:$0xff] }
0x200d   :  { %5939 = vadd.xlane.f32.xlu0 %v5938_v11  ;;  %v5961_v12 = vsel %vm58_vm0, %v5951_v32, 0.0  ;;  %v6016_v32 = vld [vmem:[#allocation2 + $0x3f8] sm:$0xff] }
0x200e   :  { %v5958_v13 = vsel %vm58_vm0, %v5950_v45, 0.0  ;;  %v9960_v45 = vpack.c.bf16 %v6016_v32, %v6015_v48 }
0x2010   :  { %5962 = vadd.xlane.f32.xlu1 %v5961_v12 }
0x2011   :  { %5959 = vadd.xlane.f32.xlu0 %v5958_v13 }
0x2091   :  { %v5937_v8 = vpop.xlane.xlu1 %5936 }
0x2092   :  { %v5945_v20 = vmul.f32 0.03125, %v5937_v8  ;;  %v5934_v18 = vpop.xlane.xlu0 %5933 }
0x2093   :  { %v5944_v55 = vmul.f32 0.03125, %v5934_v18 }
0x2094   :  { %v5969_v57 = vmul.f32 %v5945_v20, %v5945_v20  ;;  %v5977_v1 = vsub.f32 %v11267_v56, %v5945_v20 }
0x2095   :  { %v5957_v15 = vpop.xlane.xlu1 %5956  ;;  %v5968_v19 = vmul.f32 %v5944_v55, %v5944_v55  ;;  %v5976_v21 = vsub.f32 %v11269_v35, %v5944_v55 }
0x2096   :  { %v5965_v16 = vmul.f32 0.03125, %v5957_v15  ;;  %v5954_v62 = vpop.xlane.xlu0 %5953 }
0x2097   :  { %v5964_v60 = vmul.f32 0.03125, %v5954_v62  ;;  %v8274_v62 = vld [vmem:[%s11621_s3 + $0x31] ss:$0 sm:$0xff] }
0x2098   :  { %v5973_v61 = vsub.f32 %v5965_v16, %v5969_v57 }
0x2099   :  { %v5972_v63 = vsub.f32 %v5964_v60, %v5968_v19  ;;  %v5943_v31 = vpop.xlane.xlu1 %5942 }
0x209a   :  { %v5981_v0 = vadd.f32 1e-12, %v5973_v61  ;;  %v5947_v26 = vmul.f32 0.03125, %v5943_v31  ;;  %v5940_v58 = vpop.xlane.xlu0 %5939 }
0x209b   :  { %v5980_v14 = vadd.f32 1e-12, %v5972_v63  ;;  %v5946_v2 = vmul.f32 0.03125, %v5940_v58 }
0x209c   :  { %10256 = vrsqrt.f32 %v5981_v0  ;;  %v5971_v50 = vmul.f32 %v5947_v26, %v5947_v26  ;;  %v5979_v35 = vsub.f32 %v11281_v44, %v5947_v26 }
0x209d   :  { %10258 = vrsqrt.f32 %v5980_v14  ;;  %v5963_v6 = vpop.xlane.xlu1 %5962  ;;  %v5970_v5 = vmul.f32 %v5946_v2, %v5946_v2  ;;  %v5978_v13 = vsub.f32 %v11283_v46, %v5946_v2  ;;  %v6694_v2 = vld [vmem:[#allocation2 + $0x420] sm:$0xff] }
0x209e   :  { %v5967_v59 = vmul.f32 0.03125, %v5963_v6  ;;  %v5960_v3 = vpop.xlane.xlu0 %5959  ;;  %v6695_v6 = vld [vmem:[#allocation2 + $0x428] sm:$0xff] }
0x209f   :  { %v5966_v9 = vmul.f32 0.03125, %v5960_v3  ;;  %v9992_v3 = vpack.c.bf16 %v6695_v6, %v6694_v2 }
0x20a0   :  { %v5975_v24 = vsub.f32 %v5967_v59, %v5971_v50 }
0x20a1   :  { %v5974_v51 = vsub.f32 %v5966_v9, %v5970_v5  ;;  %v6696_v9 = vld [vmem:[#allocation2 + $0x430] sm:$0xff] }
0x20a2   :  { %v5983_v10 = vadd.f32 1e-12, %v5975_v24  ;;  %v6697_v24 = vld [vmem:[#allocation2 + $0x438] sm:$0xff] }
0x20a3   :  { %v5982_v4 = vadd.f32 1e-12, %v5974_v51 }
0x20a4   :  { %10260 = vrsqrt.f32 %v5983_v10  ;;  %v9996_v10 = vpack.c.bf16 %v6697_v24, %v6696_v9 }
0x20a5   :  { %10262 = vrsqrt.f32 %v5982_v4  ;;  %v6702_v4 = vld [vmem:[#allocation2 + $0x460] sm:$0xff] }
0x20a6   :  { %v10257_v17 = vpop.eup %10256 }
0x20a7   :  { %v10259_v23 = vpop.eup %10258  ;;  %v5989_v36 = vmul.f32 %v10257_v17, %v5977_v1  ;;  %v6703_v1 = vld [vmem:[#allocation2 + $0x468] sm:$0xff] }
0x20a8   :  { %v5988_v37 = vmul.f32 %v10259_v23, %v5976_v21  ;;  %v10008_v17 = vpack.c.bf16 %v6703_v1, %v6702_v4  ;;  %v6704_v21 = vld [vmem:[#allocation2 + $0x470] sm:$0xff] }
0x20a9   :  { %v5997_v43 = vmul.f32 %v8264_v22, %v5989_v36 }
0x20aa   :  { %v5996_v28 = vmul.f32 %v8264_v22, %v5988_v37 }
0x20ab   :  { %v11305_v11 = vadd.f32 %v8265_v40, %v5997_v43 }
0x20ac   :  { %v11303_v56 = vadd.f32 %v8265_v40, %v5996_v28  ;;  %v11380_v28 = vld [vmem:[%s11619_s1] ss:$0 sm:$0xff] }
0x20ae   :  { %v10261_v12 = vpop.eup %10260  ;;  %9400 = vmatprep.mubr.msk.f32.mxu0 %vm58_vm0, %v11303_v56  ;;  %9428 = vmatprep.mubr.msk.f32.mxu1 %vm58_vm0, %v11303_v56 }
0x20af   :  { %v10263_v52 = vpop.eup %10262  ;;  %v5991_v42 = vmul.f32 %v10261_v12, %v5979_v35  ;;  %9401 = vmatmul.mubr.msk.f32.vlgmr.msra.gmra.mrb[72].mxu0 %vm58_vm0, %v11305_v11  ;;  %9429 = vmatmul.mubr.msk.f32.vlgmr.msra.gmra.mrb[84].mxu1 %vm58_vm0, %v11305_v11 }
0x20b0   :  { %v5990_v49 = vmul.f32 %v10263_v52, %v5978_v13  ;;  %9959 = vmatpush3.bf16.msra.mxu0 %v9956_v7 }
0x20b1   :  { %v5999_v44 = vmul.f32 %v8264_v22, %v5991_v42  ;;  %9961 = vmatprep.subr.bf16.mxu0 %v9960_v45 }
0x20b2   :  { %v5998_v53 = vmul.f32 %v8264_v22, %v5990_v49  ;;  %v6705_v22 = vld [vmem:[#allocation2 + $0x478] sm:$0xff]  ;;  %v11389_v49 = vld [vmem:[%s11619_s1 + $0x1] ss:$0 sm:$0xff] }
0x20b3   :  { %v11319_v27 = vadd.f32 %v8265_v40, %v5999_v44  ;;  %v10012_v23 = vpack.c.bf16 %v6705_v22, %v6704_v21 }
0x20b4   :  { %v11317_v46 = vadd.f32 %v8265_v40, %v5998_v53  ;;  %9963 = vmatpush3.bf16.msra.mxu0 %v9960_v45 }
0x20b6   :  { %9403 = vmatprep.mubr.msk.f32.mxu0 %vm58_vm0, %v11317_v46  ;;  %9431 = vmatprep.mubr.msk.f32.mxu1 %vm58_vm0, %v11317_v46 }
0x20b7   :  { %9404 = vmatmul.mubr.msk.f32.gmra.mrb[74].mxu0 %vm58_vm0, %v11319_v27  ;;  %9432 = vmatmul.mubr.msk.f32.gmra.mrb[86].mxu1 %vm58_vm0, %v11319_v27 }
0x20b8   :  { %9414 = vmatprep.mubr.msk.f32.mxu0 %vm58_vm0, %v11303_v56 }
0x20bb   :  { %9415 = vmatmul.mubr.msk.f32.vlgmr.msra.gmra.mrb[76].mxu0 %vm58_vm0, %v11305_v11 }
0x20bc   :  { %9417 = vmatprep.mubr.msk.f32.mxu0 %vm58_vm0, %v11317_v46 }
0x20bf   :  { %9418 = vmatmul.mubr.msk.f32.gmra.mrb[78].mxu0 %vm58_vm0, %v11319_v27 }
0x2182   :  { %v9402_v47 = vpop.f32.mrb[72].mxu0  ;;  %v9430_v38 = vpop.f32.mrb[84].mxu1 }
0x2183   :  { %v6291_v25 = vadd.f32 %v9430_v38, %v8279_v29  ;;  %v6107_v33 = vpop.f32.mrb[73].mxu0  ;;  %v6285_v30 = vpop.f32.mrb[85].mxu1  ;;  %v6113_v5 = vadd.f32 %v9402_v47, %v8269_v54  ;;  %v8299_v47 = vld [vmem:[%s11621_s3 + $0x33] ss:$0 sm:$0xff] }
0x2184   :  { %v6108_v39 = vadd.f32 %v8269_v54, %v6107_v33  ;;  %v6286_v34 = vadd.f32 %v8279_v29, %v6285_v30 }
0x2186   :  { %v9978_v7 = vpack.c.bf16 %v6291_v25, %v6286_v34  ;;  %9438 = vmatprep.mubr.msk.f32.mxu0 %vm334_vm1, %v6108_v39 }
0x218a   :  { %v9405_v8 = vpop.f32.mrb[74].mxu0  ;;  %v9433_v20 = vpop.f32.mrb[86].mxu1 }
0x218b   :  { %v6301_v18 = vadd.f32 %v9433_v20, %v8279_v29  ;;  %v6117_v55 = vpop.f32.mrb[75].mxu0  ;;  %v6295_v15 = vpop.f32.mrb[87].mxu1  ;;  %v6123_v51 = vadd.f32 %v9405_v8, %v8269_v54  ;;  %v8309_v20 = vld [vmem:[%s11621_s3 + $0x35] ss:$0 sm:$0xff] }
0x218c   :  { %v6118_v57 = vadd.f32 %v8269_v54, %v6117_v55  ;;  %v6296_v16 = vadd.f32 %v8279_v29, %v6295_v15 }
0x218e   :  { %v11347_v19 = vpack.c.bf16 %v6301_v18, %v6296_v16  ;;  %v9416_v60 = vpop.f32.mrb[76].mxu0  ;;  %9452 = vmatprep.mubr.msk.f32.mxu1 %vm334_vm1, %v6118_v57 }
0x218f   :  { %v6202_v61 = vadd.f32 %v9416_v60, %v8274_v62  ;;  %v6196_v63 = vpop.f32.mrb[77].mxu0 }
0x2190   :  { %v6197_v31 = vadd.f32 %v8274_v62, %v6196_v63 }
0x2192   :  { %v9972_v0 = vpack.c.bf16 %v6202_v61, %v6197_v31  ;;  %v9419_v26 = vpop.f32.mrb[78].mxu0 }
0x2193   :  { %v6212_v58 = vadd.f32 %v9419_v26, %v8274_v62  ;;  %v6206_v14 = vpop.f32.mrb[79].mxu0 }
0x2194   :  { %v6207_v50 = vadd.f32 %v8274_v62, %v6206_v14  ;;  %9974 = vmatprep.subr.msk.bf16.mxu0 %vm10475_vm2, %v9972_v0 }
0x2195   :  { %9977 = vmatpush3.bf16.xpose.msk.msra.mxu0 %vm10475_vm2, %v9972_v0 }
0x2196   :  { %v9982_v59 = vpack.c.bf16 %v6212_v58, %v6207_v50  ;;  %9979 = vmatprep.subr.bf16.mxu0 %v9978_v7 }
0x2198   :  { %9984 = vmatprep.subr.msk.bf16.mxu1 %vm10475_vm2, %v9982_v59 }
0x2199   :  { %9987 = vmatpush3.bf16.xpose.msk.msra.mxu1 %vm10475_vm2, %v9982_v59 }
0x219a   :  { %9993 = vmatprep.subr.bf16.mxu1 %v9992_v3 }
0x219c   :  { %9439 = vmatmul.mubr.msk.f32.vlgmr.msra.gmra.mrb[80].mxu0 %vm334_vm1, %v6113_v5 }
0x219d   :  { %9981 = vmatpush3.bf16.msra.mxu0 %v9978_v7 }
0x219e   :  { %9989 = vmatprep.subr.bf16.mxu0 %v11347_v19 }
0x21a0   :  { %9453 = vmatmul.mubr.msk.f32.vlgmr.msra.gmra.mrb[88].mxu1 %vm334_vm1, %v6123_v51 }
0x21a1   :  { %9995 = vmatpush3.bf16.msra.mxu1 %v9992_v3  ;;  %9470 = vmatprep.mubr.msk.f32.mxu1 %vm58_vm0, %v11303_v56 }
0x21a2   :  { %9997 = vmatprep.subr.bf16.mxu1 %v9996_v10 }
0x21a5   :  { %9999 = vmatpush3.bf16.msra.mxu1 %v9996_v10 }
0x21a6   :  { %10009 = vmatprep.subr.bf16.mxu1 %v10008_v17 }
0x21a8   :  { %9471 = vmatmul.mubr.msk.f32.vlgmr.msra.gmra.mrb[90].mxu1 %vm58_vm0, %v11305_v11 }
0x21a9   :  { %9473 = vmatprep.mubr.msk.f32.mxu1 %vm58_vm0, %v11317_v46  ;;  %10011 = vmatpush3.bf16.msra.mxu1 %v10008_v17 }
0x21aa   :  { %10013 = vmatprep.subr.bf16.mxu1 %v10012_v23 }
0x21ac   :  { %9474 = vmatmul.mubr.msk.f32.gmra.mrb[92].mxu1 %vm58_vm0, %v11319_v27 }
0x21ad   :  { %10015 = vmatpush3.bf16.msra.mxu1 %v10012_v23  ;;  %9498 = vmatprep.mubr.msk.f32.mxu1 %vm58_vm0, %v11303_v56 }
0x21b0   :  { %9499 = vmatmul.mubr.msk.f32.vlgmr.msra.gmra.mrb[94].mxu1 %vm58_vm0, %v11305_v11 }
0x21b1   :  { %9501 = vmatprep.mubr.msk.f32.mxu1 %vm58_vm0, %v11317_v46 }
0x21b4   :  { %9502 = vmatmul.mubr.msk.f32.gmra.mrb[96].mxu1 %vm58_vm0, %v11319_v27 }
0x226f   :  { %v9440_v36 = vpop.f32.mrb[80].mxu0 }
0x2270   :  { %v6392_v37 = vmul.f32 0.25, %v9440_v36  ;;  %v6382_v40 = vpop.f32.mrb[81].mxu0 }
0x2271   :  { %v6391_v43 = vmul.f32 0.25, %v6382_v40 }
0x2272   :  { %v6394_v48 = vadd.f32 %v11380_v28, %v6392_v37 }
0x2273   :  { %v9454_v32 = vpop.f32.mrb[88].mxu1  ;;  %v6393_v35 = vadd.f32 %v11380_v28, %v6391_v43 }
0x2274   :  { %v6586_v45 = vmul.f32 0.25, %v9454_v32  ;;  %v6576_v12 = vpop.f32.mrb[89].mxu1  ;;  %v6398_v13 = vsel %vm334_vm1, %v6394_v48, -inf  ;;  %v6698_v32 = vld [vmem:[#allocation2 + $0x440] sm:$0xff] }
0x2275   :  { %v6585_v52 = vmul.f32 0.25, %v6576_v12  ;;  %6399 = vmax.xlane.f32.xlu1 %v6398_v13  ;;  %v6395_v42 = vsel %vm334_vm1, %v6393_v35, -inf }
0x2276   :  { %v6588_v44 = vadd.f32 %v11389_v49, %v6586_v45  ;;  %6396 = vmax.xlane.f32.xlu0 %v6395_v42 }
0x2277   :  { %v6587_v53 = vadd.f32 %v11389_v49, %v6585_v52 }
0x2278   :  { %v6592_v29 = vsel %vm334_vm1, %v6588_v44, -inf }
0x2279   :  { %6593 = vmax.xlane.f32.xlu1 %v6592_v29  ;;  %v6589_v54 = vsel %vm334_vm1, %v6587_v53, -inf }
0x227a   :  { %6590 = vmax.xlane.f32.xlu0 %v6589_v54 }
0x227b   :  { %v9472_v38 = vpop.f32.mrb[90].mxu1 }
0x227c   :  { %v11398_v25 = vadd.f32 %v9472_v38, %v8299_v47  ;;  %v6779_v33 = vpop.f32.mrb[91].mxu1 }
0x227d   :  { %v11400_v30 = vadd.f32 %v8299_v47, %v6779_v33 }
0x227f   :  { %v9475_v39 = vpop.f32.mrb[92].mxu1 }
0x2280   :  { %v11402_v34 = vadd.f32 %v9475_v39, %v8299_v47  ;;  %v6789_v7 = vpop.f32.mrb[93].mxu1 }
0x2281   :  { %v6790_v8 = vadd.f32 %v8299_v47, %v6789_v7 }
0x2283   :  { %v9500_v18 = vpop.f32.mrb[94].mxu1  ;;  %9522 = vmatprep.mubr.msk.f32.mxu1 %vm334_vm1, %v6790_v8  ;;  %v8304_v8 = vld [vmem:[%s11621_s3 + $0x34] ss:$0 sm:$0xff] }
0x2284   :  { %v6963_v55 = vadd.f32 %v9500_v18, %v8309_v20  ;;  %v6957_v15 = vpop.f32.mrb[95].mxu1 }
0x2285   :  { %v6958_v57 = vadd.f32 %v8309_v20, %v6957_v15 }
0x2287   :  { %v11408_v16 = vpack.c.bf16 %v6963_v55, %v6958_v57  ;;  %v9503_v62 = vpop.f32.mrb[96].mxu1 }
0x2288   :  { %v6973_v60 = vadd.f32 %v9503_v62, %v8309_v20  ;;  %v6967_v61 = vpop.f32.mrb[97].mxu1 }
0x2289   :  { %v6968_v63 = vadd.f32 %v8309_v20, %v6967_v61 }
0x228b   :  { %v11410_v31 = vpack.c.bf16 %v6973_v60, %v6968_v63 }
0x2302   :  { %v6400_v0 = vpop.xlane.xlu1 %6399 }
0x2303   :  { %v6402_v26 = vsub.f32 %v6394_v48, %v6400_v0  ;;  %v6397_v58 = vpop.xlane.xlu0 %6396 }
0x2304   :  { %v6401_v14 = vsub.f32 %v6393_v35, %v6397_v58  ;;  %v6699_v35 = vld [vmem:[#allocation2 + $0x448] sm:$0xff] }
0x2305   :  { %v6405_v2 = vmul.f32 1.442695, %v6402_v26  ;;  %v10000_v52 = vpack.c.bf16 %v6699_v35, %v6698_v32 }
0x2306   :  { %v6403_v6 = vmul.f32 1.442695, %v6401_v14  ;;  %v6594_v50 = vpop.xlane.xlu1 %6593 }
0x2307   :  { %10264 = vpow2.f32 %v6405_v2  ;;  %v6596_v59 = vsub.f32 %v6588_v44, %v6594_v50  ;;  %v6591_v3 = vpop.xlane.xlu0 %6590  ;;  %v6700_v44 = vld [vmem:[#allocation2 + $0x450] sm:$0xff] }
0x2308   :  { %10266 = vpow2.f32 %v6403_v6  ;;  %v6595_v5 = vsub.f32 %v6587_v53, %v6591_v3  ;;  %v6701_v53 = vld [vmem:[#allocation2 + $0x458] sm:$0xff] }
0x2309   :  { %v6599_v9 = vmul.f32 1.442695, %v6596_v59  ;;  %v10004_v38 = vpack.c.bf16 %v6701_v53, %v6700_v44 }
0x230a   :  { %v6597_v24 = vmul.f32 1.442695, %v6595_v5 }
0x230b   :  { %10268 = vpow2.f32 %v6599_v9 }
0x230c   :  { %10270 = vpow2.f32 %v6597_v24 }
0x2311   :  { %v10265_v51 = vpop.eup %10264 }
0x2312   :  { %v10267_v10 = vpop.eup %10266  ;;  %v6410_v4 = vsel %vm334_vm1, %v10265_v51, 0.0 }
0x2313   :  { %6411 = vadd.xlane.f32.xlu1 %v6410_v4  ;;  %v6407_v1 = vsel %vm334_vm1, %v10267_v10, 0.0 }
0x2314   :  { %6408 = vadd.xlane.f32.xlu0 %v6407_v1 }
0x2315   :  { %v10269_v17 = vpop.eup %10268 }
0x2316   :  { %v10271_v21 = vpop.eup %10270  ;;  %v6604_v22 = vsel %vm334_vm1, %v10269_v17, 0.0 }
0x2317   :  { %6605 = vadd.xlane.f32.xlu1 %v6604_v22  ;;  %v6601_v23 = vsel %vm334_vm1, %v10271_v21, 0.0 }
0x2318   :  { %6602 = vadd.xlane.f32.xlu0 %v6601_v23 }
0x23a0   :  { %v6412_v36 = vpop.xlane.xlu1 %6411 }
0x23a1   :  { %10272 = vrcp.f32 %v6412_v36  ;;  %v6409_v37 = vpop.xlane.xlu0 %6408 }
0x23a2   :  { %10274 = vrcp.f32 %v6409_v37 }
0x23a4   :  { %v6606_v40 = vpop.xlane.xlu1 %6605 }
0x23a5   :  { %10276 = vrcp.f32 %v6606_v40  ;;  %v6603_v43 = vpop.xlane.xlu0 %6602 }
0x23a6   :  { %10278 = vrcp.f32 %v6603_v43 }
0x23ab   :  { %v10273_v48 = vpop.eup %10272 }
0x23ac   :  { %v10275_v45 = vpop.eup %10274  ;;  %v6416_v13 = vmul.f32 %v10273_v48, %v10265_v51 }
0x23ad   :  { %v6415_v12 = vmul.f32 %v10275_v45, %v10267_v10 }
0x23af   :  { %v10277_v42 = vpop.eup %10276  ;;  %9445 = vmatprep.mubr.msk.f32.mxu0 %vm334_vm1, %v6415_v12 }
0x23b0   :  { %v10279_v29 = vpop.eup %10278  ;;  %9446 = vmatmul.mubr.msk.f32.vlgmr.msra.gmra.mrb[82].mxu0 %vm334_vm1, %v6416_v13  ;;  %v6610_v47 = vmul.f32 %v10277_v42, %v10269_v17  ;;  %v7365_v42 = vld [vmem:[#allocation2 + $0x498] sm:$0xff] }
0x23b1   :  { %9991 = vmatpush3.bf16.msra.mxu0 %v11347_v19  ;;  %v6609_v54 = vmul.f32 %v10279_v29, %v10271_v21 }
0x23b2   :  { %10001 = vmatprep.subr.bf16.mxu0 %v10000_v52 }
0x23b3   :  { %9459 = vmatprep.mubr.msk.f32.mxu0 %vm334_vm1, %v6609_v54 }
0x23b4   :  { %9460 = vmatmul.mubr.msk.f32.vlgmr.msra.gmra.mrb[84].mxu0 %vm334_vm1, %v6610_v47 }
0x23b5   :  { %10003 = vmatpush3.bf16.msra.mxu0 %v10000_v52  ;;  %9484 = vmatprep.mubr.msk.f32.mxu0 %vm58_vm0, %v11303_v56  ;;  %v7364_v52 = vld [vmem:[#allocation2 + $0x490] sm:$0xff] }
0x23b6   :  { %10005 = vmatprep.subr.bf16.mxu0 %v10004_v38  ;;  %v10036_v44 = vpack.c.bf16 %v7365_v42, %v7364_v52 }
0x23b9   :  { %10007 = vmatpush3.bf16.msra.mxu0 %v10004_v38 }
0x23bc   :  { %9485 = vmatmul.mubr.msk.f32.vlgmr.msra.gmra.mrb[86].mxu0 %vm58_vm0, %v11305_v11 }
0x23bd   :  { %9487 = vmatprep.mubr.msk.f32.mxu0 %vm58_vm0, %v11317_v46 }
0x23c0   :  { %9488 = vmatmul.mubr.msk.f32.gmra.mrb[88].mxu0 %vm58_vm0, %v11319_v27 }
0x23c1   :  { %9508 = vmatprep.mubr.msk.f32.mxu0 %vm334_vm1, %v11400_v30 }
0x2483   :  { %v11431_v19 = vpop.f32.mrb[82].mxu0 }
0x2484   :  { %v11433_v33 = vpop.f32.mrb[83].mxu0 }
0x2487   :  { %v11435_v39 = vpop.f32.mrb[84].mxu0 }
0x2488   :  { %v11437_v7 = vpop.f32.mrb[85].mxu0 }
0x248f   :  { %v9486_v20 = vpop.f32.mrb[86].mxu0 }
0x2490   :  { %v6874_v18 = vadd.f32 %v9486_v20, %v8304_v8  ;;  %v6868_v55 = vpop.f32.mrb[87].mxu0 }
0x2491   :  { %v6869_v15 = vadd.f32 %v8304_v8, %v6868_v55 }
0x2493   :  { %v10016_v57 = vpack.c.bf16 %v6874_v18, %v6869_v15  ;;  %v9489_v62 = vpop.f32.mrb[88].mxu0 }
0x2494   :  { %v6884_v60 = vadd.f32 %v9489_v62, %v8304_v8  ;;  %v6878_v30 = vpop.f32.mrb[89].mxu0 }
0x2495   :  { %v6879_v61 = vadd.f32 %v8304_v8, %v6878_v30  ;;  %10018 = vmatprep.subr.msk.bf16.mxu0 %vm10475_vm2, %v10016_v57  ;;  %v6693_v30 = vld [vmem:[#allocation2 + $0x488] sm:$0xff] }
0x2496   :  { %10021 = vmatpush3.bf16.xpose.msk.msra.mxu0 %vm10475_vm2, %v10016_v57 }
0x2497   :  { %v10026_v63 = vpack.c.bf16 %v6884_v60, %v6879_v61  ;;  %10023 = vmatprep.subr.bf16.mxu0 %v11408_v16  ;;  %v6692_v60 = vld [vmem:[#allocation2 + $0x480] sm:$0xff] }
0x2498   :  { %v10040_v61 = vpack.c.bf16 %v6693_v30, %v6692_v60 }
0x2499   :  { %10028 = vmatprep.subr.msk.bf16.mxu1 %vm10475_vm2, %v10026_v63 }
0x249a   :  { %10031 = vmatpush3.bf16.xpose.msk.msra.mxu1 %vm10475_vm2, %v10026_v63 }
0x249b   :  { %10037 = vmatprep.subr.bf16.mxu1 %v10036_v44 }
0x249d   :  { %9509 = vmatmul.mubr.msk.f32.vlgmr.msra.gmra.mrb[90].mxu0 %vm334_vm1, %v11398_v25 }
0x249e   :  { %10025 = vmatpush3.bf16.msra.mxu0 %v11408_v16 }
0x249f   :  { %10033 = vmatprep.subr.bf16.mxu0 %v11410_v31 }
0x24a1   :  { %9523 = vmatmul.mubr.msk.f32.vlgmr.msra.gmra.mrb[98].mxu1 %vm334_vm1, %v11402_v34 }
0x24a2   :  { %10039 = vmatpush3.bf16.msra.mxu1 %v10036_v44 }
0x24a3   :  { %10041 = vmatprep.subr.bf16.mxu1 %v10040_v61 }
0x2570   :  { %v9510_v0 = vpop.f32.mrb[90].mxu0 }
0x2571   :  { %v7064_v26 = vmul.f32 0.25, %v9510_v0  ;;  %v7054_v58 = vpop.f32.mrb[91].mxu0 }
0x2572   :  { %v7063_v14 = vmul.f32 0.25, %v7054_v58 }
0x2573   :  { %v7066_v2 = vadd.f32 %v11380_v28, %v7064_v26 }
0x2574   :  { %v7065_v6 = vadd.f32 %v11380_v28, %v7063_v14  ;;  %v9524_v41 = vpop.f32.mrb[98].mxu1 }
0x2575   :  { %v7258_v50 = vmul.f32 0.25, %v9524_v41  ;;  %v7248_v59 = vpop.f32.mrb[99].mxu1  ;;  %v7070_v25 = vsel %vm334_vm1, %v7066_v2, -inf }
0x2576   :  { %v7257_v3 = vmul.f32 0.25, %v7248_v59  ;;  %7071 = vmax.xlane.f32.xlu1 %v7070_v25  ;;  %v7067_v16 = vsel %vm334_vm1, %v7065_v6, -inf }
0x2577   :  { %v7260_v5 = vadd.f32 %v11389_v49, %v7258_v50  ;;  %7068 = vmax.xlane.f32.xlu0 %v7067_v16 }
0x2578   :  { %v7259_v34 = vadd.f32 %v11389_v49, %v7257_v3 }
0x2579   :  { %v7264_v9 = vsel %vm334_vm1, %v7260_v5, -inf }
0x257a   :  { %7265 = vmax.xlane.f32.xlu1 %v7264_v9  ;;  %v7261_v24 = vsel %vm334_vm1, %v7259_v34, -inf }
0x257b   :  { %7262 = vmax.xlane.f32.xlu0 %v7261_v24 }
0x2603   :  { %v7072_v28 = vpop.xlane.xlu1 %7071 }
0x2604   :  { %v7074_v51 = vsub.f32 %v7066_v2, %v7072_v28  ;;  %v7069_v10 = vpop.xlane.xlu0 %7068 }
0x2605   :  { %v7073_v4 = vsub.f32 %v7065_v6, %v7069_v10 }
0x2606   :  { %v7077_v1 = vmul.f32 1.442695, %v7074_v51 }
0x2607   :  { %v7075_v17 = vmul.f32 1.442695, %v7073_v4  ;;  %v7266_v21 = vpop.xlane.xlu1 %7265  ;;  %v7651_v4 = vld [vmem:[#allocation2 + $0x4a0] sm:$0xff] }
0x2608   :  { %10280 = vpow2.f32 %v7077_v1  ;;  %v7268_v22 = vsub.f32 %v7260_v5, %v7266_v21  ;;  %v7263_v23 = vpop.xlane.xlu0 %7262  ;;  %v7652_v1 = vld [vmem:[#allocation2 + $0x4a8] sm:$0xff]  ;;  %v7653_v21 = vld [vmem:[#allocation2 + $0x4b0] sm:$0xff] }
0x2609   :  { %10282 = vpow2.f32 %v7075_v17  ;;  %v7267_v36 = vsub.f32 %v7259_v34, %v7263_v23  ;;  %v10044_v17 = vpack.c.bf16 %v7652_v1, %v7651_v4  ;;  %v7662_v1 = vld [vmem:[#allocation2 + $0x4f0] sm:$0xff] }
0x260a   :  { %v7271_v37 = vmul.f32 1.442695, %v7268_v22  ;;  %v7654_v22 = vld [vmem:[#allocation2 + $0x4b8] sm:$0xff] }
0x260b   :  { %v7269_v49 = vmul.f32 1.442695, %v7267_v36  ;;  %v10048_v23 = vpack.c.bf16 %v7654_v22, %v7653_v21  ;;  %v8344_v22 = vld [vmem:[%s11621_s3 + $0x37] ss:$0 sm:$0xff] }
0x260c   :  { %10284 = vpow2.f32 %v7271_v37 }
0x260d   :  { %10286 = vpow2.f32 %v7269_v49 }
0x2612   :  { %v10281_v40 = vpop.eup %10280 }
0x2613   :  { %v10283_v43 = vpop.eup %10282  ;;  %v7082_v48 = vsel %vm334_vm1, %v10281_v40, 0.0 }
0x2614   :  { %7083 = vadd.xlane.f32.xlu1 %v7082_v48  ;;  %v7079_v32 = vsel %vm334_vm1, %v10283_v43, 0.0 }
0x2615   :  { %7080 = vadd.xlane.f32.xlu0 %v7079_v32 }
0x2616   :  { %v10285_v35 = vpop.eup %10284 }
0x2617   :  { %v10287_v45 = vpop.eup %10286  ;;  %v7276_v12 = vsel %vm334_vm1, %v10285_v35, 0.0 }
0x2618   :  { %7277 = vadd.xlane.f32.xlu1 %v7276_v12  ;;  %v7273_v13 = vsel %vm334_vm1, %v10287_v45, 0.0 }
0x2619   :  { %7274 = vadd.xlane.f32.xlu0 %v7273_v13 }
0x26a1   :  { %v7084_v53 = vpop.xlane.xlu1 %7083 }
0x26a2   :  { %10288 = vrcp.f32 %v7084_v53  ;;  %v7081_v29 = vpop.xlane.xlu0 %7080 }
0x26a3   :  { %10290 = vrcp.f32 %v7081_v29 }
0x26a5   :  { %v7278_v54 = vpop.xlane.xlu1 %7277 }
0x26a6   :  { %10292 = vrcp.f32 %v7278_v54  ;;  %v7275_v47 = vpop.xlane.xlu0 %7274 }
0x26a7   :  { %10294 = vrcp.f32 %v7275_v47 }
0x26ac   :  { %v10289_v38 = vpop.eup %10288 }
0x26ad   :  { %v10291_v8 = vpop.eup %10290  ;;  %v7088_v18 = vmul.f32 %v10289_v38, %v10281_v40 }
0x26ae   :  { %v7087_v20 = vmul.f32 %v10291_v8, %v10283_v43 }
0x26b0   :  { %v10293_v55 = vpop.eup %10292  ;;  %9515 = vmatprep.mubr.msk.f32.mxu0 %vm334_vm1, %v7087_v20 }
0x26b1   :  { %v10295_v15 = vpop.eup %10294  ;;  %9516 = vmatmul.mubr.msk.f32.vlgmr.msra.gmra.mrb[92].mxu0 %vm334_vm1, %v7088_v18  ;;  %v7282_v62 = vmul.f32 %v10293_v55, %v10285_v35 }
0x26b2   :  { %10035 = vmatpush3.bf16.msra.mxu0 %v11410_v31  ;;  %v7281_v57 = vmul.f32 %v10295_v15, %v10287_v45  ;;  %v8337_v31 = vld [vmem:[%s11621_s3 + $0x36] ss:$0 sm:$0xff] }
0x26b3   :  { %10045 = vmatprep.subr.bf16.mxu0 %v10044_v17 }
0x26b4   :  { %9529 = vmatprep.mubr.msk.f32.mxu0 %vm334_vm1, %v7281_v57 }
0x26b5   :  { %9530 = vmatmul.mubr.msk.f32.vlgmr.msra.gmra.mrb[94].mxu0 %vm334_vm1, %v7282_v62 }
0x26b6   :  { %10047 = vmatpush3.bf16.msra.mxu0 %v10044_v17  ;;  %v7663_v17 = vld [vmem:[#allocation2 + $0x4f8] sm:$0xff] }
0x26b7   :  { %10049 = vmatprep.subr.bf16.mxu0 %v10048_v23  ;;  %v10064_v21 = vpack.c.bf16 %v7663_v17, %v7662_v1 }
0x26ba   :  { %10051 = vmatpush3.bf16.msra.mxu0 %v10048_v23 }
0x2784   :  { %v9517_v63 = vpop.f32.mrb[92].mxu0 }
0x2785   :  { %v7161_v0 = vpop.f32.mrb[93].mxu0 }
0x2786   :  { %9536 = vmatprep.mubr.msk.f32.mxu1 %vm334_vm1, %v7161_v0 }
0x2787   :  { %9537 = vmatmul.mubr.msk.f32.vlgmr.msra.gmra.mrb[100].mxu1 %vm334_vm1, %v9517_v63 }
0x2788   :  { %v9531_v26 = vpop.f32.mrb[94].mxu0  ;;  %10043 = vmatpush3.bf16.msra.mxu1 %v10040_v61 }
0x2789   :  { %v7355_v58 = vpop.f32.mrb[95].mxu0 }
0x278a   :  { %9539 = vmatprep.mubr.msk.f32.mxu1 %vm334_vm1, %v7355_v58 }
0x278b   :  { %9540 = vmatmul.mubr.msk.f32.gmra.mrb[102].mxu1 %vm334_vm1, %v9531_v26  ;;  %v8338_v26 = vld [vmem:[%s11621_s3 + $0x39] ss:$0 sm:$0xff] }
0x278c   :  { %9546 = vmatprep.mubr.msk.f32.mxu1 %vm334_vm1, %v11433_v33 }
0x278f   :  { %9547 = vmatmul.mubr.msk.f32.vlgmr.msra.gmra.mrb[100].mxu1 %vm334_vm1, %v11431_v19 }
0x2790   :  { %9549 = vmatprep.mubr.msk.f32.mxu1 %vm334_vm1, %v11437_v7 }
0x2793   :  { %9550 = vmatmul.mubr.msk.f32.gmra.mrb[102].mxu1 %vm334_vm1, %v11435_v39 }
0x2862   :  { %v9548_v14 = vpop.f32.mrb[100].mxu1 }
0x2863   :  { %v7568_v2 = vadd.f32 %v9548_v14, %v8337_v31  ;;  %v7541_v6 = vpop.f32.mrb[101].mxu1 }
0x2864   :  { %v7567_v41 = vadd.f32 %v8337_v31, %v7541_v6 }
0x2865   :  { %v11490_v50 = vadd.f32 %v7568_v2, %v11305_v11  ;;  %v8339_v2 = vld [vmem:[%s11621_s3 + $0x3a] ss:$0 sm:$0xff] }
0x2866   :  { %v11493_v33 = vadd.f32 %v7567_v41, %v11303_v56  ;;  %v9551_v19 = vpop.f32.mrb[102].mxu1 }
0x2867   :  { %v7570_v59 = vadd.f32 %v9551_v19, %v8337_v31  ;;  %v7551_v7 = vpop.f32.mrb[103].mxu1  ;;  %v7578_v39 = vsel %vm58_vm0, %v11490_v50, 0.0  ;;  %v7592_v25 = vmul.f32 %v11490_v50, %v11490_v50 }
0x2868   :  { %v7569_v3 = vadd.f32 %v8337_v31, %v7551_v7  ;;  %7579 = vadd.xlane.f32.xlu1 %v7578_v39  ;;  %v7575_v16 = vsel %vm58_vm0, %v11493_v33, 0.0  ;;  %v7591_v11 = vmul.f32 %v11493_v33, %v11493_v33 }
0x2869   :  { %7576 = vadd.xlane.f32.xlu0 %v7575_v16  ;;  %v11504_v56 = vadd.f32 %v7570_v59, %v11319_v27  ;;  %v7598_v5 = vsel %vm58_vm0, %v7592_v25, 0.0 }
0x286a   :  { %v11508_v34 = vadd.f32 %v7569_v3, %v11317_v46  ;;  %v7595_v9 = vsel %vm58_vm0, %v7591_v11, 0.0 }
0x286b   :  { %v7584_v24 = vsel %vm58_vm0, %v11504_v56, 0.0  ;;  %v7594_v28 = vmul.f32 %v11504_v56, %v11504_v56 }
0x286c   :  { %7599 = vadd.xlane.f32.xlu1 %v7598_v5  ;;  %v7581_v27 = vsel %vm58_vm0, %v11508_v34, 0.0  ;;  %v7593_v51 = vmul.f32 %v11508_v34, %v11508_v34 }
0x286d   :  { %7596 = vadd.xlane.f32.xlu0 %v7595_v9  ;;  %v7604_v46 = vsel %vm58_vm0, %v7594_v28, 0.0  ;;  %v7658_v28 = vld [vmem:[#allocation2 + $0x4d0] sm:$0xff] }
0x286e   :  { %v7601_v10 = vsel %vm58_vm0, %v7593_v51, 0.0 }
0x2870   :  { %7585 = vadd.xlane.f32.xlu1 %v7584_v24 }
0x2871   :  { %7582 = vadd.xlane.f32.xlu0 %v7581_v27  ;;  %v7659_v27 = vld [vmem:[#allocation2 + $0x4d8] sm:$0xff] }
0x2872   :  { %v10056_v51 = vpack.c.bf16 %v7659_v27, %v7658_v28 }
0x2874   :  { %7605 = vadd.xlane.f32.xlu1 %v7604_v46  ;;  %v7660_v46 = vld [vmem:[#allocation2 + $0x4e0] sm:$0xff] }
0x2875   :  { %7602 = vadd.xlane.f32.xlu0 %v7601_v10  ;;  %v7661_v10 = vld [vmem:[#allocation2 + $0x4e8] sm:$0xff] }
0x2876   :  { %v10060_v4 = vpack.c.bf16 %v7661_v10, %v7660_v46 }
0x28f5   :  { %v7580_v36 = vpop.xlane.xlu1 %7579 }
0x28f6   :  { %v7588_v37 = vmul.f32 0.03125, %v7580_v36  ;;  %v7577_v49 = vpop.xlane.xlu0 %7576 }
0x28f7   :  { %v7587_v40 = vmul.f32 0.03125, %v7577_v49 }
0x28f8   :  { %v7612_v48 = vmul.f32 %v7588_v37, %v7588_v37  ;;  %v7620_v61 = vsub.f32 %v11490_v50, %v7588_v37 }
0x28f9   :  { %v7600_v43 = vpop.xlane.xlu1 %7599  ;;  %v7611_v45 = vmul.f32 %v7587_v40, %v7587_v40  ;;  %v7619_v0 = vsub.f32 %v11493_v33, %v7587_v40 }
0x28fa   :  { %v7608_v32 = vmul.f32 0.03125, %v7600_v43  ;;  %v7597_v35 = vpop.xlane.xlu0 %7596 }
0x28fb   :  { %v7607_v12 = vmul.f32 0.03125, %v7597_v35 }
0x28fc   :  { %v7616_v13 = vsub.f32 %v7608_v32, %v7612_v48 }
0x28fd   :  { %v7615_v52 = vsub.f32 %v7607_v12, %v7611_v45  ;;  %v7586_v42 = vpop.xlane.xlu1 %7585 }
0x28fe   :  { %v7624_v44 = vadd.f32 1e-12, %v7616_v13  ;;  %v7590_v53 = vmul.f32 0.03125, %v7586_v42  ;;  %v7583_v29 = vpop.xlane.xlu0 %7582 }
0x28ff   :  { %v7623_v54 = vadd.f32 1e-12, %v7615_v52  ;;  %v7589_v47 = vmul.f32 0.03125, %v7583_v29 }
0x2900   :  { %10296 = vrsqrt.f32 %v7624_v44  ;;  %v7614_v8 = vmul.f32 %v7590_v53, %v7590_v53  ;;  %v7622_v50 = vsub.f32 %v11504_v56, %v7590_v53  ;;  %v7656_v56 = vld [vmem:[#allocation2 + $0x4c0] sm:$0xff] }
0x2901   :  { %10298 = vrsqrt.f32 %v7623_v54  ;;  %v7606_v38 = vpop.xlane.xlu1 %7605  ;;  %v7613_v55 = vmul.f32 %v7589_v47, %v7589_v47  ;;  %v7621_v7 = vsub.f32 %v11508_v34, %v7589_v47  ;;  %v7657_v34 = vld [vmem:[#allocation2 + $0x4c8] sm:$0xff] }
0x2902   :  { %v7610_v20 = vmul.f32 0.03125, %v7606_v38  ;;  %v7603_v18 = vpop.xlane.xlu0 %7602  ;;  %v10052_v24 = vpack.c.bf16 %v7657_v34, %v7656_v56 }
0x2903   :  { %v7609_v15 = vmul.f32 0.03125, %v7603_v18 }
0x2904   :  { %v7618_v57 = vsub.f32 %v7610_v20, %v7614_v8  ;;  %10053 = vmatprep.subr.bf16.mxu0 %v10052_v24 }
0x2905   :  { %v7617_v62 = vsub.f32 %v7609_v15, %v7613_v55 }
0x2906   :  { %v7626_v60 = vadd.f32 1e-12, %v7618_v57 }
0x2907   :  { %v7625_v30 = vadd.f32 1e-12, %v7617_v62 }
0x2908   :  { %10300 = vrsqrt.f32 %v7626_v60 }
0x2909   :  { %10302 = vrsqrt.f32 %v7625_v30 }
0x290a   :  { %v10297_v63 = vpop.eup %10296 }
0x290b   :  { %v10299_v58 = vpop.eup %10298  ;;  %v7632_v31 = vmul.f32 %v10297_v63, %v7620_v61 }
0x290c   :  { %v7631_v14 = vmul.f32 %v10299_v58, %v7619_v0 }
0x290d   :  { %v7640_v6 = vmul.f32 %v8338_v26, %v7632_v31 }
0x290e   :  { %v7639_v41 = vmul.f32 %v8338_v26, %v7631_v14 }
0x290f   :  { %v11532_v59 = vadd.f32 %v8339_v2, %v7640_v6 }
0x2910   :  { %v11529_v19 = vadd.f32 %v8339_v2, %v7639_v41 }
0x2912   :  { %v10301_v33 = vpop.eup %10300  ;;  %9560 = vmatprep.mubr.msk.f32.mxu0 %vm58_vm0, %v11529_v19 }
0x2913   :  { %v10303_v39 = vpop.eup %10302  ;;  %9561 = vmatmul.mubr.msk.f32.vlgmr.msra.gmra.mrb[96].mxu0 %vm58_vm0, %v11532_v59  ;;  %v7634_v25 = vmul.f32 %v10301_v33, %v7622_v50 }
0x2914   :  { %v7633_v3 = vmul.f32 %v10303_v39, %v7621_v7  ;;  %10055 = vmatpush3.bf16.msra.mxu0 %v10052_v24 }
0x2915   :  { %v7642_v16 = vmul.f32 %v8338_v26, %v7634_v25  ;;  %10057 = vmatprep.subr.bf16.mxu0 %v10056_v51 }
0x2916   :  { %v7641_v11 = vmul.f32 %v8338_v26, %v7633_v3  ;;  %v8349_v3 = vld [vmem:[%s11621_s3 + $0x38] ss:$0 sm:$0xff] }
0x2917   :  { %v11541_v9 = vadd.f32 %v8339_v2, %v7642_v16 }
0x2918   :  { %v11539_v5 = vadd.f32 %v8339_v2, %v7641_v11  ;;  %10059 = vmatpush3.bf16.msra.mxu0 %v10056_v51 }
0x2919   :  { %10061 = vmatprep.subr.bf16.mxu0 %v10060_v4 }
0x291a   :  { %9563 = vmatprep.mubr.msk.f32.mxu0 %vm58_vm0, %v11539_v5 }
0x291b   :  { %9564 = vmatmul.mubr.msk.f32.gmra.mrb[98].mxu0 %vm58_vm0, %v11541_v9 }
0x291c   :  { %10063 = vmatpush3.bf16.msra.mxu0 %v10060_v4 }
0x291d   :  { %10065 = vmatprep.subr.bf16.mxu0 %v10064_v21 }
0x2920   :  { %10067 = vmatpush3.bf16.msra.mxu0 %v10064_v21 }
0x29e6   :  { %v9562_v23 = vpop.f32.mrb[96].mxu0 }
0x29e7   :  { %v7755_v36 = vadd.f32 %v9562_v23, %v8344_v22  ;;  %v7749_v37 = vpop.f32.mrb[97].mxu0 }
0x29e8   :  { %v7750_v49 = vadd.f32 %v8344_v22, %v7749_v37 }
0x29e9   :  { %v7773_v40 = vmul.f32 0.044715, %v7755_v36  ;;  %v7769_v58 = vmul.f32 0.5, %v7755_v36 }
0x29ea   :  { %v7772_v43 = vmul.f32 0.044715, %v7750_v49  ;;  %v7768_v0 = vmul.f32 0.5, %v7750_v49 }
0x29eb   :  { %v7777_v48 = vmul.f32 %v7773_v40, %v7755_v36 }
0x29ec   :  { %v7776_v32 = vmul.f32 %v7772_v43, %v7750_v49 }
0x29ed   :  { %v7781_v35 = vmul.f32 %v7777_v48, %v7755_v36 }
0x29ee   :  { %v7780_v45 = vmul.f32 %v7776_v32, %v7750_v49  ;;  %v9565_v12 = vpop.f32.mrb[98].mxu0 }
0x29ef   :  { %v7785_v13 = vadd.f32 %v7781_v35, %v7755_v36  ;;  %v7765_v52 = vadd.f32 %v9565_v12, %v8344_v22  ;;  %v7759_v42 = vpop.f32.mrb[99].mxu0 }
0x29f0   :  { %v7784_v44 = vadd.f32 %v7780_v45, %v7750_v49  ;;  %v7760_v53 = vadd.f32 %v8344_v22, %v7759_v42 }
0x29f1   :  { %v7789_v29 = vmul.f32 0.7978846, %v7785_v13  ;;  %v7775_v54 = vmul.f32 0.044715, %v7765_v52  ;;  %v7771_v7 = vmul.f32 0.5, %v7765_v52 }
0x29f2   :  { %v7774_v47 = vmul.f32 0.044715, %v7760_v53  ;;  %v7788_v38 = vmul.f32 0.7978846, %v7784_v44  ;;  %v7770_v50 = vmul.f32 0.5, %v7760_v53 }
0x29f3   :  { %10304 = vtanh.f32 %v7789_v29  ;;  %v7779_v8 = vmul.f32 %v7775_v54, %v7765_v52 }
0x29f4   :  { %v7778_v20 = vmul.f32 %v7774_v47, %v7760_v53  ;;  %10306 = vtanh.f32 %v7788_v38 }
0x29f5   :  { %v7783_v18 = vmul.f32 %v7779_v8, %v7765_v52 }
0x29f6   :  { %v7782_v55 = vmul.f32 %v7778_v20, %v7760_v53 }
0x29f7   :  { %v7787_v15 = vadd.f32 %v7783_v18, %v7765_v52 }
0x29f8   :  { %v7786_v57 = vadd.f32 %v7782_v55, %v7760_v53 }
0x29f9   :  { %v7791_v62 = vmul.f32 0.7978846, %v7787_v15 }
0x29fa   :  { %v7790_v60 = vmul.f32 0.7978846, %v7786_v57 }
0x29fb   :  { %10308 = vtanh.f32 %v7791_v62 }
0x29fc   :  { %10310 = vtanh.f32 %v7790_v60 }
0x29fd   :  { %v10305_v30 = vpop.eup %10304 }
0x29fe   :  { %v10307_v61 = vpop.eup %10306  ;;  %v7797_v63 = vadd.f32 1.0, %v10305_v30 }
0x29ff   :  { %v7796_v26 = vadd.f32 1.0, %v10307_v61 }
0x2a00   :  { %v7801_v14 = vmul.f32 %v7797_v63, %v7769_v58 }
0x2a01   :  { %v7800_v31 = vmul.f32 %v7796_v26, %v7768_v0 }
0x2a03   :  { %9582 = vmatprep.mubr.msk.f32.mxu0 %vm1852_vm3, %v7800_v31 }
0x2a04   :  { %9583 = vmatmul.mubr.msk.f32.vlgmr.msra.gmra.mrb[100].mxu0 %vm1852_vm3, %v7801_v14 }
0x2a05   :  { %v10309_v2 = vpop.eup %10308 }
0x2a06   :  { %v10311_v6 = vpop.eup %10310  ;;  %v7799_v41 = vadd.f32 1.0, %v10309_v2  ;;  %v8354_v2 = vld [vmem:[%s11621_s3 + $0x3b] ss:$0 sm:$0xff] }
0x2a07   :  { %v7798_v33 = vadd.f32 1.0, %v10311_v6 }
0x2a08   :  { %v7803_v25 = vmul.f32 %v7799_v41, %v7771_v7 }
0x2a09   :  { %v7802_v39 = vmul.f32 %v7798_v33, %v7770_v50  ;;  %v8355_v33 = vld [vmem:[%s11621_s3 + $0x3c] ss:$0 sm:$0xff]  ;;  %s10348_s3 = scalar_lea.vmem %s7995_s27, 512 }
0x2a0a   :  { %p10349_p8 = scmp.ne.s32.totalorder %s7995_s27, %s10348_s3  ;;  %p10354_p10 = scmp.lt.s32.totalorder %s10348_s3, %s10348_s3 }
0x2a0b   :  { %9585 = vmatprep.mubr.msk.f32.mxu0 %vm1852_vm3, %v7802_v39 }
0x2a0c   :  { %9586 = vmatmul.mubr.msk.f32.gmra.mrb[102].mxu0 %vm1852_vm3, %v7803_v25  ;;  %p10355_p11 = por %p10354_p10, %p10353_p9 }
0x2a0e   :  { %p10356_p12 = pnand %p10355_p11, %p10349_p8 }
0x2ad7   :  { %v9584_v16 = vpop.f32.mrb[100].mxu0 }
0x2ad8   :  { %v7892_v11 = vadd.f32 %v9584_v16, %v8349_v3  ;;  %v7886_v56 = vpop.f32.mrb[101].mxu0 }
0x2ad9   :  { %v7887_v34 = vadd.f32 %v8349_v3, %v7886_v56 }
0x2ada   :  { %v11558_v24 = vadd.f32 %v7892_v11, %v11532_v59 }
0x2adb   :  { %v11561_v28 = vadd.f32 %v7887_v34, %v11529_v19 }
0x2adc   :  { %v7912_v27 = vsel %vm58_vm0, %v11558_v24, 0.0  ;;  %v7926_v51 = vmul.f32 %v11558_v24, %v11558_v24 }
0x2add   :  { %7913 = vadd.xlane.f32.xlu1 %v7912_v27  ;;  %v7909_v46 = vsel %vm58_vm0, %v11561_v28, 0.0  ;;  %v7925_v10 = vmul.f32 %v11561_v28, %v11561_v28 }
0x2ade   :  { %7910 = vadd.xlane.f32.xlu0 %v7909_v46  ;;  %v7932_v19 = vsel %vm58_vm0, %v7926_v51, 0.0 }
0x2adf   :  { %v9587_v4 = vpop.f32.mrb[102].mxu0  ;;  %v7929_v21 = vsel %vm58_vm0, %v7925_v10, 0.0 }
0x2ae0   :  { %v7902_v59 = vadd.f32 %v9587_v4, %v8349_v3  ;;  %v7896_v1 = vpop.f32.mrb[103].mxu0 }
0x2ae1   :  { %v7897_v17 = vadd.f32 %v8349_v3, %v7896_v1  ;;  %7933 = vadd.xlane.f32.xlu1 %v7932_v19 }
0x2ae2   :  { %v11574_v22 = vadd.f32 %v7902_v59, %v11541_v9  ;;  %7930 = vadd.xlane.f32.xlu0 %v7929_v21 }
0x2ae3   :  { %v11577_v23 = vadd.f32 %v7897_v17, %v11539_v5 }
0x2ae4   :  { %v7918_v36 = vsel %vm58_vm0, %v11574_v22, 0.0  ;;  %v7928_v37 = vmul.f32 %v11574_v22, %v11574_v22 }
0x2ae5   :  { %7919 = vadd.xlane.f32.xlu1 %v7918_v36  ;;  %v7915_v49 = vsel %vm58_vm0, %v11577_v23, 0.0  ;;  %v7927_v40 = vmul.f32 %v11577_v23, %v11577_v23 }
0x2ae6   :  { %7916 = vadd.xlane.f32.xlu0 %v7915_v49  ;;  %v7938_v9 = vsel %vm58_vm0, %v7928_v37, 0.0 }
0x2ae7   :  { %v7935_v5 = vsel %vm58_vm0, %v7927_v40, 0.0 }
0x2ae9   :  { %7939 = vadd.xlane.f32.xlu1 %v7938_v9 }
0x2aea   :  { %7936 = vadd.xlane.f32.xlu0 %v7935_v5 }
0x2b6a   :  { %v7914_v43 = vpop.xlane.xlu1 %7913 }
0x2b6b   :  { %v7922_v48 = vmul.f32 0.03125, %v7914_v43  ;;  %v7911_v32 = vpop.xlane.xlu0 %7910 }
0x2b6c   :  { %v7921_v35 = vmul.f32 0.03125, %v7911_v32 }
0x2b6d   :  { %v7946_v12 = vmul.f32 %v7922_v48, %v7922_v48  ;;  %v7954_v58 = vsub.f32 %v11558_v24, %v7922_v48 }
0x2b6e   :  { %v7934_v45 = vpop.xlane.xlu1 %7933  ;;  %v7945_v42 = vmul.f32 %v7921_v35, %v7921_v35  ;;  %v7953_v14 = vsub.f32 %v11561_v28, %v7921_v35 }
0x2b6f   :  { %v7942_v13 = vmul.f32 0.03125, %v7934_v45  ;;  %v7931_v52 = vpop.xlane.xlu0 %7930 }
0x2b70   :  { %v7941_v44 = vmul.f32 0.03125, %v7931_v52 }
0x2b71   :  { %v7950_v53 = vsub.f32 %v7942_v13, %v7946_v12 }
0x2b72   :  { %v7949_v29 = vsub.f32 %v7941_v44, %v7945_v42  ;;  %v7920_v54 = vpop.xlane.xlu1 %7919 }
0x2b73   :  { %v7958_v47 = vadd.f32 1e-12, %v7950_v53  ;;  %v7924_v38 = vmul.f32 0.03125, %v7920_v54  ;;  %v7917_v8 = vpop.xlane.xlu0 %7916 }
0x2b74   :  { %v7957_v20 = vadd.f32 1e-12, %v7949_v29  ;;  %v7923_v18 = vmul.f32 0.03125, %v7917_v8 }
0x2b75   :  { %10312 = vrsqrt.f32 %v7958_v47  ;;  %v7948_v15 = vmul.f32 %v7924_v38, %v7924_v38  ;;  %v7956_v16 = vsub.f32 %v11574_v22, %v7924_v38 }
0x2b76   :  { %10314 = vrsqrt.f32 %v7957_v20  ;;  %v7940_v55 = vpop.xlane.xlu1 %7939  ;;  %v7947_v60 = vmul.f32 %v7923_v18, %v7923_v18  ;;  %v7955_v56 = vsub.f32 %v11577_v23, %v7923_v18 }
0x2b77   :  { %v7944_v57 = vmul.f32 0.03125, %v7940_v55  ;;  %v7937_v62 = vpop.xlane.xlu0 %7936 }
0x2b78   :  { %v7943_v30 = vmul.f32 0.03125, %v7937_v62 }
0x2b79   :  { %v7952_v61 = vsub.f32 %v7944_v57, %v7948_v15 }
0x2b7a   :  { %v7951_v63 = vsub.f32 %v7943_v30, %v7947_v60 }
0x2b7b   :  { %v7960_v0 = vadd.f32 1e-12, %v7952_v61 }
0x2b7c   :  { %v7959_v26 = vadd.f32 1e-12, %v7951_v63 }
0x2b7d   :  { %10316 = vrsqrt.f32 %v7960_v0 }
0x2b7e   :  { %10318 = vrsqrt.f32 %v7959_v26 }
0x2b7f   :  { %v10313_v31 = vpop.eup %10312 }
0x2b80   :  { %v10315_v6 = vpop.eup %10314  ;;  %v7966_v41 = vmul.f32 %v10313_v31, %v7954_v58 }
0x2b81   :  { %v7965_v50 = vmul.f32 %v10315_v6, %v7953_v14 }
0x2b82   :  { %v7974_v7 = vmul.f32 %v8354_v2, %v7966_v41 }
0x2b83   :  { %v7973_v39 = vmul.f32 %v8354_v2, %v7965_v50 }
0x2b84   :  { %v7982_v25 = vadd.f32 %v8355_v33, %v7974_v7 }
0x2b85   :  { %v7981_v3 = vadd.f32 %v8355_v33, %v7973_v39 }
0x2b86   :  { %7986 = vst.msk [vmem:[#allocation5 + $0x8] sm:$0xff] %vm58_vm0, %v7982_v25 }
0x2b87   :  { %v10317_v11 = vpop.eup %10316  ;;  %7985 = vst.msk [vmem:[#allocation5] sm:$0xff] %vm58_vm0, %v7981_v3 }
0x2b88   :  { %v10319_v34 = vpop.eup %10318  ;;  %v7968_v24 = vmul.f32 %v10317_v11, %v7956_v16 }
0x2b89   :  { %v7967_v28 = vmul.f32 %v10319_v34, %v7955_v56 }
0x2b8a   :  { %v7976_v27 = vmul.f32 %v8354_v2, %v7968_v24 }
0x2b8b   :  { %v7975_v51 = vmul.f32 %v8354_v2, %v7967_v28 }
0x2b8c   :  { %v7984_v46 = vadd.f32 %v8355_v33, %v7976_v27 }
0x2b8d   :  { %v7983_v10 = vadd.f32 %v8355_v33, %v7975_v51 }
0x2b8e   :  { %7988 = vst.msk [vmem:[#allocation5 + $0x18] sm:$0xff] %vm58_vm0, %v7984_v46 }
0x2b8f   :  { %7987 = vst.msk [vmem:[#allocation5 + $0x10] sm:$0xff] %vm58_vm0, %v7983_v10 }
0x2b90   :  { %10359 = shalt.err (!%p10356_p12)
}
0x2b91   :  { %s10360_s30 = scalar_lea.hbm %s11622_s4, 512 }
0x2b92   :  { %p10361_p13 = scmp.ne.s32.totalorder %s11622_s4, %s10360_s30  ;;  %p10364_p0 = scmp.lt.u32.totalorder %s10360_s30, %s11622_s4 }
0x2b94   :  { %p10366_p1 = pnand %p10364_p0, %p10361_p13 }
0x2b96   :  { %10369 = shalt.err (!%p10366_p1)
}
0x2b97   :  { %8000 = dma.vmem_to_hbm [thread:$0]  %s7995_s27, 512, %s11622_s4, [#allocation4], %s10375_s25, %s10375_s25, %s10376_s26  }
0x2b98   :  { %10372 = dma.done.wait [#allocation4], 512  }
0x2b99   :  { %10373 = vsyncadd [#allocation4], 4294966784 }
0x2b9a   :  { %8004 = vsyncpa [#allocation3], 1 }
0x2b9b   :  { %8005 = vsyncpa [#allocation4], 1 }

</bundles_post_ra>
